<compile_context>
chip_gen: v6e
topology: v6e:2x2x1
jax: 0.10.0
libtpu: 0.0.40
codegen_flags: <defaults>
</compile_context>

<pallas_src>
import jax
import jax.numpy as jnp
from jax.experimental import pallas as pl
from jax.experimental.pallas import tpu as pltpu

BN_EPS = 1e-5
LANES = 128  # pad Cout to full lane width


def _round_up(x, m):
    return (x + m - 1) // m * m


def _m_tiling(M):
    """Row-tile for the im2col matmul (safe on v5e/v6e/v7x VMEM budgets)."""
    tm = 256 if M >= 256 else _round_up(M, 16)
    m_pad = _round_up(M, tm)
    return tm, m_pad


# ---------------------------- Pallas kernels ----------------------------

def _conv_stats_kernel(p_ref, w_ref, o_ref, s_ref, q_ref):
    # bf16 (tm, Kd) x (Kd, 128) matmul with f32 accumulation, plus per-tile
    # per-channel sum / sum-of-squares so BatchNorm stats stay correct under
    # M-tiling (cross-tile reduction is finished outside).
    acc = jnp.dot(p_ref[...], w_ref[...], preferred_element_type=jnp.float32)
    o_ref[...] = acc
    s_ref[...] = jnp.sum(acc, axis=0, keepdims=True)[None]
    q_ref[...] = jnp.sum(acc * acc, axis=0, keepdims=True)[None]


def _bn_relu_kernel(x_ref, scale_ref, shift_ref, o_ref):
    # BN folded to a single per-channel FMA (scale/shift precomputed), + ReLU.
    y = x_ref[...] * scale_ref[...] + shift_ref[...]
    o_ref[...] = jnp.maximum(y, 0.0).astype(o_ref.dtype)


def _conv_bias_kernel(p_ref, w_ref, b_ref, o_ref):
    o_ref[...] = (jnp.dot(p_ref[...], w_ref[...],
                          preferred_element_type=jnp.float32) + b_ref[...])


def _max4_kernel(a_ref, b_ref, c_ref, d_ref, o_ref):
    o_ref[...] = jnp.maximum(jnp.maximum(a_ref[...], b_ref[...]),
                             jnp.maximum(c_ref[...], d_ref[...]))


# ---------------------------- wrappers (glue) ----------------------------

def _im2col(x, K, pad, m_pad, kd_pad):
    # x: (N,H,W,C) -> (m_pad, kd_pad) bf16 patches, column order [kh, kw, cin].
    N, H, W, C = x.shape
    xb = x.astype(jnp.bfloat16)
    if pad:
        xb = jnp.pad(xb, ((0, 0), (pad, pad), (pad, pad), (0, 0)))
    cols = [xb[:, kh:kh + H, kw:kw + W, :] for kh in range(K) for kw in range(K)]
    patches = jnp.concatenate(cols, axis=-1).reshape(N * H * W, K * K * C)
    return jnp.pad(patches, ((0, m_pad - N * H * W), (0, kd_pad - K * K * C)))


def _weight_mat(w_oihw, kd_pad, cout_pad):
    # (Cout, Cin, K, K) -> bf16 (kd_pad, cout_pad), matching _im2col order.
    Cout, Cin, K, _ = w_oihw.shape
    w = jnp.transpose(w_oihw, (2, 3, 1, 0)).reshape(K * K * Cin, Cout)
    w = jnp.pad(w, ((0, kd_pad - K * K * Cin), (0, cout_pad - Cout)))
    return w.astype(jnp.bfloat16)


def _matmul_cost(m_pad, kd_pad, cout_pad):
    return pl.CostEstimate(
        flops=2 * m_pad * kd_pad * cout_pad,
        transcendentals=0,
        bytes_accessed=(m_pad * kd_pad * 2 + kd_pad * cout_pad * 2
                        + m_pad * cout_pad * 4))


def conv_bn_relu(x, w_oihw, gamma, beta):
    """Conv2d(k, s=1, same-pad, bias=False) -> BatchNorm2d(train) -> ReLU."""
    N, H, W, _ = x.shape
    Cout, _, K, _ = w_oihw.shape
    M = N * H * W
    Kd = K * K * x.shape[-1]
    kd_pad = _round_up(Kd, 16)
    cout_pad = _round_up(Cout, LANES)
    tm, m_pad = _m_tiling(M)
    mt, nt = m_pad // tm, cout_pad // LANES

    patches = _im2col(x, K, (K - 1) // 2, m_pad, kd_pad)
    w = _weight_mat(w_oihw, kd_pad, cout_pad)

    conv, sums, sqs = pl.pallas_call(
        _conv_stats_kernel,
        out_shape=(jax.ShapeDtypeStruct((m_pad, cout_pad), jnp.float32),
                   jax.ShapeDtypeStruct((mt, 1, cout_pad), jnp.float32),
                   jax.ShapeDtypeStruct((mt, 1, cout_pad), jnp.float32)),
        grid=(mt, nt),
        in_specs=[pl.BlockSpec((tm, kd_pad), lambda i, j: (i, 0)),
                  pl.BlockSpec((kd_pad, LANES), lambda i, j: (0, j))],
        out_specs=(pl.BlockSpec((tm, LANES), lambda i, j: (i, j)),
                   pl.BlockSpec((1, 1, LANES), lambda i, j: (i, 0, j)),
                   pl.BlockSpec((1, 1, LANES), lambda i, j: (i, 0, j))),
        compiler_params=pltpu.CompilerParams(
            dimension_semantics=("parallel", "parallel")),
        cost_estimate=_matmul_cost(m_pad, kd_pad, cout_pad),
    )(patches, w)

    # Cross-tile batch statistics (padded rows are zero -> contribute nothing).
    tot_sum = jnp.sum(sums, axis=(0, 1))
    tot_sq = jnp.sum(sqs, axis=(0, 1))
    mean = tot_sum / M
    var = jnp.maximum(tot_sq / M - mean * mean, 0.0)
    gamma_p = jnp.pad(gamma, (0, cout_pad - Cout), constant_values=1.0)
    beta_p = jnp.pad(beta, (0, cout_pad - Cout))
    scale = (gamma_p * jax.lax.rsqrt(var + BN_EPS)).astype(jnp.float32)
    shift = (beta_p - mean * scale).astype(jnp.float32)
    scale = scale.reshape(1, cout_pad)
    shift = shift.reshape(1, cout_pad)

    out = pl.pallas_call(
        _bn_relu_kernel,
        out_shape=jax.ShapeDtypeStruct((m_pad, cout_pad), jnp.bfloat16),
        grid=(mt, nt),
        in_specs=[pl.BlockSpec((tm, LANES), lambda i, j: (i, j)),
                  pl.BlockSpec((1, LANES), lambda i, j: (0, j)),
                  pl.BlockSpec((1, LANES), lambda i, j: (0, j))],
        out_specs=pl.BlockSpec((tm, LANES), lambda i, j: (i, j)),
        compiler_params=pltpu.CompilerParams(
            dimension_semantics=("parallel", "parallel")),
    )(conv, scale, shift)

    return out[:M, :Cout].reshape(N, H, W, Cout)


def conv_bias(x, w_oihw, bias, pad):
    """Plain Conv2d (with bias): ConvTranspose-as-conv and the final 1x1."""
    N, H, W, _ = x.shape
    Cout, _, K, _ = w_oihw.shape
    M = N * H * W
    Kd = K * K * x.shape[-1]
    kd_pad = _round_up(Kd, 16)
    cout_pad = _round_up(Cout, LANES)
    tm, m_pad = _m_tiling(M)
    mt, nt = m_pad // tm, cout_pad // LANES

    patches = _im2col(x, K, pad, m_pad, kd_pad)
    w = _weight_mat(w_oihw, kd_pad, cout_pad)
    b = jnp.pad(bias, (0, cout_pad - Cout)).reshape(1, cout_pad).astype(jnp.float32)

    out = pl.pallas_call(
        _conv_bias_kernel,
        out_shape=jax.ShapeDtypeStruct((m_pad, cout_pad), jnp.float32),
        grid=(mt, nt),
        in_specs=[pl.BlockSpec((tm, kd_pad), lambda i, j: (i, 0)),
                  pl.BlockSpec((kd_pad, LANES), lambda i, j: (0, j)),
                  pl.BlockSpec((1, LANES), lambda i, j: (0, j))],
        out_specs=pl.BlockSpec((tm, LANES), lambda i, j: (i, j)),
        compiler_params=pltpu.CompilerParams(
            dimension_semantics=("parallel", "parallel")),
        cost_estimate=_matmul_cost(m_pad, kd_pad, cout_pad),
    )(patches, w, b)

    return out[:M, :Cout].reshape(N, H, W, Cout)


def max_pool2x2(x):
    # MaxPool2d(2,2): tiled elementwise max of the four 2x2-window corners.
    N, H, W, C = x.shape
    Ho, Wo = H // 2, W // 2
    corners = [x[:, 0::2, 0::2, :], x[:, 0::2, 1::2, :],
               x[:, 1::2, 0::2, :], x[:, 1::2, 1::2, :]]
    M = N * Ho * Wo
    tm, m_pad = _m_tiling(M)
    mt = m_pad // tm
    flat = [jnp.pad(c.reshape(M, C), ((0, m_pad - M), (0, 0))) for c in corners]
    spec = pl.BlockSpec((tm, C), lambda i: (i, 0))
    out = pl.pallas_call(
        _max4_kernel,
        out_shape=jax.ShapeDtypeStruct((m_pad, C), x.dtype),
        grid=(mt,),
        in_specs=[spec] * 4,
        out_specs=spec,
        compiler_params=pltpu.CompilerParams(dimension_semantics=("parallel",)),
    )(*flat)
    return out[:M].reshape(N, Ho, Wo, C)


def nearest_resize(x, Hout, Wout):
    # F.interpolate(mode='nearest'): src = floor(dst * Hin / Hout)
    N, H, W, _ = x.shape
    hi = (jnp.arange(Hout) * H) // Hout
    wi = (jnp.arange(Wout) * W) // Wout
    return x[:, hi][:, :, wi]


# ---------------------------- parameters ----------------------------

def init_double_conv(key, cin, cout):
    k1, k2 = jax.random.split(key)
    return {
        "w1": 0.1 * jax.random.normal(k1, (cout, cin, 3, 3), jnp.float32),
        "g1": jnp.ones((cout,), jnp.float32),
        "b1": jnp.zeros((cout,), jnp.float32),
        "w2": 0.1 * jax.random.normal(k2, (cout, cout, 3, 3), jnp.float32),
        "g2": jnp.ones((cout,), jnp.float32),
        "b2": jnp.zeros((cout,), jnp.float32),
    }


def double_conv(x, p):
    x = conv_bn_relu(x, p["w1"], p["g1"], p["b1"])
    return conv_bn_relu(x, p["w2"], p["g2"], p["b2"])


def init_unet(key, in_channels=3, out_channels=1, features=(8, 16)):
    keys = jax.random.split(key, 4 * len(features) + 2)
    ki = iter(keys)
    params = {"downs": [], "up_cts": [], "up_dcs": []}
    cin = in_channels
    for f in features:
        params["downs"].append(init_double_conv(next(ki), cin, f))
        cin = f
    for f in reversed(features):
        # ConvTranspose2d(2f, f, k=3, s=1, p=1) weight layout (Cin, Cout, K, K).
        w_iokk = 0.1 * jax.random.normal(next(ki), (2 * f, f, 3, 3), jnp.float32)
        # Hoisted out of the forward pass: ConvTranspose2d(k=3, s=1, p=1) is an
        # ordinary conv (pad=1) with the spatially flipped, channel-swapped
        # weight; precompute the conv-form (OIHW) weight once at init.
        w_conv = jnp.transpose(jnp.flip(w_iokk, axis=(2, 3)), (1, 0, 2, 3))
        params["up_cts"].append({
            "w_conv": w_conv,
            "b": 0.1 * jax.random.normal(next(ki), (f,), jnp.float32),
        })
        params["up_dcs"].append(init_double_conv(next(ki), 2 * f, f))
    params["bottleneck"] = init_double_conv(next(ki), features[-1], 2 * features[-1])
    kf = next(ki)
    params["final_w"] = 0.1 * jax.random.normal(
        kf, (out_channels, features[0], 1, 1), jnp.float32)
    params["final_b"] = jnp.zeros((out_channels,), jnp.float32)
    return params


# ---------------------------- forward ----------------------------

def unet_forward(params, x_nchw):
    x = jnp.transpose(x_nchw, (0, 2, 3, 1)).astype(jnp.float32)  # NCHW -> NHWC
    skips = []
    for dc in params["downs"]:
        x = double_conv(x, dc)
        skips.append(x)
        x = max_pool2x2(x)
    x = double_conv(x, params["bottleneck"])
    skips = skips[::-1]
    for ct, dc, skip in zip(params["up_cts"], params["up_dcs"], skips):
        x = conv_bias(x, ct["w_conv"], ct["b"], pad=1).astype(jnp.bfloat16)
        if x.shape[1:3] != skip.shape[1:3]:
            x = nearest_resize(x, skip.shape[1], skip.shape[2])
        x = jnp.concatenate([skip, x], axis=-1)  # torch.cat((skip, x), dim=1)
        x = double_conv(x, dc)
    x = conv_bias(x, params["final_w"], params["final_b"], pad=0)
    return jnp.transpose(x, (0, 3, 1, 2)).astype(jnp.float32)  # back to NCHW


if __name__ == "__main__":
    key = jax.random.PRNGKey(0)
    pkey, xkey = jax.random.split(key)
    # Small UNet: in=3, out=1, features=(8, 16), input 2x3x16x16
    params = init_unet(pkey, in_channels=3, out_channels=1, features=(8, 16))
    x = jax.random.normal(xkey, (2, 3, 16, 16), jnp.float32)
    fwd = jax.jit(unet_forward)
    y = fwd(params, x)
    jax.block_until_ready(y)
    assert y.shape == (2, 1, 16, 16), y.shape
    print("KERNEL_OK")
</pallas_src>

<mosaic_0001>
module attributes {stable_mosaic.version = 11 : i64} {
  func.func @_conv_stats_kernel(%arg0: i32, %arg1: i32, %arg2: memref<256x32xbf16, #tpu.memory_space<vmem>>, %arg3: memref<32x128xbf16, #tpu.memory_space<vmem>>, %arg4: memref<256x128xf32, #tpu.memory_space<vmem>>, %arg5: memref<1x1x128xf32, #tpu.memory_space<vmem>>, %arg6: memref<1x1x128xf32, #tpu.memory_space<vmem>>) attributes {dimension_semantics = [#tpu.dimension_semantics<parallel>, #tpu.dimension_semantics<parallel>], iteration_bounds = array<i64: 2, 1>, scalar_prefetch = 0 : i64, scratch_operands = 0 : i64, tpu.core_type = #tpu.core_type<tc>, window_params = [{transform_indices = @transform_0, window_bounds = array<i64: 256, 32>}, {transform_indices = @transform_1, window_bounds = array<i64: 32, 128>}, {transform_indices = @transform_2, window_bounds = array<i64: 256, 128>}, {transform_indices = @transform_3, window_bounds = array<i64: 1, 1, 128>}, {transform_indices = @transform_4, window_bounds = array<i64: 1, 1, 128>}]} {
    %c0 = arith.constant 0 : index
    %c0_0 = arith.constant 0 : index
    %0 = vector.load %arg2[%c0, %c0_0] : memref<256x32xbf16, #tpu.memory_space<vmem>>, vector<256x32xbf16>
    %c0_1 = arith.constant 0 : index
    %c0_2 = arith.constant 0 : index
    %1 = vector.load %arg3[%c0_1, %c0_2] : memref<32x128xbf16, #tpu.memory_space<vmem>>, vector<32x128xbf16>
    %cst = arith.constant dense<0.000000e+00> : vector<256x128xf32>
    %2 = tpu.matmul %0, %1, %cst {dimension_numbers = #tpu.dot_dimension_numbers<[1], [0], [0], [1], [0, 0, 1, 1], [], []>} : vector<256x32xbf16>, vector<32x128xbf16>, vector<256x128xf32> -> vector<256x128xf32>
    %c0_3 = arith.constant 0 : index
    %c0_4 = arith.constant 0 : index
    %3 = vector.load %arg4[%c0_3, %c0_4] : memref<256x128xf32, #tpu.memory_space<vmem>>, vector<256x128xf32>
    tpu.vector_store %arg4[%c0_3, %c0_4], %2 {strides = array<i32>} : memref<256x128xf32, #tpu.memory_space<vmem>>, vector<256x128xf32>,
    %cst_5 = arith.constant dense<0.000000e+00> : vector<128xf32>
    %4 = vector.multi_reduction <add>, %2, %cst_5 [0] : vector<256x128xf32> to vector<128xf32>
    %5 = vector.shape_cast %4 : vector<128xf32> to vector<1x128xf32>
    %6 = vector.shape_cast %5 : vector<1x128xf32> to vector<1x1x128xf32>
    %c0_6 = arith.constant 0 : index
    %c0_7 = arith.constant 0 : index
    %c0_8 = arith.constant 0 : index
    %7 = vector.load %arg5[%c0_6, %c0_7, %c0_8] : memref<1x1x128xf32, #tpu.memory_space<vmem>>, vector<1x1x128xf32>
    tpu.vector_store %arg5[%c0_6, %c0_7, %c0_8], %6 {strides = array<i32>} : memref<1x1x128xf32, #tpu.memory_space<vmem>>, vector<1x1x128xf32>,
    %8 = arith.mulf %2, %2 : vector<256x128xf32>
    %cst_9 = arith.constant dense<0.000000e+00> : vector<128xf32>
    %9 = vector.multi_reduction <add>, %8, %cst_9 [0] : vector<256x128xf32> to vector<128xf32>
    %10 = vector.shape_cast %9 : vector<128xf32> to vector<1x128xf32>
    %11 = vector.shape_cast %10 : vector<1x128xf32> to vector<1x1x128xf32>
    %c0_10 = arith.constant 0 : index
    %c0_11 = arith.constant 0 : index
    %c0_12 = arith.constant 0 : index
    %12 = vector.load %arg6[%c0_10, %c0_11, %c0_12] : memref<1x1x128xf32, #tpu.memory_space<vmem>>, vector<1x1x128xf32>
    tpu.vector_store %arg6[%c0_10, %c0_11, %c0_12], %11 {strides = array<i32>} : memref<1x1x128xf32, #tpu.memory_space<vmem>>, vector<1x1x128xf32>,
    return
  }
  func.func @transform_0(%arg0: i32, %arg1: i32) -> (i32, i32) {
    %c0_i32 = arith.constant 0 : i32
    %c0_i32_0 = arith.constant 0 : i32
    return %arg0, %c0_i32 : i32, i32
  }
  func.func @transform_1(%arg0: i32, %arg1: i32) -> (i32, i32) {
    %c0_i32 = arith.constant 0 : i32
    %c0_i32_0 = arith.constant 0 : i32
    return %c0_i32, %arg1 : i32, i32
  }
  func.func @transform_2(%arg0: i32, %arg1: i32) -> (i32, i32) {
    %c0_i32 = arith.constant 0 : i32
    return %arg0, %arg1 : i32, i32
  }
  func.func @transform_3(%arg0: i32, %arg1: i32) -> (i32, i32, i32) {
    %c0_i32 = arith.constant 0 : i32
    %c0_i32_0 = arith.constant 0 : i32
    return %arg0, %c0_i32, %arg1 : i32, i32, i32
  }
  func.func @transform_4(%arg0: i32, %arg1: i32) -> (i32, i32, i32) {
    %c0_i32 = arith.constant 0 : i32
    %c0_i32_0 = arith.constant 0 : i32
    return %arg0, %c0_i32, %arg1 : i32, i32, i32
  }
}

module attributes {stable_mosaic.version = 11 : i64} {
  func.func @_bn_relu_kernel(%arg0: i32, %arg1: i32, %arg2: memref<256x128xf32, #tpu.memory_space<vmem>>, %arg3: memref<1x128xf32, #tpu.memory_space<vmem>>, %arg4: memref<1x128xf32, #tpu.memory_space<vmem>>, %arg5: memref<256x128xbf16, #tpu.memory_space<vmem>>) attributes {dimension_semantics = [#tpu.dimension_semantics<parallel>, #tpu.dimension_semantics<parallel>], iteration_bounds = array<i64: 2, 1>, scalar_prefetch = 0 : i64, scratch_operands = 0 : i64, tpu.core_type = #tpu.core_type<tc>, window_params = [{transform_indices = @transform_0, window_bounds = array<i64: 256, 128>}, {transform_indices = @transform_1, window_bounds = array<i64: 1, 128>}, {transform_indices = @transform_2, window_bounds = array<i64: 1, 128>}, {transform_indices = @transform_3, window_bounds = array<i64: 256, 128>}]} {
    %c0 = arith.constant 0 : index
    %c0_0 = arith.constant 0 : index
    %0 = vector.load %arg2[%c0, %c0_0] : memref<256x128xf32, #tpu.memory_space<vmem>>, vector<256x128xf32>
    %c0_1 = arith.constant 0 : index
    %c0_2 = arith.constant 0 : index
    %1 = vector.load %arg3[%c0_1, %c0_2] : memref<1x128xf32, #tpu.memory_space<vmem>>, vector<1x128xf32>
    %2 = vector.broadcast %1 : vector<1x128xf32> to vector<256x128xf32>
    %3 = arith.mulf %0, %2 : vector<256x128xf32>
    %c0_3 = arith.constant 0 : index
    %c0_4 = arith.constant 0 : index
    %4 = vector.load %arg4[%c0_3, %c0_4] : memref<1x128xf32, #tpu.memory_space<vmem>>, vector<1x128xf32>
    %5 = vector.broadcast %4 : vector<1x128xf32> to vector<256x128xf32>
    %6 = arith.addf %3, %5 : vector<256x128xf32>
    %cst = arith.constant 0.000000e+00 : f32
    %7 = vector.broadcast %cst : f32 to vector<256x128xf32>
    %8 = arith.maximumf %6, %7 : vector<256x128xf32>
    %9 = arith.truncf %8 : vector<256x128xf32> to vector<256x128xbf16>
    %c0_5 = arith.constant 0 : index
    %c0_6 = arith.constant 0 : index
    %10 = vector.load %arg5[%c0_5, %c0_6] : memref<256x128xbf16, #tpu.memory_space<vmem>>, vector<256x128xbf16>
    tpu.vector_store %arg5[%c0_5, %c0_6], %9 {strides = array<i32>} : memref<256x128xbf16, #tpu.memory_space<vmem>>, vector<256x128xbf16>,
    return
  }
  func.func @transform_0(%arg0: i32, %arg1: i32) -> (i32, i32) {
    %c0_i32 = arith.constant 0 : i32
    return %arg0, %arg1 : i32, i32
  }
  func.func @transform_1(%arg0: i32, %arg1: i32) -> (i32, i32) {
    %c0_i32 = arith.constant 0 : i32
    %c0_i32_0 = arith.constant 0 : i32
    return %c0_i32, %arg1 : i32, i32
  }
  func.func @transform_2(%arg0: i32, %arg1: i32) -> (i32, i32) {
    %c0_i32 = arith.constant 0 : i32
    %c0_i32_0 = arith.constant 0 : i32
    return %c0_i32, %arg1 : i32, i32
  }
  func.func @transform_3(%arg0: i32, %arg1: i32) -> (i32, i32) {
    %c0_i32 = arith.constant 0 : i32
    return %arg0, %arg1 : i32, i32
  }
}

module attributes {stable_mosaic.version = 11 : i64} {
  func.func @_conv_stats_kernel(%arg0: i32, %arg1: i32, %arg2: memref<256x80xbf16, #tpu.memory_space<vmem>>, %arg3: memref<80x128xbf16, #tpu.memory_space<vmem>>, %arg4: memref<256x128xf32, #tpu.memory_space<vmem>>, %arg5: memref<1x1x128xf32, #tpu.memory_space<vmem>>, %arg6: memref<1x1x128xf32, #tpu.memory_space<vmem>>) attributes {dimension_semantics = [#tpu.dimension_semantics<parallel>, #tpu.dimension_semantics<parallel>], iteration_bounds = array<i64: 2, 1>, scalar_prefetch = 0 : i64, scratch_operands = 0 : i64, tpu.core_type = #tpu.core_type<tc>, window_params = [{transform_indices = @transform_0, window_bounds = array<i64: 256, 80>}, {transform_indices = @transform_1, window_bounds = array<i64: 80, 128>}, {transform_indices = @transform_2, window_bounds = array<i64: 256, 128>}, {transform_indices = @transform_3, window_bounds = array<i64: 1, 1, 128>}, {transform_indices = @transform_4, window_bounds = array<i64: 1, 1, 128>}]} {
    %c0 = arith.constant 0 : index
    %c0_0 = arith.constant 0 : index
    %0 = vector.load %arg2[%c0, %c0_0] : memref<256x80xbf16, #tpu.memory_space<vmem>>, vector<256x80xbf16>
    %c0_1 = arith.constant 0 : index
    %c0_2 = arith.constant 0 : index
    %1 = vector.load %arg3[%c0_1, %c0_2] : memref<80x128xbf16, #tpu.memory_space<vmem>>, vector<80x128xbf16>
    %cst = arith.constant dense<0.000000e+00> : vector<256x128xf32>
    %2 = tpu.matmul %0, %1, %cst {dimension_numbers = #tpu.dot_dimension_numbers<[1], [0], [0], [1], [0, 0, 1, 1], [], []>} : vector<256x80xbf16>, vector<80x128xbf16>, vector<256x128xf32> -> vector<256x128xf32>
    %c0_3 = arith.constant 0 : index
    %c0_4 = arith.constant 0 : index
    %3 = vector.load %arg4[%c0_3, %c0_4] : memref<256x128xf32, #tpu.memory_space<vmem>>, vector<256x128xf32>
    tpu.vector_store %arg4[%c0_3, %c0_4], %2 {strides = array<i32>} : memref<256x128xf32, #tpu.memory_space<vmem>>, vector<256x128xf32>,
    %cst_5 = arith.constant dense<0.000000e+00> : vector<128xf32>
    %4 = vector.multi_reduction <add>, %2, %cst_5 [0] : vector<256x128xf32> to vector<128xf32>
    %5 = vector.shape_cast %4 : vector<128xf32> to vector<1x128xf32>
    %6 = vector.shape_cast %5 : vector<1x128xf32> to vector<1x1x128xf32>
    %c0_6 = arith.constant 0 : index
    %c0_7 = arith.constant 0 : index
    %c0_8 = arith.constant 0 : index
    %7 = vector.load %arg5[%c0_6, %c0_7, %c0_8] : memref<1x1x128xf32, #tpu.memory_space<vmem>>, vector<1x1x128xf32>
    tpu.vector_store %arg5[%c0_6, %c0_7, %c0_8], %6 {strides = array<i32>} : memref<1x1x128xf32, #tpu.memory_space<vmem>>, vector<1x1x128xf32>,
    %8 = arith.mulf %2, %2 : vector<256x128xf32>
    %cst_9 = arith.constant dense<0.000000e+00> : vector<128xf32>
    %9 = vector.multi_reduction <add>, %8, %cst_9 [0] : vector<256x128xf32> to vector<128xf32>
    %10 = vector.shape_cast %9 : vector<128xf32> to vector<1x128xf32>
    %11 = vector.shape_cast %10 : vector<1x128xf32> to vector<1x1x128xf32>
    %c0_10 = arith.constant 0 : index
    %c0_11 = arith.constant 0 : index
    %c0_12 = arith.constant 0 : index
    %12 = vector.load %arg6[%c0_10, %c0_11, %c0_12] : memref<1x1x128xf32, #tpu.memory_space<vmem>>, vector<1x1x128xf32>
    tpu.vector_store %arg6[%c0_10, %c0_11, %c0_12], %11 {strides = array<i32>} : memref<1x1x128xf32, #tpu.memory_space<vmem>>, vector<1x1x128xf32>,
    return
  }
  func.func @transform_0(%arg0: i32, %arg1: i32) -> (i32, i32) {
    %c0_i32 = arith.constant 0 : i32
    %c0_i32_0 = arith.constant 0 : i32
    return %arg0, %c0_i32 : i32, i32
  }
  func.func @transform_1(%arg0: i32, %arg1: i32) -> (i32, i32) {
    %c0_i32 = arith.constant 0 : i32
    %c0_i32_0 = arith.constant 0 : i32
    return %c0_i32, %arg1 : i32, i32
  }
  func.func @transform_2(%arg0: i32, %arg1: i32) -> (i32, i32) {
    %c0_i32 = arith.constant 0 : i32
    return %arg0, %arg1 : i32, i32
  }
  func.func @transform_3(%arg0: i32, %arg1: i32) -> (i32, i32, i32) {
    %c0_i32 = arith.constant 0 : i32
    %c0_i32_0 = arith.constant 0 : i32
    return %arg0, %c0_i32, %arg1 : i32, i32, i32
  }
  func.func @transform_4(%arg0: i32, %arg1: i32) -> (i32, i32, i32) {
    %c0_i32 = arith.constant 0 : i32
    %c0_i32_0 = arith.constant 0 : i32
    return %arg0, %c0_i32, %arg1 : i32, i32, i32
  }
}

module attributes {stable_mosaic.version = 11 : i64} {
  func.func @_max4_kernel(%arg0: i32, %arg1: memref<128x8xbf16, #tpu.memory_space<vmem>>, %arg2: memref<128x8xbf16, #tpu.memory_space<vmem>>, %arg3: memref<128x8xbf16, #tpu.memory_space<vmem>>, %arg4: memref<128x8xbf16, #tpu.memory_space<vmem>>, %arg5: memref<128x8xbf16, #tpu.memory_space<vmem>>) attributes {dimension_semantics = [#tpu.dimension_semantics<parallel>], iteration_bounds = array<i64: 1>, scalar_prefetch = 0 : i64, scratch_operands = 0 : i64, tpu.core_type = #tpu.core_type<tc>, window_params = [{transform_indices = @transform_0, window_bounds = array<i64: 128, 8>}, {transform_indices = @transform_1, window_bounds = array<i64: 128, 8>}, {transform_indices = @transform_2, window_bounds = array<i64: 128, 8>}, {transform_indices = @transform_3, window_bounds = array<i64: 128, 8>}, {transform_indices = @transform_4, window_bounds = array<i64: 128, 8>}]} {
    %c0 = arith.constant 0 : index
    %c0_0 = arith.constant 0 : index
    %0 = vector.load %arg1[%c0, %c0_0] : memref<128x8xbf16, #tpu.memory_space<vmem>>, vector<128x8xbf16>
    %c0_1 = arith.constant 0 : index
    %c0_2 = arith.constant 0 : index
    %1 = vector.load %arg2[%c0_1, %c0_2] : memref<128x8xbf16, #tpu.memory_space<vmem>>, vector<128x8xbf16>
    %2 = arith.maximumf %0, %1 : vector<128x8xbf16>
    %c0_3 = arith.constant 0 : index
    %c0_4 = arith.constant 0 : index
    %3 = vector.load %arg3[%c0_3, %c0_4] : memref<128x8xbf16, #tpu.memory_space<vmem>>, vector<128x8xbf16>
    %c0_5 = arith.constant 0 : index
    %c0_6 = arith.constant 0 : index
    %4 = vector.load %arg4[%c0_5, %c0_6] : memref<128x8xbf16, #tpu.memory_space<vmem>>, vector<128x8xbf16>
    %5 = arith.maximumf %3, %4 : vector<128x8xbf16>
    %6 = arith.maximumf %2, %5 : vector<128x8xbf16>
    %c0_7 = arith.constant 0 : index
    %c0_8 = arith.constant 0 : index
    %7 = vector.load %arg5[%c0_7, %c0_8] : memref<128x8xbf16, #tpu.memory_space<vmem>>, vector<128x8xbf16>
    tpu.vector_store %arg5[%c0_7, %c0_8], %6 {strides = array<i32>} : memref<128x8xbf16, #tpu.memory_space<vmem>>, vector<128x8xbf16>,
    return
  }
  func.func @transform_0(%arg0: i32) -> (i32, i32) {
    %c0_i32 = arith.constant 0 : i32
    %c0_i32_0 = arith.constant 0 : i32
    return %arg0, %c0_i32 : i32, i32
  }
  func.func @transform_1(%arg0: i32) -> (i32, i32) {
    %c0_i32 = arith.constant 0 : i32
    %c0_i32_0 = arith.constant 0 : i32
    return %arg0, %c0_i32 : i32, i32
  }
  func.func @transform_2(%arg0: i32) -> (i32, i32) {
    %c0_i32 = arith.constant 0 : i32
    %c0_i32_0 = arith.constant 0 : i32
    return %arg0, %c0_i32 : i32, i32
  }
  func.func @transform_3(%arg0: i32) -> (i32, i32) {
    %c0_i32 = arith.constant 0 : i32
    %c0_i32_0 = arith.constant 0 : i32
    return %arg0, %c0_i32 : i32, i32
  }
  func.func @transform_4(%arg0: i32) -> (i32, i32) {
    %c0_i32 = arith.constant 0 : i32
    %c0_i32_0 = arith.constant 0 : i32
    return %arg0, %c0_i32 : i32, i32
  }
}

module attributes {stable_mosaic.version = 11 : i64} {
  func.func @_conv_stats_kernel(%arg0: i32, %arg1: i32, %arg2: memref<128x80xbf16, #tpu.memory_space<vmem>>, %arg3: memref<80x128xbf16, #tpu.memory_space<vmem>>, %arg4: memref<128x128xf32, #tpu.memory_space<vmem>>, %arg5: memref<1x1x128xf32, #tpu.memory_space<vmem>>, %arg6: memref<1x1x128xf32, #tpu.memory_space<vmem>>) attributes {dimension_semantics = [#tpu.dimension_semantics<parallel>, #tpu.dimension_semantics<parallel>], iteration_bounds = array<i64: 1, 1>, scalar_prefetch = 0 : i64, scratch_operands = 0 : i64, tpu.core_type = #tpu.core_type<tc>, window_params = [{transform_indices = @transform_0, window_bounds = array<i64: 128, 80>}, {transform_indices = @transform_1, window_bounds = array<i64: 80, 128>}, {transform_indices = @transform_2, window_bounds = array<i64: 128, 128>}, {transform_indices = @transform_3, window_bounds = array<i64: 1, 1, 128>}, {transform_indices = @transform_4, window_bounds = array<i64: 1, 1, 128>}]} {
    %c0 = arith.constant 0 : index
    %c0_0 = arith.constant 0 : index
    %0 = vector.load %arg2[%c0, %c0_0] : memref<128x80xbf16, #tpu.memory_space<vmem>>, vector<128x80xbf16>
    %c0_1 = arith.constant 0 : index
    %c0_2 = arith.constant 0 : index
    %1 = vector.load %arg3[%c0_1, %c0_2] : memref<80x128xbf16, #tpu.memory_space<vmem>>, vector<80x128xbf16>
    %cst = arith.constant dense<0.000000e+00> : vector<128x128xf32>
    %2 = tpu.matmul %0, %1, %cst {dimension_numbers = #tpu.dot_dimension_numbers<[1], [0], [0], [1], [0, 0, 1, 1], [], []>} : vector<128x80xbf16>, vector<80x128xbf16>, vector<128x128xf32> -> vector<128x128xf32>
    %c0_3 = arith.constant 0 : index
    %c0_4 = arith.constant 0 : index
    %3 = vector.load %arg4[%c0_3, %c0_4] : memref<128x128xf32, #tpu.memory_space<vmem>>, vector<128x128xf32>
    tpu.vector_store %arg4[%c0_3, %c0_4], %2 {strides = array<i32>} : memref<128x128xf32, #tpu.memory_space<vmem>>, vector<128x128xf32>,
    %cst_5 = arith.constant dense<0.000000e+00> : vector<128xf32>
    %4 = vector.multi_reduction <add>, %2, %cst_5 [0] : vector<128x128xf32> to vector<128xf32>
    %5 = vector.shape_cast %4 : vector<128xf32> to vector<1x128xf32>
    %6 = vector.shape_cast %5 : vector<1x128xf32> to vector<1x1x128xf32>
    %c0_6 = arith.constant 0 : index
    %c0_7 = arith.constant 0 : index
    %c0_8 = arith.constant 0 : index
    %7 = vector.load %arg5[%c0_6, %c0_7, %c0_8] : memref<1x1x128xf32, #tpu.memory_space<vmem>>, vector<1x1x128xf32>
    tpu.vector_store %arg5[%c0_6, %c0_7, %c0_8], %6 {strides = array<i32>} : memref<1x1x128xf32, #tpu.memory_space<vmem>>, vector<1x1x128xf32>,
    %8 = arith.mulf %2, %2 : vector<128x128xf32>
    %cst_9 = arith.constant dense<0.000000e+00> : vector<128xf32>
    %9 = vector.multi_reduction <add>, %8, %cst_9 [0] : vector<128x128xf32> to vector<128xf32>
    %10 = vector.shape_cast %9 : vector<128xf32> to vector<1x128xf32>
    %11 = vector.shape_cast %10 : vector<1x128xf32> to vector<1x1x128xf32>
    %c0_10 = arith.constant 0 : index
    %c0_11 = arith.constant 0 : index
    %c0_12 = arith.constant 0 : index
    %12 = vector.load %arg6[%c0_10, %c0_11, %c0_12] : memref<1x1x128xf32, #tpu.memory_space<vmem>>, vector<1x1x128xf32>
    tpu.vector_store %arg6[%c0_10, %c0_11, %c0_12], %11 {strides = array<i32>} : memref<1x1x128xf32, #tpu.memory_space<vmem>>, vector<1x1x128xf32>,
    return
  }
  func.func @transform_0(%arg0: i32, %arg1: i32) -> (i32, i32) {
    %c0_i32 = arith.constant 0 : i32
    %c0_i32_0 = arith.constant 0 : i32
    return %arg0, %c0_i32 : i32, i32
  }
  func.func @transform_1(%arg0: i32, %arg1: i32) -> (i32, i32) {
    %c0_i32 = arith.constant 0 : i32
    %c0_i32_0 = arith.constant 0 : i32
    return %c0_i32, %arg1 : i32, i32
  }
  func.func @transform_2(%arg0: i32, %arg1: i32) -> (i32, i32) {
    %c0_i32 = arith.constant 0 : i32
    return %arg0, %arg1 : i32, i32
  }
  func.func @transform_3(%arg0: i32, %arg1: i32) -> (i32, i32, i32) {
    %c0_i32 = arith.constant 0 : i32
    %c0_i32_0 = arith.constant 0 : i32
    return %arg0, %c0_i32, %arg1 : i32, i32, i32
  }
  func.func @transform_4(%arg0: i32, %arg1: i32) -> (i32, i32, i32) {
    %c0_i32 = arith.constant 0 : i32
    %c0_i32_0 = arith.constant 0 : i32
    return %arg0, %c0_i32, %arg1 : i32, i32, i32
  }
}

module attributes {stable_mosaic.version = 11 : i64} {
  func.func @_bn_relu_kernel(%arg0: i32, %arg1: i32, %arg2: memref<128x128xf32, #tpu.memory_space<vmem>>, %arg3: memref<1x128xf32, #tpu.memory_space<vmem>>, %arg4: memref<1x128xf32, #tpu.memory_space<vmem>>, %arg5: memref<128x128xbf16, #tpu.memory_space<vmem>>) attributes {dimension_semantics = [#tpu.dimension_semantics<parallel>, #tpu.dimension_semantics<parallel>], iteration_bounds = array<i64: 1, 1>, scalar_prefetch = 0 : i64, scratch_operands = 0 : i64, tpu.core_type = #tpu.core_type<tc>, window_params = [{transform_indices = @transform_0, window_bounds = array<i64: 128, 128>}, {transform_indices = @transform_1, window_bounds = array<i64: 1, 128>}, {transform_indices = @transform_2, window_bounds = array<i64: 1, 128>}, {transform_indices = @transform_3, window_bounds = array<i64: 128, 128>}]} {
    %c0 = arith.constant 0 : index
    %c0_0 = arith.constant 0 : index
    %0 = vector.load %arg2[%c0, %c0_0] : memref<128x128xf32, #tpu.memory_space<vmem>>, vector<128x128xf32>
    %c0_1 = arith.constant 0 : index
    %c0_2 = arith.constant 0 : index
    %1 = vector.load %arg3[%c0_1, %c0_2] : memref<1x128xf32, #tpu.memory_space<vmem>>, vector<1x128xf32>
    %2 = vector.broadcast %1 : vector<1x128xf32> to vector<128x128xf32>
    %3 = arith.mulf %0, %2 : vector<128x128xf32>
    %c0_3 = arith.constant 0 : index
    %c0_4 = arith.constant 0 : index
    %4 = vector.load %arg4[%c0_3, %c0_4] : memref<1x128xf32, #tpu.memory_space<vmem>>, vector<1x128xf32>
    %5 = vector.broadcast %4 : vector<1x128xf32> to vector<128x128xf32>
    %6 = arith.addf %3, %5 : vector<128x128xf32>
    %cst = arith.constant 0.000000e+00 : f32
    %7 = vector.broadcast %cst : f32 to vector<128x128xf32>
    %8 = arith.maximumf %6, %7 : vector<128x128xf32>
    %9 = arith.truncf %8 : vector<128x128xf32> to vector<128x128xbf16>
    %c0_5 = arith.constant 0 : index
    %c0_6 = arith.constant 0 : index
    %10 = vector.load %arg5[%c0_5, %c0_6] : memref<128x128xbf16, #tpu.memory_space<vmem>>, vector<128x128xbf16>
    tpu.vector_store %arg5[%c0_5, %c0_6], %9 {strides = array<i32>} : memref<128x128xbf16, #tpu.memory_space<vmem>>, vector<128x128xbf16>,
    return
  }
  func.func @transform_0(%arg0: i32, %arg1: i32) -> (i32, i32) {
    %c0_i32 = arith.constant 0 : i32
    return %arg0, %arg1 : i32, i32
  }
  func.func @transform_1(%arg0: i32, %arg1: i32) -> (i32, i32) {
    %c0_i32 = arith.constant 0 : i32
    %c0_i32_0 = arith.constant 0 : i32
    return %c0_i32, %arg1 : i32, i32
  }
  func.func @transform_2(%arg0: i32, %arg1: i32) -> (i32, i32) {
    %c0_i32 = arith.constant 0 : i32
    %c0_i32_0 = arith.constant 0 : i32
    return %c0_i32, %arg1 : i32, i32
  }
  func.func @transform_3(%arg0: i32, %arg1: i32) -> (i32, i32) {
    %c0_i32 = arith.constant 0 : i32
    return %arg0, %arg1 : i32, i32
  }
}

module attributes {stable_mosaic.version = 11 : i64} {
  func.func @_conv_stats_kernel(%arg0: i32, %arg1: i32, %arg2: memref<128x144xbf16, #tpu.memory_space<vmem>>, %arg3: memref<144x128xbf16, #tpu.memory_space<vmem>>, %arg4: memref<128x128xf32, #tpu.memory_space<vmem>>, %arg5: memref<1x1x128xf32, #tpu.memory_space<vmem>>, %arg6: memref<1x1x128xf32, #tpu.memory_space<vmem>>) attributes {dimension_semantics = [#tpu.dimension_semantics<parallel>, #tpu.dimension_semantics<parallel>], iteration_bounds = array<i64: 1, 1>, scalar_prefetch = 0 : i64, scratch_operands = 0 : i64, tpu.core_type = #tpu.core_type<tc>, window_params = [{transform_indices = @transform_0, window_bounds = array<i64: 128, 144>}, {transform_indices = @transform_1, window_bounds = array<i64: 144, 128>}, {transform_indices = @transform_2, window_bounds = array<i64: 128, 128>}, {transform_indices = @transform_3, window_bounds = array<i64: 1, 1, 128>}, {transform_indices = @transform_4, window_bounds = array<i64: 1, 1, 128>}]} {
    %c0 = arith.constant 0 : index
    %c0_0 = arith.constant 0 : index
    %0 = vector.load %arg2[%c0, %c0_0] : memref<128x144xbf16, #tpu.memory_space<vmem>>, vector<128x144xbf16>
    %c0_1 = arith.constant 0 : index
    %c0_2 = arith.constant 0 : index
    %1 = vector.load %arg3[%c0_1, %c0_2] : memref<144x128xbf16, #tpu.memory_space<vmem>>, vector<144x128xbf16>
    %cst = arith.constant dense<0.000000e+00> : vector<128x128xf32>
    %2 = tpu.matmul %0, %1, %cst {dimension_numbers = #tpu.dot_dimension_numbers<[1], [0], [0], [1], [0, 0, 1, 1], [], []>} : vector<128x144xbf16>, vector<144x128xbf16>, vector<128x128xf32> -> vector<128x128xf32>
    %c0_3 = arith.constant 0 : index
    %c0_4 = arith.constant 0 : index
    %3 = vector.load %arg4[%c0_3, %c0_4] : memref<128x128xf32, #tpu.memory_space<vmem>>, vector<128x128xf32>
    tpu.vector_store %arg4[%c0_3, %c0_4], %2 {strides = array<i32>} : memref<128x128xf32, #tpu.memory_space<vmem>>, vector<128x128xf32>,
    %cst_5 = arith.constant dense<0.000000e+00> : vector<128xf32>
    %4 = vector.multi_reduction <add>, %2, %cst_5 [0] : vector<128x128xf32> to vector<128xf32>
    %5 = vector.shape_cast %4 : vector<128xf32> to vector<1x128xf32>
    %6 = vector.shape_cast %5 : vector<1x128xf32> to vector<1x1x128xf32>
    %c0_6 = arith.constant 0 : index
    %c0_7 = arith.constant 0 : index
    %c0_8 = arith.constant 0 : index
    %7 = vector.load %arg5[%c0_6, %c0_7, %c0_8] : memref<1x1x128xf32, #tpu.memory_space<vmem>>, vector<1x1x128xf32>
    tpu.vector_store %arg5[%c0_6, %c0_7, %c0_8], %6 {strides = array<i32>} : memref<1x1x128xf32, #tpu.memory_space<vmem>>, vector<1x1x128xf32>,
    %8 = arith.mulf %2, %2 : vector<128x128xf32>
    %cst_9 = arith.constant dense<0.000000e+00> : vector<128xf32>
    %9 = vector.multi_reduction <add>, %8, %cst_9 [0] : vector<128x128xf32> to vector<128xf32>
    %10 = vector.shape_cast %9 : vector<128xf32> to vector<1x128xf32>
    %11 = vector.shape_cast %10 : vector<1x128xf32> to vector<1x1x128xf32>
    %c0_10 = arith.constant 0 : index
    %c0_11 = arith.constant 0 : index
    %c0_12 = arith.constant 0 : index
    %12 = vector.load %arg6[%c0_10, %c0_11, %c0_12] : memref<1x1x128xf32, #tpu.memory_space<vmem>>, vector<1x1x128xf32>
    tpu.vector_store %arg6[%c0_10, %c0_11, %c0_12], %11 {strides = array<i32>} : memref<1x1x128xf32, #tpu.memory_space<vmem>>, vector<1x1x128xf32>,
    return
  }
  func.func @transform_0(%arg0: i32, %arg1: i32) -> (i32, i32) {
    %c0_i32 = arith.constant 0 : i32
    %c0_i32_0 = arith.constant 0 : i32
    return %arg0, %c0_i32 : i32, i32
  }
  func.func @transform_1(%arg0: i32, %arg1: i32) -> (i32, i32) {
    %c0_i32 = arith.constant 0 : i32
    %c0_i32_0 = arith.constant 0 : i32
    return %c0_i32, %arg1 : i32, i32
  }
  func.func @transform_2(%arg0: i32, %arg1: i32) -> (i32, i32) {
    %c0_i32 = arith.constant 0 : i32
    return %arg0, %arg1 : i32, i32
  }
  func.func @transform_3(%arg0: i32, %arg1: i32) -> (i32, i32, i32) {
    %c0_i32 = arith.constant 0 : i32
    %c0_i32_0 = arith.constant 0 : i32
    return %arg0, %c0_i32, %arg1 : i32, i32, i32
  }
  func.func @transform_4(%arg0: i32, %arg1: i32) -> (i32, i32, i32) {
    %c0_i32 = arith.constant 0 : i32
    %c0_i32_0 = arith.constant 0 : i32
    return %arg0, %c0_i32, %arg1 : i32, i32, i32
  }
}

module attributes {stable_mosaic.version = 11 : i64} {
  func.func @_max4_kernel(%arg0: i32, %arg1: memref<32x16xbf16, #tpu.memory_space<vmem>>, %arg2: memref<32x16xbf16, #tpu.memory_space<vmem>>, %arg3: memref<32x16xbf16, #tpu.memory_space<vmem>>, %arg4: memref<32x16xbf16, #tpu.memory_space<vmem>>, %arg5: memref<32x16xbf16, #tpu.memory_space<vmem>>) attributes {dimension_semantics = [#tpu.dimension_semantics<parallel>], iteration_bounds = array<i64: 1>, scalar_prefetch = 0 : i64, scratch_operands = 0 : i64, tpu.core_type = #tpu.core_type<tc>, window_params = [{transform_indices = @transform_0, window_bounds = array<i64: 32, 16>}, {transform_indices = @transform_1, window_bounds = array<i64: 32, 16>}, {transform_indices = @transform_2, window_bounds = array<i64: 32, 16>}, {transform_indices = @transform_3, window_bounds = array<i64: 32, 16>}, {transform_indices = @transform_4, window_bounds = array<i64: 32, 16>}]} {
    %c0 = arith.constant 0 : index
    %c0_0 = arith.constant 0 : index
    %0 = vector.load %arg1[%c0, %c0_0] : memref<32x16xbf16, #tpu.memory_space<vmem>>, vector<32x16xbf16>
    %c0_1 = arith.constant 0 : index
    %c0_2 = arith.constant 0 : index
    %1 = vector.load %arg2[%c0_1, %c0_2] : memref<32x16xbf16, #tpu.memory_space<vmem>>, vector<32x16xbf16>
    %2 = arith.maximumf %0, %1 : vector<32x16xbf16>
    %c0_3 = arith.constant 0 : index
    %c0_4 = arith.constant 0 : index
    %3 = vector.load %arg3[%c0_3, %c0_4] : memref<32x16xbf16, #tpu.memory_space<vmem>>, vector<32x16xbf16>
    %c0_5 = arith.constant 0 : index
    %c0_6 = arith.constant 0 : index
    %4 = vector.load %arg4[%c0_5, %c0_6] : memref<32x16xbf16, #tpu.memory_space<vmem>>, vector<32x16xbf16>
    %5 = arith.maximumf %3, %4 : vector<32x16xbf16>
    %6 = arith.maximumf %2, %5 : vector<32x16xbf16>
    %c0_7 = arith.constant 0 : index
    %c0_8 = arith.constant 0 : index
    %7 = vector.load %arg5[%c0_7, %c0_8] : memref<32x16xbf16, #tpu.memory_space<vmem>>, vector<32x16xbf16>
    tpu.vector_store %arg5[%c0_7, %c0_8], %6 {strides = array<i32>} : memref<32x16xbf16, #tpu.memory_space<vmem>>, vector<32x16xbf16>,
    return
  }
  func.func @transform_0(%arg0: i32) -> (i32, i32) {
    %c0_i32 = arith.constant 0 : i32
    %c0_i32_0 = arith.constant 0 : i32
    return %arg0, %c0_i32 : i32, i32
  }
  func.func @transform_1(%arg0: i32) -> (i32, i32) {
    %c0_i32 = arith.constant 0 : i32
    %c0_i32_0 = arith.constant 0 : i32
    return %arg0, %c0_i32 : i32, i32
  }
  func.func @transform_2(%arg0: i32) -> (i32, i32) {
    %c0_i32 = arith.constant 0 : i32
    %c0_i32_0 = arith.constant 0 : i32
    return %arg0, %c0_i32 : i32, i32
  }
  func.func @transform_3(%arg0: i32) -> (i32, i32) {
    %c0_i32 = arith.constant 0 : i32
    %c0_i32_0 = arith.constant 0 : i32
    return %arg0, %c0_i32 : i32, i32
  }
  func.func @transform_4(%arg0: i32) -> (i32, i32) {
    %c0_i32 = arith.constant 0 : i32
    %c0_i32_0 = arith.constant 0 : i32
    return %arg0, %c0_i32 : i32, i32
  }
}

module attributes {stable_mosaic.version = 11 : i64} {
  func.func @_bn_relu_kernel(%arg0: i32, %arg1: i32, %arg2: memref<32x128xf32, #tpu.memory_space<vmem>>, %arg3: memref<1x128xf32, #tpu.memory_space<vmem>>, %arg4: memref<1x128xf32, #tpu.memory_space<vmem>>, %arg5: memref<32x128xbf16, #tpu.memory_space<vmem>>) attributes {dimension_semantics = [#tpu.dimension_semantics<parallel>, #tpu.dimension_semantics<parallel>], iteration_bounds = array<i64: 1, 1>, scalar_prefetch = 0 : i64, scratch_operands = 0 : i64, tpu.core_type = #tpu.core_type<tc>, window_params = [{transform_indices = @transform_0, window_bounds = array<i64: 32, 128>}, {transform_indices = @transform_1, window_bounds = array<i64: 1, 128>}, {transform_indices = @transform_2, window_bounds = array<i64: 1, 128>}, {transform_indices = @transform_3, window_bounds = array<i64: 32, 128>}]} {
    %c0 = arith.constant 0 : index
    %c0_0 = arith.constant 0 : index
    %0 = vector.load %arg2[%c0, %c0_0] : memref<32x128xf32, #tpu.memory_space<vmem>>, vector<32x128xf32>
    %c0_1 = arith.constant 0 : index
    %c0_2 = arith.constant 0 : index
    %1 = vector.load %arg3[%c0_1, %c0_2] : memref<1x128xf32, #tpu.memory_space<vmem>>, vector<1x128xf32>
    %2 = vector.broadcast %1 : vector<1x128xf32> to vector<32x128xf32>
    %3 = arith.mulf %0, %2 : vector<32x128xf32>
    %c0_3 = arith.constant 0 : index
    %c0_4 = arith.constant 0 : index
    %4 = vector.load %arg4[%c0_3, %c0_4] : memref<1x128xf32, #tpu.memory_space<vmem>>, vector<1x128xf32>
    %5 = vector.broadcast %4 : vector<1x128xf32> to vector<32x128xf32>
    %6 = arith.addf %3, %5 : vector<32x128xf32>
    %cst = arith.constant 0.000000e+00 : f32
    %7 = vector.broadcast %cst : f32 to vector<32x128xf32>
    %8 = arith.maximumf %6, %7 : vector<32x128xf32>
    %9 = arith.truncf %8 : vector<32x128xf32> to vector<32x128xbf16>
    %c0_5 = arith.constant 0 : index
    %c0_6 = arith.constant 0 : index
    %10 = vector.load %arg5[%c0_5, %c0_6] : memref<32x128xbf16, #tpu.memory_space<vmem>>, vector<32x128xbf16>
    tpu.vector_store %arg5[%c0_5, %c0_6], %9 {strides = array<i32>} : memref<32x128xbf16, #tpu.memory_space<vmem>>, vector<32x128xbf16>,
    return
  }
  func.func @transform_0(%arg0: i32, %arg1: i32) -> (i32, i32) {
    %c0_i32 = arith.constant 0 : i32
    return %arg0, %arg1 : i32, i32
  }
  func.func @transform_1(%arg0: i32, %arg1: i32) -> (i32, i32) {
    %c0_i32 = arith.constant 0 : i32
    %c0_i32_0 = arith.constant 0 : i32
    return %c0_i32, %arg1 : i32, i32
  }
  func.func @transform_2(%arg0: i32, %arg1: i32) -> (i32, i32) {
    %c0_i32 = arith.constant 0 : i32
    %c0_i32_0 = arith.constant 0 : i32
    return %c0_i32, %arg1 : i32, i32
  }
  func.func @transform_3(%arg0: i32, %arg1: i32) -> (i32, i32) {
    %c0_i32 = arith.constant 0 : i32
    return %arg0, %arg1 : i32, i32
  }
}

module attributes {stable_mosaic.version = 11 : i64} {
  func.func @_conv_stats_kernel(%arg0: i32, %arg1: i32, %arg2: memref<32x144xbf16, #tpu.memory_space<vmem>>, %arg3: memref<144x128xbf16, #tpu.memory_space<vmem>>, %arg4: memref<32x128xf32, #tpu.memory_space<vmem>>, %arg5: memref<1x1x128xf32, #tpu.memory_space<vmem>>, %arg6: memref<1x1x128xf32, #tpu.memory_space<vmem>>) attributes {dimension_semantics = [#tpu.dimension_semantics<parallel>, #tpu.dimension_semantics<parallel>], iteration_bounds = array<i64: 1, 1>, scalar_prefetch = 0 : i64, scratch_operands = 0 : i64, tpu.core_type = #tpu.core_type<tc>, window_params = [{transform_indices = @transform_0, window_bounds = array<i64: 32, 144>}, {transform_indices = @transform_1, window_bounds = array<i64: 144, 128>}, {transform_indices = @transform_2, window_bounds = array<i64: 32, 128>}, {transform_indices = @transform_3, window_bounds = array<i64: 1, 1, 128>}, {transform_indices = @transform_4, window_bounds = array<i64: 1, 1, 128>}]} {
    %c0 = arith.constant 0 : index
    %c0_0 = arith.constant 0 : index
    %0 = vector.load %arg2[%c0, %c0_0] : memref<32x144xbf16, #tpu.memory_space<vmem>>, vector<32x144xbf16>
    %c0_1 = arith.constant 0 : index
    %c0_2 = arith.constant 0 : index
    %1 = vector.load %arg3[%c0_1, %c0_2] : memref<144x128xbf16, #tpu.memory_space<vmem>>, vector<144x128xbf16>
    %cst = arith.constant dense<0.000000e+00> : vector<32x128xf32>
    %2 = tpu.matmul %0, %1, %cst {dimension_numbers = #tpu.dot_dimension_numbers<[1], [0], [0], [1], [0, 0, 1, 1], [], []>} : vector<32x144xbf16>, vector<144x128xbf16>, vector<32x128xf32> -> vector<32x128xf32>
    %c0_3 = arith.constant 0 : index
    %c0_4 = arith.constant 0 : index
    %3 = vector.load %arg4[%c0_3, %c0_4] : memref<32x128xf32, #tpu.memory_space<vmem>>, vector<32x128xf32>
    tpu.vector_store %arg4[%c0_3, %c0_4], %2 {strides = array<i32>} : memref<32x128xf32, #tpu.memory_space<vmem>>, vector<32x128xf32>,
    %cst_5 = arith.constant dense<0.000000e+00> : vector<128xf32>
    %4 = vector.multi_reduction <add>, %2, %cst_5 [0] : vector<32x128xf32> to vector<128xf32>
    %5 = vector.shape_cast %4 : vector<128xf32> to vector<1x128xf32>
    %6 = vector.shape_cast %5 : vector<1x128xf32> to vector<1x1x128xf32>
    %c0_6 = arith.constant 0 : index
    %c0_7 = arith.constant 0 : index
    %c0_8 = arith.constant 0 : index
    %7 = vector.load %arg5[%c0_6, %c0_7, %c0_8] : memref<1x1x128xf32, #tpu.memory_space<vmem>>, vector<1x1x128xf32>
    tpu.vector_store %arg5[%c0_6, %c0_7, %c0_8], %6 {strides = array<i32>} : memref<1x1x128xf32, #tpu.memory_space<vmem>>, vector<1x1x128xf32>,
    %8 = arith.mulf %2, %2 : vector<32x128xf32>
    %cst_9 = arith.constant dense<0.000000e+00> : vector<128xf32>
    %9 = vector.multi_reduction <add>, %8, %cst_9 [0] : vector<32x128xf32> to vector<128xf32>
    %10 = vector.shape_cast %9 : vector<128xf32> to vector<1x128xf32>
    %11 = vector.shape_cast %10 : vector<1x128xf32> to vector<1x1x128xf32>
    %c0_10 = arith.constant 0 : index
    %c0_11 = arith.constant 0 : index
    %c0_12 = arith.constant 0 : index
    %12 = vector.load %arg6[%c0_10, %c0_11, %c0_12] : memref<1x1x128xf32, #tpu.memory_space<vmem>>, vector<1x1x128xf32>
    tpu.vector_store %arg6[%c0_10, %c0_11, %c0_12], %11 {strides = array<i32>} : memref<1x1x128xf32, #tpu.memory_space<vmem>>, vector<1x1x128xf32>,
    return
  }
  func.func @transform_0(%arg0: i32, %arg1: i32) -> (i32, i32) {
    %c0_i32 = arith.constant 0 : i32
    %c0_i32_0 = arith.constant 0 : i32
    return %arg0, %c0_i32 : i32, i32
  }
  func.func @transform_1(%arg0: i32, %arg1: i32) -> (i32, i32) {
    %c0_i32 = arith.constant 0 : i32
    %c0_i32_0 = arith.constant 0 : i32
    return %c0_i32, %arg1 : i32, i32
  }
  func.func @transform_2(%arg0: i32, %arg1: i32) -> (i32, i32) {
    %c0_i32 = arith.constant 0 : i32
    return %arg0, %arg1 : i32, i32
  }
  func.func @transform_3(%arg0: i32, %arg1: i32) -> (i32, i32, i32) {
    %c0_i32 = arith.constant 0 : i32
    %c0_i32_0 = arith.constant 0 : i32
    return %arg0, %c0_i32, %arg1 : i32, i32, i32
  }
  func.func @transform_4(%arg0: i32, %arg1: i32) -> (i32, i32, i32) {
    %c0_i32 = arith.constant 0 : i32
    %c0_i32_0 = arith.constant 0 : i32
    return %arg0, %c0_i32, %arg1 : i32, i32, i32
  }
}

module attributes {stable_mosaic.version = 11 : i64} {
  func.func @_conv_stats_kernel(%arg0: i32, %arg1: i32, %arg2: memref<32x288xbf16, #tpu.memory_space<vmem>>, %arg3: memref<288x128xbf16, #tpu.memory_space<vmem>>, %arg4: memref<32x128xf32, #tpu.memory_space<vmem>>, %arg5: memref<1x1x128xf32, #tpu.memory_space<vmem>>, %arg6: memref<1x1x128xf32, #tpu.memory_space<vmem>>) attributes {dimension_semantics = [#tpu.dimension_semantics<parallel>, #tpu.dimension_semantics<parallel>], iteration_bounds = array<i64: 1, 1>, scalar_prefetch = 0 : i64, scratch_operands = 0 : i64, tpu.core_type = #tpu.core_type<tc>, window_params = [{transform_indices = @transform_0, window_bounds = array<i64: 32, 288>}, {transform_indices = @transform_1, window_bounds = array<i64: 288, 128>}, {transform_indices = @transform_2, window_bounds = array<i64: 32, 128>}, {transform_indices = @transform_3, window_bounds = array<i64: 1, 1, 128>}, {transform_indices = @transform_4, window_bounds = array<i64: 1, 1, 128>}]} {
    %c0 = arith.constant 0 : index
    %c0_0 = arith.constant 0 : index
    %0 = vector.load %arg2[%c0, %c0_0] : memref<32x288xbf16, #tpu.memory_space<vmem>>, vector<32x288xbf16>
    %c0_1 = arith.constant 0 : index
    %c0_2 = arith.constant 0 : index
    %1 = vector.load %arg3[%c0_1, %c0_2] : memref<288x128xbf16, #tpu.memory_space<vmem>>, vector<288x128xbf16>
    %cst = arith.constant dense<0.000000e+00> : vector<32x128xf32>
    %2 = tpu.matmul %0, %1, %cst {dimension_numbers = #tpu.dot_dimension_numbers<[1], [0], [0], [1], [0, 0, 1, 1], [], []>} : vector<32x288xbf16>, vector<288x128xbf16>, vector<32x128xf32> -> vector<32x128xf32>
    %c0_3 = arith.constant 0 : index
    %c0_4 = arith.constant 0 : index
    %3 = vector.load %arg4[%c0_3, %c0_4] : memref<32x128xf32, #tpu.memory_space<vmem>>, vector<32x128xf32>
    tpu.vector_store %arg4[%c0_3, %c0_4], %2 {strides = array<i32>} : memref<32x128xf32, #tpu.memory_space<vmem>>, vector<32x128xf32>,
    %cst_5 = arith.constant dense<0.000000e+00> : vector<128xf32>
    %4 = vector.multi_reduction <add>, %2, %cst_5 [0] : vector<32x128xf32> to vector<128xf32>
    %5 = vector.shape_cast %4 : vector<128xf32> to vector<1x128xf32>
    %6 = vector.shape_cast %5 : vector<1x128xf32> to vector<1x1x128xf32>
    %c0_6 = arith.constant 0 : index
    %c0_7 = arith.constant 0 : index
    %c0_8 = arith.constant 0 : index
    %7 = vector.load %arg5[%c0_6, %c0_7, %c0_8] : memref<1x1x128xf32, #tpu.memory_space<vmem>>, vector<1x1x128xf32>
    tpu.vector_store %arg5[%c0_6, %c0_7, %c0_8], %6 {strides = array<i32>} : memref<1x1x128xf32, #tpu.memory_space<vmem>>, vector<1x1x128xf32>,
    %8 = arith.mulf %2, %2 : vector<32x128xf32>
    %cst_9 = arith.constant dense<0.000000e+00> : vector<128xf32>
    %9 = vector.multi_reduction <add>, %8, %cst_9 [0] : vector<32x128xf32> to vector<128xf32>
    %10 = vector.shape_cast %9 : vector<128xf32> to vector<1x128xf32>
    %11 = vector.shape_cast %10 : vector<1x128xf32> to vector<1x1x128xf32>
    %c0_10 = arith.constant 0 : index
    %c0_11 = arith.constant 0 : index
    %c0_12 = arith.constant 0 : index
    %12 = vector.load %arg6[%c0_10, %c0_11, %c0_12] : memref<1x1x128xf32, #tpu.memory_space<vmem>>, vector<1x1x128xf32>
    tpu.vector_store %arg6[%c0_10, %c0_11, %c0_12], %11 {strides = array<i32>} : memref<1x1x128xf32, #tpu.memory_space<vmem>>, vector<1x1x128xf32>,
    return
  }
  func.func @transform_0(%arg0: i32, %arg1: i32) -> (i32, i32) {
    %c0_i32 = arith.constant 0 : i32
    %c0_i32_0 = arith.constant 0 : i32
    return %arg0, %c0_i32 : i32, i32
  }
  func.func @transform_1(%arg0: i32, %arg1: i32) -> (i32, i32) {
    %c0_i32 = arith.constant 0 : i32
    %c0_i32_0 = arith.constant 0 : i32
    return %c0_i32, %arg1 : i32, i32
  }
  func.func @transform_2(%arg0: i32, %arg1: i32) -> (i32, i32) {
    %c0_i32 = arith.constant 0 : i32
    return %arg0, %arg1 : i32, i32
  }
  func.func @transform_3(%arg0: i32, %arg1: i32) -> (i32, i32, i32) {
    %c0_i32 = arith.constant 0 : i32
    %c0_i32_0 = arith.constant 0 : i32
    return %arg0, %c0_i32, %arg1 : i32, i32, i32
  }
  func.func @transform_4(%arg0: i32, %arg1: i32) -> (i32, i32, i32) {
    %c0_i32 = arith.constant 0 : i32
    %c0_i32_0 = arith.constant 0 : i32
    return %arg0, %c0_i32, %arg1 : i32, i32, i32
  }
}

module attributes {stable_mosaic.version = 11 : i64} {
  func.func @_conv_bias_kernel(%arg0: i32, %arg1: i32, %arg2: memref<32x288xbf16, #tpu.memory_space<vmem>>, %arg3: memref<288x128xbf16, #tpu.memory_space<vmem>>, %arg4: memref<1x128xf32, #tpu.memory_space<vmem>>, %arg5: memref<32x128xf32, #tpu.memory_space<vmem>>) attributes {dimension_semantics = [#tpu.dimension_semantics<parallel>, #tpu.dimension_semantics<parallel>], iteration_bounds = array<i64: 1, 1>, scalar_prefetch = 0 : i64, scratch_operands = 0 : i64, tpu.core_type = #tpu.core_type<tc>, window_params = [{transform_indices = @transform_0, window_bounds = array<i64: 32, 288>}, {transform_indices = @transform_1, window_bounds = array<i64: 288, 128>}, {transform_indices = @transform_2, window_bounds = array<i64: 1, 128>}, {transform_indices = @transform_3, window_bounds = array<i64: 32, 128>}]} {
    %c0 = arith.constant 0 : index
    %c0_0 = arith.constant 0 : index
    %0 = vector.load %arg2[%c0, %c0_0] : memref<32x288xbf16, #tpu.memory_space<vmem>>, vector<32x288xbf16>
    %c0_1 = arith.constant 0 : index
    %c0_2 = arith.constant 0 : index
    %1 = vector.load %arg3[%c0_1, %c0_2] : memref<288x128xbf16, #tpu.memory_space<vmem>>, vector<288x128xbf16>
    %cst = arith.constant dense<0.000000e+00> : vector<32x128xf32>
    %2 = tpu.matmul %0, %1, %cst {dimension_numbers = #tpu.dot_dimension_numbers<[1], [0], [0], [1], [0, 0, 1, 1], [], []>} : vector<32x288xbf16>, vector<288x128xbf16>, vector<32x128xf32> -> vector<32x128xf32>
    %c0_3 = arith.constant 0 : index
    %c0_4 = arith.constant 0 : index
    %3 = vector.load %arg4[%c0_3, %c0_4] : memref<1x128xf32, #tpu.memory_space<vmem>>, vector<1x128xf32>
    %4 = vector.broadcast %3 : vector<1x128xf32> to vector<32x128xf32>
    %5 = arith.addf %2, %4 : vector<32x128xf32>
    %c0_5 = arith.constant 0 : index
    %c0_6 = arith.constant 0 : index
    %6 = vector.load %arg5[%c0_5, %c0_6] : memref<32x128xf32, #tpu.memory_space<vmem>>, vector<32x128xf32>
    tpu.vector_store %arg5[%c0_5, %c0_6], %5 {strides = array<i32>} : memref<32x128xf32, #tpu.memory_space<vmem>>, vector<32x128xf32>,
    return
  }
  func.func @transform_0(%arg0: i32, %arg1: i32) -> (i32, i32) {
    %c0_i32 = arith.constant 0 : i32
    %c0_i32_0 = arith.constant 0 : i32
    return %arg0, %c0_i32 : i32, i32
  }
  func.func @transform_1(%arg0: i32, %arg1: i32) -> (i32, i32) {
    %c0_i32 = arith.constant 0 : i32
    %c0_i32_0 = arith.constant 0 : i32
    return %c0_i32, %arg1 : i32, i32
  }
  func.func @transform_2(%arg0: i32, %arg1: i32) -> (i32, i32) {
    %c0_i32 = arith.constant 0 : i32
    %c0_i32_0 = arith.constant 0 : i32
    return %c0_i32, %arg1 : i32, i32
  }
  func.func @transform_3(%arg0: i32, %arg1: i32) -> (i32, i32) {
    %c0_i32 = arith.constant 0 : i32
    return %arg0, %arg1 : i32, i32
  }
}

module attributes {stable_mosaic.version = 11 : i64} {
  func.func @_conv_stats_kernel(%arg0: i32, %arg1: i32, %arg2: memref<128x288xbf16, #tpu.memory_space<vmem>>, %arg3: memref<288x128xbf16, #tpu.memory_space<vmem>>, %arg4: memref<128x128xf32, #tpu.memory_space<vmem>>, %arg5: memref<1x1x128xf32, #tpu.memory_space<vmem>>, %arg6: memref<1x1x128xf32, #tpu.memory_space<vmem>>) attributes {dimension_semantics = [#tpu.dimension_semantics<parallel>, #tpu.dimension_semantics<parallel>], iteration_bounds = array<i64: 1, 1>, scalar_prefetch = 0 : i64, scratch_operands = 0 : i64, tpu.core_type = #tpu.core_type<tc>, window_params = [{transform_indices = @transform_0, window_bounds = array<i64: 128, 288>}, {transform_indices = @transform_1, window_bounds = array<i64: 288, 128>}, {transform_indices = @transform_2, window_bounds = array<i64: 128, 128>}, {transform_indices = @transform_3, window_bounds = array<i64: 1, 1, 128>}, {transform_indices = @transform_4, window_bounds = array<i64: 1, 1, 128>}]} {
    %c0 = arith.constant 0 : index
    %c0_0 = arith.constant 0 : index
    %0 = vector.load %arg2[%c0, %c0_0] : memref<128x288xbf16, #tpu.memory_space<vmem>>, vector<128x288xbf16>
    %c0_1 = arith.constant 0 : index
    %c0_2 = arith.constant 0 : index
    %1 = vector.load %arg3[%c0_1, %c0_2] : memref<288x128xbf16, #tpu.memory_space<vmem>>, vector<288x128xbf16>
    %cst = arith.constant dense<0.000000e+00> : vector<128x128xf32>
    %2 = tpu.matmul %0, %1, %cst {dimension_numbers = #tpu.dot_dimension_numbers<[1], [0], [0], [1], [0, 0, 1, 1], [], []>} : vector<128x288xbf16>, vector<288x128xbf16>, vector<128x128xf32> -> vector<128x128xf32>
    %c0_3 = arith.constant 0 : index
    %c0_4 = arith.constant 0 : index
    %3 = vector.load %arg4[%c0_3, %c0_4] : memref<128x128xf32, #tpu.memory_space<vmem>>, vector<128x128xf32>
    tpu.vector_store %arg4[%c0_3, %c0_4], %2 {strides = array<i32>} : memref<128x128xf32, #tpu.memory_space<vmem>>, vector<128x128xf32>,
    %cst_5 = arith.constant dense<0.000000e+00> : vector<128xf32>
    %4 = vector.multi_reduction <add>, %2, %cst_5 [0] : vector<128x128xf32> to vector<128xf32>
    %5 = vector.shape_cast %4 : vector<128xf32> to vector<1x128xf32>
    %6 = vector.shape_cast %5 : vector<1x128xf32> to vector<1x1x128xf32>
    %c0_6 = arith.constant 0 : index
    %c0_7 = arith.constant 0 : index
    %c0_8 = arith.constant 0 : index
    %7 = vector.load %arg5[%c0_6, %c0_7, %c0_8] : memref<1x1x128xf32, #tpu.memory_space<vmem>>, vector<1x1x128xf32>
    tpu.vector_store %arg5[%c0_6, %c0_7, %c0_8], %6 {strides = array<i32>} : memref<1x1x128xf32, #tpu.memory_space<vmem>>, vector<1x1x128xf32>,
    %8 = arith.mulf %2, %2 : vector<128x128xf32>
    %cst_9 = arith.constant dense<0.000000e+00> : vector<128xf32>
    %9 = vector.multi_reduction <add>, %8, %cst_9 [0] : vector<128x128xf32> to vector<128xf32>
    %10 = vector.shape_cast %9 : vector<128xf32> to vector<1x128xf32>
    %11 = vector.shape_cast %10 : vector<1x128xf32> to vector<1x1x128xf32>
    %c0_10 = arith.constant 0 : index
    %c0_11 = arith.constant 0 : index
    %c0_12 = arith.constant 0 : index
    %12 = vector.load %arg6[%c0_10, %c0_11, %c0_12] : memref<1x1x128xf32, #tpu.memory_space<vmem>>, vector<1x1x128xf32>
    tpu.vector_store %arg6[%c0_10, %c0_11, %c0_12], %11 {strides = array<i32>} : memref<1x1x128xf32, #tpu.memory_space<vmem>>, vector<1x1x128xf32>,
    return
  }
  func.func @transform_0(%arg0: i32, %arg1: i32) -> (i32, i32) {
    %c0_i32 = arith.constant 0 : i32
    %c0_i32_0 = arith.constant 0 : i32
    return %arg0, %c0_i32 : i32, i32
  }
  func.func @transform_1(%arg0: i32, %arg1: i32) -> (i32, i32) {
    %c0_i32 = arith.constant 0 : i32
    %c0_i32_0 = arith.constant 0 : i32
    return %c0_i32, %arg1 : i32, i32
  }
  func.func @transform_2(%arg0: i32, %arg1: i32) -> (i32, i32) {
    %c0_i32 = arith.constant 0 : i32
    return %arg0, %arg1 : i32, i32
  }
  func.func @transform_3(%arg0: i32, %arg1: i32) -> (i32, i32, i32) {
    %c0_i32 = arith.constant 0 : i32
    %c0_i32_0 = arith.constant 0 : i32
    return %arg0, %c0_i32, %arg1 : i32, i32, i32
  }
  func.func @transform_4(%arg0: i32, %arg1: i32) -> (i32, i32, i32) {
    %c0_i32 = arith.constant 0 : i32
    %c0_i32_0 = arith.constant 0 : i32
    return %arg0, %c0_i32, %arg1 : i32, i32, i32
  }
}

module attributes {stable_mosaic.version = 11 : i64} {
  func.func @_conv_bias_kernel(%arg0: i32, %arg1: i32, %arg2: memref<128x144xbf16, #tpu.memory_space<vmem>>, %arg3: memref<144x128xbf16, #tpu.memory_space<vmem>>, %arg4: memref<1x128xf32, #tpu.memory_space<vmem>>, %arg5: memref<128x128xf32, #tpu.memory_space<vmem>>) attributes {dimension_semantics = [#tpu.dimension_semantics<parallel>, #tpu.dimension_semantics<parallel>], iteration_bounds = array<i64: 1, 1>, scalar_prefetch = 0 : i64, scratch_operands = 0 : i64, tpu.core_type = #tpu.core_type<tc>, window_params = [{transform_indices = @transform_0, window_bounds = array<i64: 128, 144>}, {transform_indices = @transform_1, window_bounds = array<i64: 144, 128>}, {transform_indices = @transform_2, window_bounds = array<i64: 1, 128>}, {transform_indices = @transform_3, window_bounds = array<i64: 128, 128>}]} {
    %c0 = arith.constant 0 : index
    %c0_0 = arith.constant 0 : index
    %0 = vector.load %arg2[%c0, %c0_0] : memref<128x144xbf16, #tpu.memory_space<vmem>>, vector<128x144xbf16>
    %c0_1 = arith.constant 0 : index
    %c0_2 = arith.constant 0 : index
    %1 = vector.load %arg3[%c0_1, %c0_2] : memref<144x128xbf16, #tpu.memory_space<vmem>>, vector<144x128xbf16>
    %cst = arith.constant dense<0.000000e+00> : vector<128x128xf32>
    %2 = tpu.matmul %0, %1, %cst {dimension_numbers = #tpu.dot_dimension_numbers<[1], [0], [0], [1], [0, 0, 1, 1], [], []>} : vector<128x144xbf16>, vector<144x128xbf16>, vector<128x128xf32> -> vector<128x128xf32>
    %c0_3 = arith.constant 0 : index
    %c0_4 = arith.constant 0 : index
    %3 = vector.load %arg4[%c0_3, %c0_4] : memref<1x128xf32, #tpu.memory_space<vmem>>, vector<1x128xf32>
    %4 = vector.broadcast %3 : vector<1x128xf32> to vector<128x128xf32>
    %5 = arith.addf %2, %4 : vector<128x128xf32>
    %c0_5 = arith.constant 0 : index
    %c0_6 = arith.constant 0 : index
    %6 = vector.load %arg5[%c0_5, %c0_6] : memref<128x128xf32, #tpu.memory_space<vmem>>, vector<128x128xf32>
    tpu.vector_store %arg5[%c0_5, %c0_6], %5 {strides = array<i32>} : memref<128x128xf32, #tpu.memory_space<vmem>>, vector<128x128xf32>,
    return
  }
  func.func @transform_0(%arg0: i32, %arg1: i32) -> (i32, i32) {
    %c0_i32 = arith.constant 0 : i32
    %c0_i32_0 = arith.constant 0 : i32
    return %arg0, %c0_i32 : i32, i32
  }
  func.func @transform_1(%arg0: i32, %arg1: i32) -> (i32, i32) {
    %c0_i32 = arith.constant 0 : i32
    %c0_i32_0 = arith.constant 0 : i32
    return %c0_i32, %arg1 : i32, i32
  }
  func.func @transform_2(%arg0: i32, %arg1: i32) -> (i32, i32) {
    %c0_i32 = arith.constant 0 : i32
    %c0_i32_0 = arith.constant 0 : i32
    return %c0_i32, %arg1 : i32, i32
  }
  func.func @transform_3(%arg0: i32, %arg1: i32) -> (i32, i32) {
    %c0_i32 = arith.constant 0 : i32
    return %arg0, %arg1 : i32, i32
  }
}

module attributes {stable_mosaic.version = 11 : i64} {
  func.func @_conv_stats_kernel(%arg0: i32, %arg1: i32, %arg2: memref<256x144xbf16, #tpu.memory_space<vmem>>, %arg3: memref<144x128xbf16, #tpu.memory_space<vmem>>, %arg4: memref<256x128xf32, #tpu.memory_space<vmem>>, %arg5: memref<1x1x128xf32, #tpu.memory_space<vmem>>, %arg6: memref<1x1x128xf32, #tpu.memory_space<vmem>>) attributes {dimension_semantics = [#tpu.dimension_semantics<parallel>, #tpu.dimension_semantics<parallel>], iteration_bounds = array<i64: 2, 1>, scalar_prefetch = 0 : i64, scratch_operands = 0 : i64, tpu.core_type = #tpu.core_type<tc>, window_params = [{transform_indices = @transform_0, window_bounds = array<i64: 256, 144>}, {transform_indices = @transform_1, window_bounds = array<i64: 144, 128>}, {transform_indices = @transform_2, window_bounds = array<i64: 256, 128>}, {transform_indices = @transform_3, window_bounds = array<i64: 1, 1, 128>}, {transform_indices = @transform_4, window_bounds = array<i64: 1, 1, 128>}]} {
    %c0 = arith.constant 0 : index
    %c0_0 = arith.constant 0 : index
    %0 = vector.load %arg2[%c0, %c0_0] : memref<256x144xbf16, #tpu.memory_space<vmem>>, vector<256x144xbf16>
    %c0_1 = arith.constant 0 : index
    %c0_2 = arith.constant 0 : index
    %1 = vector.load %arg3[%c0_1, %c0_2] : memref<144x128xbf16, #tpu.memory_space<vmem>>, vector<144x128xbf16>
    %cst = arith.constant dense<0.000000e+00> : vector<256x128xf32>
    %2 = tpu.matmul %0, %1, %cst {dimension_numbers = #tpu.dot_dimension_numbers<[1], [0], [0], [1], [0, 0, 1, 1], [], []>} : vector<256x144xbf16>, vector<144x128xbf16>, vector<256x128xf32> -> vector<256x128xf32>
    %c0_3 = arith.constant 0 : index
    %c0_4 = arith.constant 0 : index
    %3 = vector.load %arg4[%c0_3, %c0_4] : memref<256x128xf32, #tpu.memory_space<vmem>>, vector<256x128xf32>
    tpu.vector_store %arg4[%c0_3, %c0_4], %2 {strides = array<i32>} : memref<256x128xf32, #tpu.memory_space<vmem>>, vector<256x128xf32>,
    %cst_5 = arith.constant dense<0.000000e+00> : vector<128xf32>
    %4 = vector.multi_reduction <add>, %2, %cst_5 [0] : vector<256x128xf32> to vector<128xf32>
    %5 = vector.shape_cast %4 : vector<128xf32> to vector<1x128xf32>
    %6 = vector.shape_cast %5 : vector<1x128xf32> to vector<1x1x128xf32>
    %c0_6 = arith.constant 0 : index
    %c0_7 = arith.constant 0 : index
    %c0_8 = arith.constant 0 : index
    %7 = vector.load %arg5[%c0_6, %c0_7, %c0_8] : memref<1x1x128xf32, #tpu.memory_space<vmem>>, vector<1x1x128xf32>
    tpu.vector_store %arg5[%c0_6, %c0_7, %c0_8], %6 {strides = array<i32>} : memref<1x1x128xf32, #tpu.memory_space<vmem>>, vector<1x1x128xf32>,
    %8 = arith.mulf %2, %2 : vector<256x128xf32>
    %cst_9 = arith.constant dense<0.000000e+00> : vector<128xf32>
    %9 = vector.multi_reduction <add>, %8, %cst_9 [0] : vector<256x128xf32> to vector<128xf32>
    %10 = vector.shape_cast %9 : vector<128xf32> to vector<1x128xf32>
    %11 = vector.shape_cast %10 : vector<1x128xf32> to vector<1x1x128xf32>
    %c0_10 = arith.constant 0 : index
    %c0_11 = arith.constant 0 : index
    %c0_12 = arith.constant 0 : index
    %12 = vector.load %arg6[%c0_10, %c0_11, %c0_12] : memref<1x1x128xf32, #tpu.memory_space<vmem>>, vector<1x1x128xf32>
    tpu.vector_store %arg6[%c0_10, %c0_11, %c0_12], %11 {strides = array<i32>} : memref<1x1x128xf32, #tpu.memory_space<vmem>>, vector<1x1x128xf32>,
    return
  }
  func.func @transform_0(%arg0: i32, %arg1: i32) -> (i32, i32) {
    %c0_i32 = arith.constant 0 : i32
    %c0_i32_0 = arith.constant 0 : i32
    return %arg0, %c0_i32 : i32, i32
  }
  func.func @transform_1(%arg0: i32, %arg1: i32) -> (i32, i32) {
    %c0_i32 = arith.constant 0 : i32
    %c0_i32_0 = arith.constant 0 : i32
    return %c0_i32, %arg1 : i32, i32
  }
  func.func @transform_2(%arg0: i32, %arg1: i32) -> (i32, i32) {
    %c0_i32 = arith.constant 0 : i32
    return %arg0, %arg1 : i32, i32
  }
  func.func @transform_3(%arg0: i32, %arg1: i32) -> (i32, i32, i32) {
    %c0_i32 = arith.constant 0 : i32
    %c0_i32_0 = arith.constant 0 : i32
    return %arg0, %c0_i32, %arg1 : i32, i32, i32
  }
  func.func @transform_4(%arg0: i32, %arg1: i32) -> (i32, i32, i32) {
    %c0_i32 = arith.constant 0 : i32
    %c0_i32_0 = arith.constant 0 : i32
    return %arg0, %c0_i32, %arg1 : i32, i32, i32
  }
}

module attributes {stable_mosaic.version = 11 : i64} {
  func.func @_conv_bias_kernel(%arg0: i32, %arg1: i32, %arg2: memref<256x16xbf16, #tpu.memory_space<vmem>>, %arg3: memref<16x128xbf16, #tpu.memory_space<vmem>>, %arg4: memref<1x128xf32, #tpu.memory_space<vmem>>, %arg5: memref<256x128xf32, #tpu.memory_space<vmem>>) attributes {dimension_semantics = [#tpu.dimension_semantics<parallel>, #tpu.dimension_semantics<parallel>], iteration_bounds = array<i64: 2, 1>, scalar_prefetch = 0 : i64, scratch_operands = 0 : i64, tpu.core_type = #tpu.core_type<tc>, window_params = [{transform_indices = @transform_0, window_bounds = array<i64: 256, 16>}, {transform_indices = @transform_1, window_bounds = array<i64: 16, 128>}, {transform_indices = @transform_2, window_bounds = array<i64: 1, 128>}, {transform_indices = @transform_3, window_bounds = array<i64: 256, 128>}]} {
    %c0 = arith.constant 0 : index
    %c0_0 = arith.constant 0 : index
    %0 = vector.load %arg2[%c0, %c0_0] : memref<256x16xbf16, #tpu.memory_space<vmem>>, vector<256x16xbf16>
    %c0_1 = arith.constant 0 : index
    %c0_2 = arith.constant 0 : index
    %1 = vector.load %arg3[%c0_1, %c0_2] : memref<16x128xbf16, #tpu.memory_space<vmem>>, vector<16x128xbf16>
    %cst = arith.constant dense<0.000000e+00> : vector<256x128xf32>
    %2 = tpu.matmul %0, %1, %cst {dimension_numbers = #tpu.dot_dimension_numbers<[1], [0], [0], [1], [0, 0, 1, 1], [], []>} : vector<256x16xbf16>, vector<16x128xbf16>, vector<256x128xf32> -> vector<256x128xf32>
    %c0_3 = arith.constant 0 : index
    %c0_4 = arith.constant 0 : index
    %3 = vector.load %arg4[%c0_3, %c0_4] : memref<1x128xf32, #tpu.memory_space<vmem>>, vector<1x128xf32>
    %4 = vector.broadcast %3 : vector<1x128xf32> to vector<256x128xf32>
    %5 = arith.addf %2, %4 : vector<256x128xf32>
    %c0_5 = arith.constant 0 : index
    %c0_6 = arith.constant 0 : index
    %6 = vector.load %arg5[%c0_5, %c0_6] : memref<256x128xf32, #tpu.memory_space<vmem>>, vector<256x128xf32>
    tpu.vector_store %arg5[%c0_5, %c0_6], %5 {strides = array<i32>} : memref<256x128xf32, #tpu.memory_space<vmem>>, vector<256x128xf32>,
    return
  }
  func.func @transform_0(%arg0: i32, %arg1: i32) -> (i32, i32) {
    %c0_i32 = arith.constant 0 : i32
    %c0_i32_0 = arith.constant 0 : i32
    return %arg0, %c0_i32 : i32, i32
  }
  func.func @transform_1(%arg0: i32, %arg1: i32) -> (i32, i32) {
    %c0_i32 = arith.constant 0 : i32
    %c0_i32_0 = arith.constant 0 : i32
    return %c0_i32, %arg1 : i32, i32
  }
  func.func @transform_2(%arg0: i32, %arg1: i32) -> (i32, i32) {
    %c0_i32 = arith.constant 0 : i32
    %c0_i32_0 = arith.constant 0 : i32
    return %c0_i32, %arg1 : i32, i32
  }
  func.func @transform_3(%arg0: i32, %arg1: i32) -> (i32, i32) {
    %c0_i32 = arith.constant 0 : i32
    return %arg0, %arg1 : i32, i32
  }
}

</mosaic_0001>

<bundles_post_ra>
// kernel: unet_forward.26
= control target key start
LH: loop header
LB: loop body
LE: loop exit
PB: predicated region body
PF: predicated region fallthrough
CT: control target
= control target key end

     0   :  { %s879_s12 = smov 0   ;;  %s881_s13 = smov 0   ;;  %s1042_s0 = inlined_call_operand.vmem [shape: f32[512,128], index: 0, kind: input, shape index: {}]   ;;  %s1043_s1 = inlined_call_operand.vmem [shape: f32[1,128], index: 1, kind: input, shape index: {}]   ;;  %s1044_s2 = inlined_call_operand.vmem [shape: f32[1,128], index: 2, kind: input, shape index: {}]   ;;  %s1045_s3 = inlined_call_operand.vmem [shape: bf16[512,128], index: 3, kind: output, shape index: {}]  }
   0x1   :  { %s883_s14 = smov 0  }
   0x2 LB: > { %s25_s15 = sadd.s32 1, %s853_s13  ;;  %p643_p0 = scmp.ge.s32.totalorder %s857_s14, 1  ;;  %s857_s14 = sphi %s883_s14, %s13_s14   ;;  %s853_s13 = sphi %s881_s13, %s1047_s13   ;;  %s849_s12 = sphi %s879_s12, %s1046_s12  }
   0x3   : > { %p27_p1 = scmp.ge.s32.totalorder %s25_s15, 2  ;;  %p173_p2 = scmp.lt.s32.totalorder %s857_s14, 3 }
   0x5   : > { %s1049_s15 = smov (%p27_p1, %s25_s15), 0  ;;  %p174_p3 = pnand %p643_p0, %p173_p2 }
   0x6   : > { %s644_s16 = sshll.u32 (!%p174_p3), %s849_s12, 5 }
   0x7   : > { %177 = sbr.rel (%p174_p3) target bundleno = 50 (0x32), region = 32  ;;  %p210_p4 = scmp.lt.s32.totalorder (!%p174_p3), %s644_s16, 63 }
   0xc   : > { %s1051_s16 = smov (!%p210_p4, %s644_s16), 63  ;;  %v903_v0 = vld [vmem:[%s1043_s1] ss:$0 sm:$0xff] }
   0xd   : > { %s645_s17 = sshll.u32 %s1051_s16, 3  ;;  %v913_v1 = vld [vmem:[%s1044_s2] ss:$0 sm:$0xff]  ;;  %s647_s25 = sshll.u32 %s1051_s16, 2 }
   0xe   : > { %s908_s22 = scalar_lea.vmem %s1042_s0, %s645_s17  ;;  %s945_s28 = scalar_lea.vmem %s1045_s3, %s647_s25 }
   0xf   : > { %v233_v2 = vld [vmem:[%s908_s22] sm:$0xff]  ;;  %v234_v3 = vld [vmem:[%s908_s22 + $0x8] sm:$0xff]  ;;  %v235_v4 = vld [vmem:[%s908_s22 + $0x10] sm:$0xff] }
  0x10   : > { %v272_v5 = vmul.f32 %v903_v0, %v233_v2  ;;  %v273_v6 = vmul.f32 %v903_v0, %v234_v3  ;;  %v236_v7 = vld [vmem:[%s908_s22 + $0x18] sm:$0xff]  ;;  %v274_v8 = vmul.f32 %v903_v0, %v235_v4  ;;  %v237_v9 = vld [vmem:[%s908_s22 + $0x20] sm:$0xff]  ;;  %v238_v10 = vld [vmem:[%s908_s22 + $0x28] sm:$0xff] }
  0x11   : > { %v275_v11 = vmul.f32 %v903_v0, %v236_v7  ;;  %v276_v12 = vmul.f32 %v903_v0, %v237_v9  ;;  %v277_v13 = vmul.f32 %v903_v0, %v238_v10  ;;  %v239_v14 = vld [vmem:[%s908_s22 + $0x30] sm:$0xff]  ;;  %v240_v15 = vld [vmem:[%s908_s22 + $0x38] sm:$0xff]  ;;  %v241_v24 = vld [vmem:[%s908_s22 + $0x40] sm:$0xff] }
  0x12   : > { %v311_v16 = vadd.f32 %v913_v1, %v272_v5  ;;  %v312_v17 = vadd.f32 %v913_v1, %v273_v6  ;;  %v313_v18 = vadd.f32 %v913_v1, %v274_v8  ;;  %v278_v19 = vmul.f32 %v903_v0, %v239_v14  ;;  %v242_v25 = vld [vmem:[%s908_s22 + $0x48] sm:$0xff]  ;;  %v243_v30 = vld [vmem:[%s908_s22 + $0x50] sm:$0xff]  ;;  %v244_v35 = vld [vmem:[%s908_s22 + $0x58] sm:$0xff] }
  0x13   : > { %v314_v20 = vadd.f32 %v913_v1, %v275_v11  ;;  %v315_v21 = vadd.f32 %v913_v1, %v276_v12  ;;  %v316_v22 = vadd.f32 %v913_v1, %v277_v13  ;;  %v279_v23 = vmul.f32 %v903_v0, %v240_v15  ;;  %v245_v36 = vld [vmem:[%s908_s22 + $0x60] sm:$0xff]  ;;  %v246_v41 = vld [vmem:[%s908_s22 + $0x68] sm:$0xff]  ;;  %v247_v42 = vld [vmem:[%s908_s22 + $0x70] sm:$0xff] }
  0x14   : > { %v343_v26 = vmax.f32 %v311_v16, 0.0  ;;  %v344_v27 = vmax.f32 %v312_v17, 0.0  ;;  %v345_v28 = vmax.f32 %v313_v18, 0.0  ;;  %v317_v29 = vadd.f32 %v913_v1, %v278_v19  ;;  %v248_v51 = vld [vmem:[%s908_s22 + $0x78] sm:$0xff]  ;;  %v249_v56 = vld [vmem:[%s908_s22 + $0x80] sm:$0xff]  ;;  %v250_v61 = vld [vmem:[%s908_s22 + $0x88] sm:$0xff] }
  0x15   : > { %v346_v31 = vmax.f32 %v314_v20, 0.0  ;;  %v347_v32 = vmax.f32 %v315_v21, 0.0  ;;  %v348_v33 = vmax.f32 %v316_v22, 0.0  ;;  %v318_v34 = vadd.f32 %v913_v1, %v279_v23  ;;  %v251_v4 = vld [vmem:[%s908_s22 + $0x90] sm:$0xff]  ;;  %v252_v5 = vld [vmem:[%s908_s22 + $0x98] sm:$0xff]  ;;  %v253_v10 = vld [vmem:[%s908_s22 + $0xa0] sm:$0xff] }
  0x16   : > { %v719_v37 = vpack.c.bf16 %v344_v27, %v343_v26  ;;  %v349_v38 = vmax.f32 %v317_v29, 0.0  ;;  %v280_v39 = vmul.f32 %v903_v0, %v241_v24  ;;  %v281_v40 = vmul.f32 %v903_v0, %v242_v25  ;;  %v254_v15 = vld [vmem:[%s908_s22 + $0xa8] sm:$0xff]  ;;  %v255_v20 = vld [vmem:[%s908_s22 + $0xb0] sm:$0xff]  ;;  %v256_v25 = vld [vmem:[%s908_s22 + $0xb8] sm:$0xff] }
  0x17   : > { %v724_v43 = vpack.c.bf16 %v346_v31, %v345_v28  ;;  %v729_v44 = vpack.c.bf16 %v348_v33, %v347_v32  ;;  %v350_v45 = vmax.f32 %v318_v34, 0.0  ;;  %v282_v46 = vmul.f32 %v903_v0, %v243_v30  ;;  %v257_v30 = vld [vmem:[%s908_s22 + $0xc0] sm:$0xff] }
  0x18   : > { %720 = vst [vmem:[%s945_s28] sm:$0xff] %v719_v37   ;;  %v319_v47 = vadd.f32 %v913_v1, %v280_v39  ;;  %v320_v48 = vadd.f32 %v913_v1, %v281_v40  ;;  %v283_v49 = vmul.f32 %v903_v0, %v244_v35  ;;  %v284_v50 = vmul.f32 %v903_v0, %v245_v36  ;;  %v258_v35 = vld [vmem:[%s908_s22 + $0xc8] sm:$0xff]  ;;  %v259_v40 = vld [vmem:[%s908_s22 + $0xd0] sm:$0xff] }
  0x19   : > { %796 = vst [vmem:[%s945_s28 + $0x8] sm:$0xff] %v724_v43   ;;  %797 = vst [vmem:[%s945_s28 + $0x10] sm:$0xff] %v729_v44   ;;  %v734_v52 = vpack.c.bf16 %v350_v45, %v349_v38  ;;  %v321_v53 = vadd.f32 %v913_v1, %v282_v46  ;;  %v285_v54 = vmul.f32 %v903_v0, %v246_v41  ;;  %v260_v41 = vld [vmem:[%s908_s22 + $0xd8] sm:$0xff]  ;;  %v261_v46 = vld [vmem:[%s908_s22 + $0xe0] sm:$0xff] }
  0x1a   : > { %v286_v55 = vmul.f32 %v903_v0, %v247_v42  ;;  %v351_v57 = vmax.f32 %v319_v47, 0.0  ;;  %v352_v58 = vmax.f32 %v320_v48, 0.0  ;;  %v322_v59 = vadd.f32 %v913_v1, %v283_v49 }
  0x1b   : > { %v323_v60 = vadd.f32 %v913_v1, %v284_v50  ;;  %798 = vst [vmem:[%s945_s28 + $0x18] sm:$0xff] %v734_v52   ;;  %v353_v62 = vmax.f32 %v321_v53, 0.0  ;;  %v324_v63 = vadd.f32 %v913_v1, %v285_v54  ;;  %v287_v2 = vmul.f32 %v903_v0, %v248_v51  ;;  %v262_v51 = vld [vmem:[%s908_s22 + $0xe8] sm:$0xff] }
  0x1c   : > { %v325_v3 = vadd.f32 %v913_v1, %v286_v55  ;;  %v739_v6 = vpack.c.bf16 %v352_v58, %v351_v57  ;;  %v354_v7 = vmax.f32 %v322_v59, 0.0  ;;  %v288_v9 = vmul.f32 %v903_v0, %v249_v56  ;;  %v263_v56 = vld [vmem:[%s908_s22 + $0xf0] sm:$0xff] }
  0x1d   : > { %v355_v8 = vmax.f32 %v323_v60, 0.0  ;;  %v356_v11 = vmax.f32 %v324_v63, 0.0  ;;  %v326_v12 = vadd.f32 %v913_v1, %v287_v2  ;;  %v289_v14 = vmul.f32 %v903_v0, %v250_v61  ;;  %v264_v61 = vld [vmem:[%s908_s22 + $0xf8] sm:$0xff] }
  0x1e   : > { %v357_v13 = vmax.f32 %v325_v3, 0.0  ;;  %799 = vst [vmem:[%s945_s28 + $0x20] sm:$0xff] %v739_v6   ;;  %v744_v16 = vpack.c.bf16 %v354_v7, %v353_v62  ;;  %v327_v17 = vadd.f32 %v913_v1, %v288_v9  ;;  %v290_v18 = vmul.f32 %v903_v0, %v251_v4 }
  0x1f   : > { %v291_v19 = vmul.f32 %v903_v0, %v252_v5  ;;  %v749_v21 = vpack.c.bf16 %v356_v11, %v355_v8  ;;  %v358_v22 = vmax.f32 %v326_v12, 0.0  ;;  %v328_v23 = vadd.f32 %v913_v1, %v289_v14 }
  0x20   : > { %v292_v24 = vmul.f32 %v903_v0, %v253_v10  ;;  %800 = vst [vmem:[%s945_s28 + $0x28] sm:$0xff] %v744_v16   ;;  %v359_v26 = vmax.f32 %v327_v17, 0.0  ;;  %v329_v27 = vadd.f32 %v913_v1, %v290_v18  ;;  %v293_v29 = vmul.f32 %v903_v0, %v254_v15 }
  0x21   : > { %v330_v28 = vadd.f32 %v913_v1, %v291_v19  ;;  %801 = vst [vmem:[%s945_s28 + $0x30] sm:$0xff] %v749_v21   ;;  %v754_v31 = vpack.c.bf16 %v358_v22, %v357_v13  ;;  %v360_v32 = vmax.f32 %v328_v23, 0.0  ;;  %v294_v34 = vmul.f32 %v903_v0, %v255_v20 }
  0x22   : > { %v331_v33 = vadd.f32 %v913_v1, %v292_v24  ;;  %v361_v36 = vmax.f32 %v329_v27, 0.0  ;;  %v332_v38 = vadd.f32 %v913_v1, %v293_v29  ;;  %v295_v39 = vmul.f32 %v903_v0, %v256_v25 }
  0x23   : > { %v362_v37 = vmax.f32 %v330_v28, 0.0  ;;  %802 = vst [vmem:[%s945_s28 + $0x38] sm:$0xff] %v754_v31   ;;  %v759_v42 = vpack.c.bf16 %v360_v32, %v359_v26  ;;  %v333_v44 = vadd.f32 %v913_v1, %v294_v34  ;;  %v296_v45 = vmul.f32 %v903_v0, %v257_v30 }
  0x24   : > { %v363_v43 = vmax.f32 %v331_v33, 0.0  ;;  %v364_v48 = vmax.f32 %v332_v38, 0.0  ;;  %v334_v49 = vadd.f32 %v913_v1, %v295_v39  ;;  %v297_v50 = vmul.f32 %v903_v0, %v258_v35 }
  0x25   : > { %v764_v47 = vpack.c.bf16 %v362_v37, %v361_v36  ;;  %803 = vst [vmem:[%s945_s28 + $0x40] sm:$0xff] %v759_v42   ;;  %v365_v52 = vmax.f32 %v333_v44, 0.0  ;;  %v335_v53 = vadd.f32 %v913_v1, %v296_v45  ;;  %v298_v54 = vmul.f32 %v903_v0, %v259_v40 }
  0x26   : > { %v299_v55 = vmul.f32 %v903_v0, %v260_v41  ;;  %v769_v57 = vpack.c.bf16 %v364_v48, %v363_v43  ;;  %v366_v58 = vmax.f32 %v334_v49, 0.0  ;;  %v336_v59 = vadd.f32 %v913_v1, %v297_v50 }
  0x27   : > { %804 = vst [vmem:[%s945_s28 + $0x48] sm:$0xff] %v764_v47   ;;  %v300_v60 = vmul.f32 %v903_v0, %v261_v46  ;;  %v367_v62 = vmax.f32 %v335_v53, 0.0  ;;  %v337_v63 = vadd.f32 %v913_v1, %v298_v54  ;;  %v301_v3 = vmul.f32 %v903_v0, %v262_v51 }
  0x28   : > { %v338_v2 = vadd.f32 %v913_v1, %v299_v55  ;;  %805 = vst [vmem:[%s945_s28 + $0x50] sm:$0xff] %v769_v57   ;;  %v774_v4 = vpack.c.bf16 %v366_v58, %v365_v52  ;;  %v368_v5 = vmax.f32 %v336_v59, 0.0  ;;  %v302_v7 = vmul.f32 %v903_v0, %v263_v56 }
  0x29   : > { %v339_v6 = vadd.f32 %v913_v1, %v300_v60  ;;  %v369_v8 = vmax.f32 %v337_v63, 0.0  ;;  %v340_v10 = vadd.f32 %v913_v1, %v301_v3  ;;  %v303_v11 = vmul.f32 %v903_v0, %v264_v61 }
  0x2a   : > { %v370_v9 = vmax.f32 %v338_v2, 0.0  ;;  %806 = vst [vmem:[%s945_s28 + $0x58] sm:$0xff] %v774_v4   ;;  %v779_v12 = vpack.c.bf16 %v368_v5, %v367_v62  ;;  %v341_v14 = vadd.f32 %v913_v1, %v302_v7 }
  0x2b   : > { %v371_v13 = vmax.f32 %v339_v6, 0.0  ;;  %v372_v16 = vmax.f32 %v340_v10, 0.0  ;;  %v342_v17 = vadd.f32 %v913_v1, %v303_v11 }
  0x2c   : > { %v784_v15 = vpack.c.bf16 %v370_v9, %v369_v8  ;;  %807 = vst [vmem:[%s945_s28 + $0x60] sm:$0xff] %v779_v12   ;;  %v373_v18 = vmax.f32 %v341_v14, 0.0 }
  0x2d   : > { %v789_v19 = vpack.c.bf16 %v372_v16, %v371_v13  ;;  %v374_v20 = vmax.f32 %v342_v17, 0.0 }
  0x2e   : > { %808 = vst [vmem:[%s945_s28 + $0x68] sm:$0xff] %v784_v15  }
  0x2f   : > { %809 = vst [vmem:[%s945_s28 + $0x70] sm:$0xff] %v789_v19   ;;  %v794_v21 = vpack.c.bf16 %v374_v20, %v373_v18 }
  0x31   : > { %810 = vst [vmem:[%s945_s28 + $0x78] sm:$0xff] %v794_v21  }
  0x32 PF: > { %s13_s14 = sadd.s32 1, %s857_s14   ;;  %s1046_s12 = smov %s853_s13 }
  0x33   : > { %p10_p5 = scmp.ge.s32.totalorder %s13_s14, 4   ;;  %s1047_s13 = smov %s1049_s15 }
  0x35   :  { %12 = sbr.rel (!%p10_p5) target bundleno = 2 (0x2), region = 68 }

// kernel: unet_forward.25
= control target key start
LH: loop header
LB: loop body
LE: loop exit
PB: predicated region body
PF: predicated region fallthrough
CT: control target
= control target key end

     0   :  { %s1105_s15 = smov 0   ;;  %s1107_s16 = smov 0   ;;  %s1281_s0 = inlined_call_operand.vmem [shape: bf16[512,32], index: 0, kind: input, shape index: {}]   ;;  %s1282_s1 = inlined_call_operand.vmem [shape: bf16[32,128], index: 1, kind: input, shape index: {}]   ;;  %s1283_s2 = inlined_call_operand.vmem [shape: f32[512,128], index: 2, kind: output, shape index: {0}]   ;;  %s1284_s3 = inlined_call_operand.vmem [shape: f32[2,1,128], index: 3, kind: output, shape index: {1}]   ;;  %s1285_s4 = inlined_call_operand.vmem [shape: f32[2,1,128], index: 4, kind: output, shape index: {2}]  }
   0x1   :  { %s1109_s17 = smov 0  }
   0x2 LB: > { %s27_s18 = sadd.s32 1, %s1074_s16  ;;  %p915_p0 = scmp.ge.s32.totalorder %s1078_s17, 1  ;;  %s1078_s17 = sphi %s1109_s17, %s15_s17   ;;  %s1074_s16 = sphi %s1107_s16, %s1287_s16   ;;  %s1070_s15 = sphi %s1105_s15, %s1286_s15  }
   0x3   : > { %p29_p1 = scmp.ge.s32.totalorder %s27_s18, 2  ;;  %p195_p2 = scmp.lt.s32.totalorder %s1078_s17, 3 }
   0x5   : > { %s1289_s18 = smov (%p29_p1, %s27_s18), 0  ;;  %p196_p3 = pnand %p915_p0, %p195_p2 }
   0x6   : > { %s916_s21 = sshll.u32 (!%p196_p3), %s1070_s15, 5  ;;  %p259_p5 = scmp.lt.s32.totalorder (!%p196_p3), %s1070_s15, 1 }
   0x7   : > { %199 = sbr.rel (%p196_p3) target bundleno = 297 (0x129), region = 28  ;;  %p241_p4 = scmp.lt.s32.totalorder (!%p196_p3), %s916_s21, 63 }
   0xc   : > { %v1038_v0 = vld [vmem:[%s1282_s1 + $0x8] sm:$0xff]   ;;  %v1039_v1 = vld [vmem:[%s1282_s1] sm:$0xff]   ;;  %s1291_s21 = smov (!%p241_p4, %s916_s21), 63  ;;  %vm400_vm0 = vcmask 261120   ;;  %s1293_s15 = smov (!%p259_p5, %s1070_s15), 1 }
   0xd   : > { %974 = vmatprep.subr.bf16.mxu0 %v1038_v0  ;;  %1010 = vmatprep.subr.bf16.mxu1 %v1038_v0  ;;  %s917_s24 = sshll.u32 %s1291_s21, 2  ;;  %s919_s28 = sshll.u32 %s1291_s21, 3 }
   0xe   : > { %975 = vmatpush3.bf16.msra.mxu0 %v1038_v0  ;;  %1012 = vmatpush3.bf16.msra.mxu1 %v1038_v0  ;;  %s1138_s27 = scalar_lea.vmem %s1281_s0, %s917_s24  ;;  %s1176_s5 = scalar_lea.vmem %s1283_s2, %s919_s28 }
   0xf   : > { %976 = vmatprep.subr.bf16.mxu0 %v1039_v1  ;;  %1011 = vmatprep.subr.bf16.mxu1 %v1039_v1  ;;  %v1040_v2 = vld [vmem:[%s1138_s27] sm:$0xff]   ;;  %v1041_v3 = vld [vmem:[%s1138_s27 + $0x8] sm:$0xff]   ;;  %v1042_v4 = vld [vmem:[%s1138_s27 + $0x10] sm:$0xff]   ;;  %s264_s8 = scalar_lea.vmem %s1284_s3, %s1293_s15  ;;  %s270_s11 = scalar_lea.vmem %s1285_s4, %s1293_s15 }
  0x10   : > { %978 = vmatprep.mubr.msk.bf16.mxu0 %vm400_vm0, %v1040_v2  ;;  %v1043_v5 = vld [vmem:[%s1138_s27 + $0x18] sm:$0xff]   ;;  %v1044_v6 = vld [vmem:[%s1138_s27 + $0x20] sm:$0xff]   ;;  %v1049_v8 = vld [vmem:[%s1138_s27 + $0x48] sm:$0xff]  }
  0x11   : > { %v1048_v7 = vld [vmem:[%s1138_s27 + $0x40] sm:$0xff]   ;;  %v1050_v9 = vld [vmem:[%s1138_s27 + $0x50] sm:$0xff]   ;;  %v1045_v10 = vld [vmem:[%s1138_s27 + $0x28] sm:$0xff]  }
  0x12   : > { %977 = vmatpush3.bf16.msra.mxu0 %v1039_v1  ;;  %1013 = vmatpush3.bf16.msra.mxu1 %v1039_v1  ;;  %v1051_v11 = vld [vmem:[%s1138_s27 + $0x58] sm:$0xff]   ;;  %v1046_v12 = vld [vmem:[%s1138_s27 + $0x30] sm:$0xff]   ;;  %v1052_v13 = vld [vmem:[%s1138_s27 + $0x60] sm:$0xff]  }
  0x13   : > { %994 = vmatprep.mubr.msk.bf16.mxu1 %vm400_vm0, %v1048_v7  ;;  %v1047_v14 = vld [vmem:[%s1138_s27 + $0x38] sm:$0xff]   ;;  %v1053_v15 = vld [vmem:[%s1138_s27 + $0x68] sm:$0xff]   ;;  %v1054_v16 = vld [vmem:[%s1138_s27 + $0x70] sm:$0xff]  }
  0x14   : > { %v1055_v17 = vld [vmem:[%s1138_s27 + $0x78] sm:$0xff]  }
  0x15   : > { %979 = vmatmul.mubr.msk.bf16.vlgmr.msra.gmra.mxu0 %vm400_vm0, %v1041_v3  ;;  %995 = vmatmul.mubr.msk.bf16.vlgmr.msra.gmra.mxu1 %vm400_vm0, %v1049_v8 }
  0x16   : > { %982 = vmatprep.mubr.msk.bf16.mxu0 %vm400_vm0, %v1042_v4  ;;  %998 = vmatprep.mubr.msk.bf16.mxu1 %vm400_vm0, %v1050_v9 }
  0x1d   : > { %983 = vmatmul.mubr.msk.bf16.gmra.mxu0 %vm400_vm0, %v1043_v5  ;;  %999 = vmatmul.mubr.msk.bf16.gmra.mxu1 %vm400_vm0, %v1051_v11 }
  0x1e   : > { %986 = vmatprep.mubr.msk.bf16.mxu0 %vm400_vm0, %v1044_v6  ;;  %1002 = vmatprep.mubr.msk.bf16.mxu1 %vm400_vm0, %v1052_v13 }
  0x25   : > { %987 = vmatmul.mubr.msk.bf16.gmra.mxu0 %vm400_vm0, %v1045_v10  ;;  %1003 = vmatmul.mubr.msk.bf16.gmra.mxu1 %vm400_vm0, %v1053_v15 }
  0x26   : > { %990 = vmatprep.mubr.msk.bf16.mxu0 %vm400_vm0, %v1046_v12  ;;  %1006 = vmatprep.mubr.msk.bf16.mxu1 %vm400_vm0, %v1054_v16 }
  0x2d   : > { %991 = vmatmul.mubr.msk.bf16.gmra.mxu0 %vm400_vm0, %v1047_v14  ;;  %1007 = vmatmul.mubr.msk.bf16.gmra.mxu1 %vm400_vm0, %v1055_v17 }
  0xd5   : > { %v980_v18 = vpop.f32.mrf.mxu0  ;;  %v1182_v26 = vpop.f32.mrf.mxu1 }
  0xd6   : > { %612 = vst [vmem:[%s1176_s5 + $0x10] sm:$0xff] %v980_v18  ;;  %v682_v27 = vmul.f32 %v980_v18, %v980_v18  ;;  %628 = vst [vmem:[%s1176_s5 + $0x90] sm:$0xff] %v1182_v26 }
  0xd7   : > { %v483_v19 = vpop.f32.mrf.mxu0  ;;  %v1187_v31 = vpop.f32.mrf.mxu1 }
  0xd8   : > { %610 = vst [vmem:[%s1176_s5] sm:$0xff] %v483_v19  ;;  %v680_v22 = vmul.f32 %v483_v19, %v483_v19  ;;  %626 = vst [vmem:[%s1176_s5 + $0x80] sm:$0xff] %v1187_v31 }
  0xd9   : > { %v981_v20 = vpop.f32.mrf.mxu0  ;;  %v1192_v36 = vpop.f32.mrf.mxu1 }
  0xda   : > { %613 = vst [vmem:[%s1176_s5 + $0x18] sm:$0xff] %v981_v20  ;;  %v683_v32 = vmul.f32 %v981_v20, %v981_v20  ;;  %629 = vst [vmem:[%s1176_s5 + $0x98] sm:$0xff] %v1192_v36 }
  0xdb   : > { %v486_v21 = vpop.f32.mrf.mxu0  ;;  %v1197_v41 = vpop.f32.mrf.mxu1 }
  0xdc   : > { %611 = vst [vmem:[%s1176_s5 + $0x8] sm:$0xff] %v486_v21  ;;  %v642_v23 = vadd.f32 %v486_v21, %v483_v19  ;;  %v681_v24 = vmul.f32 %v486_v21, %v486_v21  ;;  %627 = vst [vmem:[%s1176_s5 + $0x88] sm:$0xff] %v1197_v41 }
  0xdd   : > { %v984_v25 = vpop.f32.mrf.mxu0  ;;  %v1202_v46 = vpop.f32.mrf.mxu1 }
  0xde   : > { %v643_v28 = vadd.f32 %v980_v18, %v642_v23  ;;  %v712_v29 = vadd.f32 %v681_v24, %v680_v22  ;;  %616 = vst [vmem:[%s1176_s5 + $0x30] sm:$0xff] %v984_v25  ;;  %v686_v47 = vmul.f32 %v984_v25, %v984_v25  ;;  %632 = vst [vmem:[%s1176_s5 + $0xb0] sm:$0xff] %v1202_v46 }
  0xdf   : > { %v499_v30 = vpop.f32.mrf.mxu0  ;;  %v1207_v51 = vpop.f32.mrf.mxu1 }
  0xe0   : > { %v713_v33 = vadd.f32 %v712_v29, %v682_v27  ;;  %614 = vst [vmem:[%s1176_s5 + $0x20] sm:$0xff] %v499_v30  ;;  %v644_v34 = vadd.f32 %v981_v20, %v643_v28  ;;  %v684_v38 = vmul.f32 %v499_v30, %v499_v30  ;;  %630 = vst [vmem:[%s1176_s5 + $0xa0] sm:$0xff] %v1207_v51 }
  0xe1   : > { %v985_v35 = vpop.f32.mrf.mxu0  ;;  %v1212_v56 = vpop.f32.mrf.mxu1 }
  0xe2   : > { %v645_v37 = vadd.f32 %v644_v34, %v499_v30  ;;  %v714_v39 = vadd.f32 %v713_v33, %v683_v32  ;;  %617 = vst [vmem:[%s1176_s5 + $0x38] sm:$0xff] %v985_v35  ;;  %v687_v52 = vmul.f32 %v985_v35, %v985_v35  ;;  %633 = vst [vmem:[%s1176_s5 + $0xb8] sm:$0xff] %v1212_v56 }
  0xe3   : > { %v502_v40 = vpop.f32.mrf.mxu0  ;;  %v1217_v61 = vpop.f32.mrf.mxu1  ;;  %v696_v32 = vmul.f32 %v1187_v31, %v1187_v31 }
  0xe4   : > { %v715_v42 = vadd.f32 %v714_v39, %v684_v38  ;;  %615 = vst [vmem:[%s1176_s5 + $0x28] sm:$0xff] %v502_v40  ;;  %v646_v43 = vadd.f32 %v645_v37, %v502_v40  ;;  %v685_v44 = vmul.f32 %v502_v40, %v502_v40  ;;  %631 = vst [vmem:[%s1176_s5 + $0xa8] sm:$0xff] %v1217_v61 }
  0xe5   : > { %v988_v45 = vpop.f32.mrf.mxu0  ;;  %v1222_v2 = vpop.f32.mrf.mxu1  ;;  %v697_v38 = vmul.f32 %v1197_v41, %v1197_v41  ;;  %v698_v40 = vmul.f32 %v1182_v26, %v1182_v26 }
  0xe6   : > { %v647_v48 = vadd.f32 %v984_v25, %v646_v43  ;;  %v716_v49 = vadd.f32 %v715_v42, %v685_v44  ;;  %620 = vst [vmem:[%s1176_s5 + $0x50] sm:$0xff] %v988_v45  ;;  %v690_v3 = vmul.f32 %v988_v45, %v988_v45  ;;  %636 = vst [vmem:[%s1176_s5 + $0xd0] sm:$0xff] %v1222_v2 }
  0xe7   : > { %v515_v50 = vpop.f32.mrf.mxu0  ;;  %v579_v7 = vpop.f32.mrf.mxu1  ;;  %v699_v44 = vmul.f32 %v1192_v36, %v1192_v36 }
  0xe8   : > { %v717_v53 = vadd.f32 %v716_v49, %v686_v47  ;;  %618 = vst [vmem:[%s1176_s5 + $0x40] sm:$0xff] %v515_v50  ;;  %v648_v54 = vadd.f32 %v985_v35, %v647_v48  ;;  %v688_v58 = vmul.f32 %v515_v50, %v515_v50  ;;  %634 = vst [vmem:[%s1176_s5 + $0xc0] sm:$0xff] %v579_v7 }
  0xe9   : > { %v989_v55 = vpop.f32.mrf.mxu0  ;;  %v1005_v12 = vpop.f32.mrf.mxu1  ;;  %v700_v48 = vmul.f32 %v1207_v51, %v1207_v51 }
  0xea   : > { %v649_v57 = vadd.f32 %v648_v54, %v515_v50  ;;  %v718_v59 = vadd.f32 %v717_v53, %v687_v52  ;;  %621 = vst [vmem:[%s1176_s5 + $0x58] sm:$0xff] %v989_v55  ;;  %v691_v8 = vmul.f32 %v989_v55, %v989_v55  ;;  %637 = vst [vmem:[%s1176_s5 + $0xd8] sm:$0xff] %v1005_v12 }
  0xeb   : > { %v518_v60 = vpop.f32.mrf.mxu0  ;;  %v582_v17 = vpop.f32.mrf.mxu1  ;;  %v701_v52 = vmul.f32 %v1217_v61, %v1217_v61 }
  0xec   : > { %v719_v62 = vadd.f32 %v718_v59, %v688_v58  ;;  %619 = vst [vmem:[%s1176_s5 + $0x48] sm:$0xff] %v518_v60  ;;  %v650_v63 = vadd.f32 %v649_v57, %v518_v60  ;;  %v689_v0 = vmul.f32 %v518_v60, %v518_v60  ;;  %635 = vst [vmem:[%s1176_s5 + $0xc8] sm:$0xff] %v582_v17 }
  0xed   : > { %v992_v1 = vpop.f32.mrf.mxu0  ;;  %v1008_v21 = vpop.f32.mrf.mxu1  ;;  %v704_v58 = vmul.f32 %v579_v7, %v579_v7 }
  0xee   : > { %v651_v4 = vadd.f32 %v988_v45, %v650_v63  ;;  %v720_v5 = vadd.f32 %v719_v62, %v689_v0  ;;  %624 = vst [vmem:[%s1176_s5 + $0x70] sm:$0xff] %v992_v1  ;;  %v694_v22 = vmul.f32 %v992_v1, %v992_v1  ;;  %640 = vst [vmem:[%s1176_s5 + $0xf0] sm:$0xff] %v1008_v21 }
  0xef   : > { %v531_v6 = vpop.f32.mrf.mxu0  ;;  %v595_v25 = vpop.f32.mrf.mxu1  ;;  %v705_v63 = vmul.f32 %v582_v17, %v582_v17 }
  0xf0   : > { %v721_v9 = vadd.f32 %v720_v5, %v690_v3  ;;  %622 = vst [vmem:[%s1176_s5 + $0x60] sm:$0xff] %v531_v6  ;;  %v652_v10 = vadd.f32 %v989_v55, %v651_v4  ;;  %v692_v14 = vmul.f32 %v531_v6, %v531_v6  ;;  %638 = vst [vmem:[%s1176_s5 + $0xe0] sm:$0xff] %v595_v25 }
  0xf1   : > { %v993_v11 = vpop.f32.mrf.mxu0  ;;  %v1009_v30 = vpop.f32.mrf.mxu1 }
  0xf2   : > { %v653_v13 = vadd.f32 %v652_v10, %v531_v6  ;;  %v722_v15 = vadd.f32 %v721_v9, %v691_v8  ;;  %625 = vst [vmem:[%s1176_s5 + $0x78] sm:$0xff] %v993_v11  ;;  %v695_v27 = vmul.f32 %v993_v11, %v993_v11  ;;  %641 = vst [vmem:[%s1176_s5 + $0xf8] sm:$0xff] %v1009_v30 }
  0xf3   : > { %v534_v16 = vpop.f32.mrf.mxu0  ;;  %v598_v35 = vpop.f32.mrf.mxu1  ;;  %v708_v6 = vmul.f32 %v595_v25, %v595_v25  ;;  %v710_v10 = vmul.f32 %v1008_v21, %v1008_v21 }
  0xf4   : > { %v723_v18 = vadd.f32 %v722_v15, %v692_v14  ;;  %623 = vst [vmem:[%s1176_s5 + $0x68] sm:$0xff] %v534_v16  ;;  %v654_v19 = vadd.f32 %v653_v13, %v534_v16  ;;  %v693_v20 = vmul.f32 %v534_v16, %v534_v16  ;;  %639 = vst [vmem:[%s1176_s5 + $0xe8] sm:$0xff] %v598_v35 }
  0xf5   : > { %v709_v9 = vmul.f32 %v598_v35, %v598_v35  ;;  %v711_v14 = vmul.f32 %v1009_v30, %v1009_v30 }
  0xf6   : > { %v655_v23 = vadd.f32 %v992_v1, %v654_v19  ;;  %v724_v24 = vadd.f32 %v723_v18, %v693_v20 }
  0xf8   : > { %v656_v28 = vadd.f32 %v993_v11, %v655_v23  ;;  %v725_v29 = vadd.f32 %v724_v24, %v694_v22 }
  0xfa   : > { %v726_v33 = vadd.f32 %v725_v29, %v695_v27  ;;  %v657_v34 = vadd.f32 %v656_v28, %v1187_v31 }
  0xfc   : > { %v658_v37 = vadd.f32 %v657_v34, %v1197_v41  ;;  %v727_v39 = vadd.f32 %v726_v33, %v696_v32 }
  0xfe   : > { %v659_v42 = vadd.f32 %v1182_v26, %v658_v37  ;;  %v728_v43 = vadd.f32 %v727_v39, %v697_v38  ;;  %v702_v26 = vmul.f32 %v1202_v46, %v1202_v46 }
 0x100   : > { %v729_v45 = vadd.f32 %v728_v43, %v698_v40  ;;  %v660_v31 = vadd.f32 %v1192_v36, %v659_v42  ;;  %v703_v36 = vmul.f32 %v1212_v56, %v1212_v56 }
 0x102   : > { %v661_v47 = vadd.f32 %v660_v31, %v1207_v51  ;;  %v730_v41 = vadd.f32 %v729_v45, %v699_v44 }
 0x104   : > { %v731_v49 = vadd.f32 %v730_v41, %v700_v48  ;;  %v662_v50 = vadd.f32 %v661_v47, %v1217_v61  ;;  %v706_v61 = vmul.f32 %v1222_v2, %v1222_v2 }
 0x106   : > { %v663_v53 = vadd.f32 %v1202_v46, %v662_v50  ;;  %v732_v54 = vadd.f32 %v731_v49, %v701_v52  ;;  %v707_v46 = vmul.f32 %v1005_v12, %v1005_v12 }
 0x108   : > { %v733_v55 = vadd.f32 %v732_v54, %v702_v26  ;;  %v664_v57 = vadd.f32 %v1212_v56, %v663_v53 }
 0x10a   : > { %v665_v51 = vadd.f32 %v664_v57, %v579_v7  ;;  %v734_v59 = vadd.f32 %v733_v55, %v703_v36 }
 0x10c   : > { %v735_v60 = vadd.f32 %v734_v59, %v704_v58  ;;  %v666_v62 = vadd.f32 %v665_v51, %v582_v17 }
 0x10e   : > { %v667_v0 = vadd.f32 %v1222_v2, %v666_v62  ;;  %v736_v1 = vadd.f32 %v735_v60, %v705_v63 }
 0x110   : > { %v737_v3 = vadd.f32 %v736_v1, %v706_v61  ;;  %v668_v4 = vadd.f32 %v1005_v12, %v667_v0 }
 0x112   : > { %v669_v5 = vadd.f32 %v668_v4, %v595_v25  ;;  %v738_v8 = vadd.f32 %v737_v3, %v707_v46 }
 0x114   : > { %v739_v56 = vadd.f32 %v738_v8, %v708_v6  ;;  %v670_v7 = vadd.f32 %v669_v5, %v598_v35 }
 0x116   : > { %v671_v11 = vadd.f32 %v1008_v21, %v670_v7  ;;  %v740_v13 = vadd.f32 %v739_v56, %v709_v9 }
 0x118   : > { %v672_v15 = vadd.f32 %v1009_v30, %v671_v11  ;;  %v741_v16 = vadd.f32 %v740_v13, %v710_v10 }
 0x11a   : > { %v673_v17 = vrot.slane %v672_v15, 4  ;;  %v742_v2 = vadd.f32 %v741_v16, %v711_v14 }
 0x11c   : > { %v674_v18 = vadd.f32 %v673_v17, %v672_v15  ;;  %v743_v19 = vrot.slane %v742_v2, 4 }
 0x11e   : > { %v675_v20 = vrot.slane %v674_v18, 2  ;;  %v744_v12 = vadd.f32 %v743_v19, %v742_v2 }
 0x120   : > { %v676_v22 = vadd.f32 %v675_v20, %v674_v18  ;;  %v745_v23 = vrot.slane %v744_v12, 2 }
 0x122   : > { %v677_v24 = vrot.slane %v676_v22, 1  ;;  %v746_v25 = vadd.f32 %v745_v23, %v744_v12 }
 0x124   : > { %v678_v21 = vadd.f32 %v677_v24, %v676_v22  ;;  %v747_v27 = vrot.slane %v746_v25, 1 }
 0x126   : > { %679 = vst [vmem:[%s264_s8] sm:$0x1] %v678_v21  ;;  %v748_v28 = vadd.f32 %v747_v27, %v746_v25 }
 0x128   : > { %749 = vst [vmem:[%s270_s11] sm:$0x1] %v748_v28 }
 0x129 PF: > { %s15_s17 = sadd.s32 1, %s1078_s17   ;;  %s1286_s15 = smov %s1074_s16 }
 0x12a   : > { %p12_p6 = scmp.ge.s32.totalorder %s15_s17, 4   ;;  %s1287_s16 = smov %s1289_s18 }
 0x12c   :  { %14 = sbr.rel (!%p12_p6) target bundleno = 2 (0x2), region = 85 }

// kernel: unet_forward.27
= control target key start
LH: loop header
LB: loop body
LE: loop exit
PB: predicated region body
PF: predicated region fallthrough
CT: control target
= control target key end

     0   :  { %s1150_s15 = smov 0   ;;  %s1152_s16 = smov 0   ;;  %s1365_s0 = inlined_call_operand.vmem [shape: bf16[512,80], index: 0, kind: input, shape index: {}]   ;;  %s1366_s1 = inlined_call_operand.vmem [shape: bf16[80,128], index: 1, kind: input, shape index: {}]   ;;  %s1367_s2 = inlined_call_operand.vmem [shape: f32[512,128], index: 2, kind: output, shape index: {0}]   ;;  %s1368_s3 = inlined_call_operand.vmem [shape: f32[2,1,128], index: 3, kind: output, shape index: {1}]   ;;  %s1369_s4 = inlined_call_operand.vmem [shape: f32[2,1,128], index: 4, kind: output, shape index: {2}]  }
   0x1   :  { %s1154_s17 = smov 0  }
   0x2 LB: > { %s27_s18 = sadd.s32 1, %s1119_s16  ;;  %p939_p0 = scmp.ge.s32.totalorder %s1123_s17, 1  ;;  %s1123_s17 = sphi %s1154_s17, %s15_s17   ;;  %s1119_s16 = sphi %s1152_s16, %s1371_s16   ;;  %s1115_s15 = sphi %s1150_s15, %s1370_s15  }
   0x3   : > { %p29_p1 = scmp.ge.s32.totalorder %s27_s18, 2  ;;  %p195_p2 = scmp.lt.s32.totalorder %s1123_s17, 3 }
   0x5   : > { %s1373_s18 = smov (%p29_p1, %s27_s18), 0  ;;  %p196_p3 = pnand %p939_p0, %p195_p2 }
   0x6   : > { %s940_s21 = sshll.u32 (!%p196_p3), %s1115_s15, 5  ;;  %p259_p5 = scmp.lt.s32.totalorder (!%p196_p3), %s1115_s15, 1 }
   0x7   : > { %199 = sbr.rel (%p196_p3) target bundleno = 309 (0x135), region = 28  ;;  %p241_p4 = scmp.lt.s32.totalorder (!%p196_p3), %s940_s21, 63 }
   0xc   : > { %v1080_v0 = vld [vmem:[%s1366_s1 + $0x20] sm:$0xff]   ;;  %v1081_v1 = vld [vmem:[%s1366_s1 + $0x18] sm:$0xff]   ;;  %s1375_s21 = smov (!%p241_p4, %s940_s21), 63  ;;  %v1082_v2 = vld [vmem:[%s1366_s1 + $0x10] sm:$0xff]   ;;  %vm424_vm0 = vcmask 654336   ;;  %s1377_s15 = smov (!%p259_p5, %s1115_s15), 1 }
   0xd   : > { %1004 = vmatprep.subr.bf16.mxu0 %v1080_v0  ;;  %1046 = vmatprep.subr.bf16.mxu1 %v1080_v0  ;;  %s941_s26 = sshll.u32 %s1375_s21, 2  ;;  %v1083_v4 = vld [vmem:[%s1366_s1 + $0x8] sm:$0xff]   ;;  %v1084_v5 = vld [vmem:[%s1366_s1] sm:$0xff]   ;;  %s943_s8 = sshll.u32 %s1375_s21, 3 }
   0xe   : > { %1005 = vmatpush3.bf16.msra.mxu0 %v1080_v0  ;;  %1051 = vmatpush3.bf16.msra.mxu1 %v1080_v0  ;;  %s1186_s29 = scalar_lea.vmem %s1365_s0, %s941_s26  ;;  %s1230_s11 = scalar_lea.vmem %s1367_s2, %s943_s8 }
   0xf   : > { %1006 = vmatprep.subr.bf16.mxu0 %v1081_v1  ;;  %1047 = vmatprep.subr.bf16.mxu1 %v1081_v1  ;;  %v1085_v3 = vld [vmem:[%s1186_s29] sm:$0xff]   ;;  %v1086_v7 = vld [vmem:[%s1186_s29 + $0x8] sm:$0xff]   ;;  %v1087_v8 = vld [vmem:[%s1186_s29 + $0x10] sm:$0xff]   ;;  %s264_s14 = scalar_lea.vmem %s1368_s3, %s1377_s15  ;;  %s270_s21 = scalar_lea.vmem %s1369_s4, %s1377_s15 }
  0x10   : > { %1014 = vmatprep.mubr.msk.bf16.mxu0 %vm424_vm0, %v1085_v3  ;;  %v1093_v6 = vld [vmem:[%s1186_s29 + $0x40] sm:$0xff]   ;;  %v1094_v9 = vld [vmem:[%s1186_s29 + $0x48] sm:$0xff]   ;;  %v1095_v10 = vld [vmem:[%s1186_s29 + $0x50] sm:$0xff]  }
  0x11   : > { %1030 = vmatprep.mubr.msk.bf16.mxu1 %vm424_vm0, %v1093_v6  ;;  %v1088_v11 = vld [vmem:[%s1186_s29 + $0x18] sm:$0xff]   ;;  %v1089_v13 = vld [vmem:[%s1186_s29 + $0x20] sm:$0xff]   ;;  %v1090_v15 = vld [vmem:[%s1186_s29 + $0x28] sm:$0xff]  }
  0x12   : > { %1007 = vmatpush3.bf16.msra.mxu0 %v1081_v1  ;;  %1052 = vmatpush3.bf16.msra.mxu1 %v1081_v1  ;;  %v1096_v12 = vld [vmem:[%s1186_s29 + $0x58] sm:$0xff]   ;;  %v1097_v14 = vld [vmem:[%s1186_s29 + $0x60] sm:$0xff]   ;;  %v1098_v16 = vld [vmem:[%s1186_s29 + $0x68] sm:$0xff]  }
  0x13   : > { %1008 = vmatprep.subr.bf16.mxu0 %v1082_v2  ;;  %1048 = vmatprep.subr.bf16.mxu1 %v1082_v2  ;;  %v1091_v17 = vld [vmem:[%s1186_s29 + $0x30] sm:$0xff]   ;;  %v1092_v19 = vld [vmem:[%s1186_s29 + $0x38] sm:$0xff]  }
  0x14   : > { %v1099_v18 = vld [vmem:[%s1186_s29 + $0x70] sm:$0xff]   ;;  %v1100_v20 = vld [vmem:[%s1186_s29 + $0x78] sm:$0xff]  }
  0x16   : > { %1009 = vmatpush3.bf16.msra.mxu0 %v1082_v2  ;;  %1053 = vmatpush3.bf16.msra.mxu1 %v1082_v2 }
  0x17   : > { %1010 = vmatprep.subr.bf16.mxu0 %v1083_v4  ;;  %1049 = vmatprep.subr.bf16.mxu1 %v1083_v4 }
  0x1a   : > { %1011 = vmatpush3.bf16.msra.mxu0 %v1083_v4  ;;  %1054 = vmatpush3.bf16.msra.mxu1 %v1083_v4 }
  0x1b   : > { %1012 = vmatprep.subr.bf16.mxu0 %v1084_v5  ;;  %1050 = vmatprep.subr.bf16.mxu1 %v1084_v5 }
  0x1e   : > { %1013 = vmatpush3.bf16.msra.mxu0 %v1084_v5  ;;  %1055 = vmatpush3.bf16.msra.mxu1 %v1084_v5 }
  0x21   : > { %1015 = vmatmul.mubr.msk.bf16.vlgmr.msra.gmra.mxu0 %vm424_vm0, %v1086_v7  ;;  %1031 = vmatmul.mubr.msk.bf16.vlgmr.msra.gmra.mxu1 %vm424_vm0, %v1094_v9 }
  0x22   : > { %1018 = vmatprep.mubr.msk.bf16.mxu0 %vm424_vm0, %v1087_v8  ;;  %1034 = vmatprep.mubr.msk.bf16.mxu1 %vm424_vm0, %v1095_v10 }
  0x29   : > { %1019 = vmatmul.mubr.msk.bf16.gmra.mxu0 %vm424_vm0, %v1088_v11  ;;  %1035 = vmatmul.mubr.msk.bf16.gmra.mxu1 %vm424_vm0, %v1096_v12 }
  0x2a   : > { %1022 = vmatprep.mubr.msk.bf16.mxu0 %vm424_vm0, %v1089_v13  ;;  %1038 = vmatprep.mubr.msk.bf16.mxu1 %vm424_vm0, %v1097_v14 }
  0x31   : > { %1023 = vmatmul.mubr.msk.bf16.gmra.mxu0 %vm424_vm0, %v1090_v15  ;;  %1039 = vmatmul.mubr.msk.bf16.gmra.mxu1 %vm424_vm0, %v1098_v16 }
  0x32   : > { %1026 = vmatprep.mubr.msk.bf16.mxu0 %vm424_vm0, %v1091_v17  ;;  %1042 = vmatprep.mubr.msk.bf16.mxu1 %vm424_vm0, %v1099_v18 }
  0x39   : > { %1027 = vmatmul.mubr.msk.bf16.gmra.mxu0 %vm424_vm0, %v1092_v19  ;;  %1043 = vmatmul.mubr.msk.bf16.gmra.mxu1 %vm424_vm0, %v1100_v20 }
  0xe1   : > { %v1016_v21 = vpop.f32.mrf.mxu0  ;;  %v1232_v22 = vpop.f32.mrf.mxu1 }
  0xe2   : > { %636 = vst [vmem:[%s1230_s11 + $0x10] sm:$0xff] %v1016_v21  ;;  %652 = vst [vmem:[%s1230_s11 + $0x90] sm:$0xff] %v1232_v22  ;;  %v706_v34 = vmul.f32 %v1016_v21, %v1016_v21 }
  0xe3   : > { %v507_v23 = vpop.f32.mrf.mxu0  ;;  %v1237_v24 = vpop.f32.mrf.mxu1 }
  0xe4   : > { %634 = vst [vmem:[%s1230_s11] sm:$0xff] %v507_v23  ;;  %650 = vst [vmem:[%s1230_s11 + $0x80] sm:$0xff] %v1237_v24  ;;  %v704_v29 = vmul.f32 %v507_v23, %v507_v23 }
  0xe5   : > { %v1017_v25 = vpop.f32.mrf.mxu0  ;;  %v1242_v26 = vpop.f32.mrf.mxu1 }
  0xe6   : > { %637 = vst [vmem:[%s1230_s11 + $0x18] sm:$0xff] %v1017_v25  ;;  %653 = vst [vmem:[%s1230_s11 + $0x98] sm:$0xff] %v1242_v26  ;;  %v707_v39 = vmul.f32 %v1017_v25, %v1017_v25 }
  0xe7   : > { %v510_v27 = vpop.f32.mrf.mxu0  ;;  %v1247_v28 = vpop.f32.mrf.mxu1 }
  0xe8   : > { %635 = vst [vmem:[%s1230_s11 + $0x8] sm:$0xff] %v510_v27  ;;  %v666_v30 = vadd.f32 %v510_v27, %v507_v23  ;;  %v705_v31 = vmul.f32 %v510_v27, %v510_v27  ;;  %651 = vst [vmem:[%s1230_s11 + $0x88] sm:$0xff] %v1247_v28 }
  0xe9   : > { %v1020_v32 = vpop.f32.mrf.mxu0  ;;  %v1252_v33 = vpop.f32.mrf.mxu1 }
  0xea   : > { %v667_v35 = vadd.f32 %v1016_v21, %v666_v30  ;;  %v736_v36 = vadd.f32 %v705_v31, %v704_v29  ;;  %640 = vst [vmem:[%s1230_s11 + $0x30] sm:$0xff] %v1020_v32  ;;  %656 = vst [vmem:[%s1230_s11 + $0xb0] sm:$0xff] %v1252_v33  ;;  %v710_v54 = vmul.f32 %v1020_v32, %v1020_v32 }
  0xeb   : > { %v523_v37 = vpop.f32.mrf.mxu0  ;;  %v1257_v38 = vpop.f32.mrf.mxu1 }
  0xec   : > { %v737_v40 = vadd.f32 %v736_v36, %v706_v34  ;;  %638 = vst [vmem:[%s1230_s11 + $0x20] sm:$0xff] %v523_v37  ;;  %v668_v41 = vadd.f32 %v1017_v25, %v667_v35  ;;  %654 = vst [vmem:[%s1230_s11 + $0xa0] sm:$0xff] %v1257_v38  ;;  %v708_v45 = vmul.f32 %v523_v37, %v523_v37 }
  0xed   : > { %v1021_v42 = vpop.f32.mrf.mxu0  ;;  %v1262_v43 = vpop.f32.mrf.mxu1 }
  0xee   : > { %v669_v44 = vadd.f32 %v668_v41, %v523_v37  ;;  %v738_v46 = vadd.f32 %v737_v40, %v707_v39  ;;  %641 = vst [vmem:[%s1230_s11 + $0x38] sm:$0xff] %v1021_v42  ;;  %657 = vst [vmem:[%s1230_s11 + $0xb8] sm:$0xff] %v1262_v43  ;;  %v711_v59 = vmul.f32 %v1021_v42, %v1021_v42 }
  0xef   : > { %v526_v47 = vpop.f32.mrf.mxu0  ;;  %v1267_v48 = vpop.f32.mrf.mxu1  ;;  %v720_v40 = vmul.f32 %v1237_v24, %v1237_v24 }
  0xf0   : > { %v739_v49 = vadd.f32 %v738_v46, %v708_v45  ;;  %639 = vst [vmem:[%s1230_s11 + $0x28] sm:$0xff] %v526_v47  ;;  %v670_v50 = vadd.f32 %v669_v44, %v526_v47  ;;  %v709_v51 = vmul.f32 %v526_v47, %v526_v47  ;;  %655 = vst [vmem:[%s1230_s11 + $0xa8] sm:$0xff] %v1267_v48 }
  0xf1   : > { %v1024_v52 = vpop.f32.mrf.mxu0  ;;  %v1272_v53 = vpop.f32.mrf.mxu1  ;;  %v721_v45 = vmul.f32 %v1247_v28, %v1247_v28  ;;  %v722_v47 = vmul.f32 %v1232_v22, %v1232_v22 }
  0xf2   : > { %v671_v55 = vadd.f32 %v1020_v32, %v670_v50  ;;  %v740_v56 = vadd.f32 %v739_v49, %v709_v51  ;;  %644 = vst [vmem:[%s1230_s11 + $0x50] sm:$0xff] %v1024_v52  ;;  %660 = vst [vmem:[%s1230_s11 + $0xd0] sm:$0xff] %v1272_v53  ;;  %v714_v10 = vmul.f32 %v1024_v52, %v1024_v52 }
  0xf3   : > { %v539_v57 = vpop.f32.mrf.mxu0  ;;  %v1277_v58 = vpop.f32.mrf.mxu1  ;;  %v723_v51 = vmul.f32 %v1242_v26, %v1242_v26 }
  0xf4   : > { %v741_v60 = vadd.f32 %v740_v56, %v710_v54  ;;  %642 = vst [vmem:[%s1230_s11 + $0x40] sm:$0xff] %v539_v57  ;;  %v672_v61 = vadd.f32 %v1021_v42, %v671_v55  ;;  %658 = vst [vmem:[%s1230_s11 + $0xc0] sm:$0xff] %v1277_v58  ;;  %v712_v1 = vmul.f32 %v539_v57, %v539_v57 }
  0xf5   : > { %v1025_v62 = vpop.f32.mrf.mxu0  ;;  %v1282_v63 = vpop.f32.mrf.mxu1  ;;  %v724_v55 = vmul.f32 %v1257_v38, %v1257_v38 }
  0xf6   : > { %v673_v0 = vadd.f32 %v672_v61, %v539_v57  ;;  %v742_v2 = vadd.f32 %v741_v60, %v711_v59  ;;  %645 = vst [vmem:[%s1230_s11 + $0x58] sm:$0xff] %v1025_v62  ;;  %661 = vst [vmem:[%s1230_s11 + $0xd8] sm:$0xff] %v1282_v63  ;;  %v715_v15 = vmul.f32 %v1025_v62, %v1025_v62 }
  0xf7   : > { %v542_v3 = vpop.f32.mrf.mxu0  ;;  %v1287_v4 = vpop.f32.mrf.mxu1  ;;  %v725_v59 = vmul.f32 %v1267_v48, %v1267_v48 }
  0xf8   : > { %v743_v5 = vadd.f32 %v742_v2, %v712_v1  ;;  %643 = vst [vmem:[%s1230_s11 + $0x48] sm:$0xff] %v542_v3  ;;  %v674_v6 = vadd.f32 %v673_v0, %v542_v3  ;;  %v713_v7 = vmul.f32 %v542_v3, %v542_v3  ;;  %659 = vst [vmem:[%s1230_s11 + $0xc8] sm:$0xff] %v1287_v4 }
  0xf9   : > { %v1028_v8 = vpop.f32.mrf.mxu0  ;;  %v1292_v9 = vpop.f32.mrf.mxu1  ;;  %v728_v1 = vmul.f32 %v1277_v58, %v1277_v58 }
  0xfa   : > { %v675_v11 = vadd.f32 %v1024_v52, %v674_v6  ;;  %v744_v12 = vadd.f32 %v743_v5, %v713_v7  ;;  %648 = vst [vmem:[%s1230_s11 + $0x70] sm:$0xff] %v1028_v8  ;;  %664 = vst [vmem:[%s1230_s11 + $0xf0] sm:$0xff] %v1292_v9  ;;  %v718_v32 = vmul.f32 %v1028_v8, %v1028_v8 }
  0xfb   : > { %v555_v13 = vpop.f32.mrf.mxu0  ;;  %v619_v14 = vpop.f32.mrf.mxu1  ;;  %v729_v5 = vmul.f32 %v1287_v4, %v1287_v4 }
  0xfc   : > { %v745_v16 = vadd.f32 %v744_v12, %v714_v10  ;;  %646 = vst [vmem:[%s1230_s11 + $0x60] sm:$0xff] %v555_v13  ;;  %v676_v17 = vadd.f32 %v1025_v62, %v675_v11  ;;  %662 = vst [vmem:[%s1230_s11 + $0xe0] sm:$0xff] %v619_v14  ;;  %v716_v21 = vmul.f32 %v555_v13, %v555_v13 }
  0xfd   : > { %v1029_v18 = vpop.f32.mrf.mxu0  ;;  %v1299_v19 = vpop.f32.mrf.mxu1  ;;  %v732_v11 = vmul.f32 %v619_v14, %v619_v14 }
  0xfe   : > { %v677_v20 = vadd.f32 %v676_v17, %v555_v13  ;;  %v746_v23 = vadd.f32 %v745_v16, %v715_v15  ;;  %649 = vst [vmem:[%s1230_s11 + $0x78] sm:$0xff] %v1029_v18  ;;  %665 = vst [vmem:[%s1230_s11 + $0xf8] sm:$0xff] %v1299_v19  ;;  %v719_v36 = vmul.f32 %v1029_v18, %v1029_v18 }
  0xff   : > { %v558_v25 = vpop.f32.mrf.mxu0  ;;  %v622_v27 = vpop.f32.mrf.mxu1  ;;  %v734_v16 = vmul.f32 %v1292_v9, %v1292_v9 }
 0x100   : > { %v747_v29 = vadd.f32 %v746_v23, %v716_v21  ;;  %647 = vst [vmem:[%s1230_s11 + $0x68] sm:$0xff] %v558_v25  ;;  %v678_v30 = vadd.f32 %v677_v20, %v558_v25  ;;  %v717_v31 = vmul.f32 %v558_v25, %v558_v25  ;;  %663 = vst [vmem:[%s1230_s11 + $0xe8] sm:$0xff] %v622_v27 }
 0x102   : > { %v679_v34 = vadd.f32 %v1028_v8, %v678_v30  ;;  %v748_v35 = vadd.f32 %v747_v29, %v717_v31 }
 0x104   : > { %v680_v37 = vadd.f32 %v1029_v18, %v679_v34  ;;  %v749_v39 = vadd.f32 %v748_v35, %v718_v32  ;;  %v735_v18 = vmul.f32 %v1299_v19, %v1299_v19 }
 0x106   : > { %v750_v41 = vadd.f32 %v749_v39, %v719_v36  ;;  %v681_v42 = vadd.f32 %v680_v37, %v1237_v24 }
 0x108   : > { %v682_v44 = vadd.f32 %v681_v42, %v1247_v28  ;;  %v751_v46 = vadd.f32 %v750_v41, %v720_v40 }
 0x10a   : > { %v683_v49 = vadd.f32 %v1232_v22, %v682_v44  ;;  %v752_v50 = vadd.f32 %v751_v46, %v721_v45  ;;  %v726_v22 = vmul.f32 %v1252_v33, %v1252_v33 }
 0x10c   : > { %v753_v52 = vadd.f32 %v752_v50, %v722_v47  ;;  %v684_v54 = vadd.f32 %v1242_v26, %v683_v49  ;;  %v727_v26 = vmul.f32 %v1262_v43, %v1262_v43 }
 0x10e   : > { %v685_v24 = vadd.f32 %v684_v54, %v1257_v38  ;;  %v754_v56 = vadd.f32 %v753_v52, %v723_v51 }
 0x110   : > { %v755_v28 = vadd.f32 %v754_v56, %v724_v55  ;;  %v686_v57 = vadd.f32 %v685_v24, %v1267_v48 }
 0x112   : > { %v687_v60 = vadd.f32 %v1252_v33, %v686_v57  ;;  %v756_v61 = vadd.f32 %v755_v28, %v725_v59  ;;  %v730_v33 = vmul.f32 %v1272_v53, %v1272_v53 }
 0x114   : > { %v757_v62 = vadd.f32 %v756_v61, %v726_v22  ;;  %v688_v0 = vadd.f32 %v1262_v43, %v687_v60  ;;  %v731_v43 = vmul.f32 %v1282_v63, %v1282_v63 }
 0x116   : > { %v689_v38 = vadd.f32 %v688_v0, %v1277_v58  ;;  %v758_v2 = vadd.f32 %v757_v62, %v727_v26 }
 0x118   : > { %v759_v3 = vadd.f32 %v758_v2, %v728_v1  ;;  %v690_v48 = vadd.f32 %v689_v38, %v1287_v4  ;;  %v733_v4 = vmul.f32 %v622_v27, %v622_v27 }
 0x11a   : > { %v691_v6 = vadd.f32 %v1272_v53, %v690_v48  ;;  %v760_v7 = vadd.f32 %v759_v3, %v729_v5 }
 0x11c   : > { %v761_v8 = vadd.f32 %v760_v7, %v730_v33  ;;  %v692_v58 = vadd.f32 %v1282_v63, %v691_v6 }
 0x11e   : > { %v693_v10 = vadd.f32 %v692_v58, %v619_v14  ;;  %v762_v12 = vadd.f32 %v761_v8, %v731_v43 }
 0x120   : > { %v763_v13 = vadd.f32 %v762_v12, %v732_v11  ;;  %v694_v15 = vadd.f32 %v693_v10, %v622_v27 }
 0x122   : > { %v695_v53 = vadd.f32 %v1292_v9, %v694_v15  ;;  %v764_v17 = vadd.f32 %v763_v13, %v733_v4 }
 0x124   : > { %v696_v20 = vadd.f32 %v1299_v19, %v695_v53  ;;  %v765_v21 = vadd.f32 %v764_v17, %v734_v16 }
 0x126   : > { %v697_v63 = vrot.slane %v696_v20, 4  ;;  %v766_v23 = vadd.f32 %v765_v21, %v735_v18 }
 0x128   : > { %v698_v14 = vadd.f32 %v697_v63, %v696_v20  ;;  %v767_v25 = vrot.slane %v766_v23, 4 }
 0x12a   : > { %v699_v29 = vrot.slane %v698_v14, 2  ;;  %v768_v30 = vadd.f32 %v767_v25, %v766_v23 }
 0x12c   : > { %v700_v27 = vadd.f32 %v699_v29, %v698_v14  ;;  %v769_v31 = vrot.slane %v768_v30, 2 }
 0x12e   : > { %v701_v32 = vrot.slane %v700_v27, 1  ;;  %v770_v34 = vadd.f32 %v769_v31, %v768_v30 }
 0x130   : > { %v702_v9 = vadd.f32 %v701_v32, %v700_v27  ;;  %v771_v35 = vrot.slane %v770_v34, 1 }
 0x132   : > { %703 = vst [vmem:[%s264_s14] sm:$0x1] %v702_v9  ;;  %v772_v19 = vadd.f32 %v771_v35, %v770_v34 }
 0x134   : > { %773 = vst [vmem:[%s270_s21] sm:$0x1] %v772_v19 }
 0x135 PF: > { %s15_s17 = sadd.s32 1, %s1123_s17   ;;  %s1370_s15 = smov %s1119_s16 }
 0x136   : > { %p12_p6 = scmp.ge.s32.totalorder %s15_s17, 4   ;;  %s1371_s16 = smov %s1373_s18 }
 0x138   :  { %14 = sbr.rel (!%p12_p6) target bundleno = 2 (0x2), region = 85 }

// kernel: unet_forward.29
= control target key start
LH: loop header
LB: loop body
LE: loop exit
PB: predicated region body
PF: predicated region fallthrough
CT: control target
= control target key end

     0   :  { %vm129_vm0 = vcmask 60416   ;;  %s431_s0 = inlined_call_operand.vmem [shape: bf16[128,8], index: 0, kind: input, shape index: {}]   ;;  %s432_s1 = inlined_call_operand.vmem [shape: bf16[128,8], index: 1, kind: input, shape index: {}]   ;;  %s433_s2 = inlined_call_operand.vmem [shape: bf16[128,8], index: 2, kind: input, shape index: {}]   ;;  %s434_s3 = inlined_call_operand.vmem [shape: bf16[128,8], index: 3, kind: input, shape index: {}]   ;;  %s435_s4 = inlined_call_operand.vmem [shape: bf16[128,8], index: 4, kind: output, shape index: {}]  }
   0x1   :  { %v17_v0 = vld [vmem:[%s431_s0] sm:$0xf]  ;;  %v18_v5 = vld [vmem:[%s431_s0 + $0x4] sm:$0xf]  ;;  %v19_v11 = vld [vmem:[%s431_s0 + $0x8] sm:$0xf] }
   0x2   :  { %v33_v1 = vld [vmem:[%s432_s1] sm:$0xf]  ;;  %v34_v6 = vld [vmem:[%s432_s1 + $0x4] sm:$0xf]  ;;  %v35_v13 = vld [vmem:[%s432_s1 + $0x8] sm:$0xf] }
   0x3   :  { %v65_v2 = vld [vmem:[%s433_s2] sm:$0xf]  ;;  %v49_v3 = vmax.bf16 %v33_v1, %v17_v0  ;;  %v50_v8 = vmax.bf16 %v34_v6, %v18_v5  ;;  %v66_v9 = vld [vmem:[%s433_s2 + $0x4] sm:$0xf]  ;;  %v67_v14 = vld [vmem:[%s433_s2 + $0x8] sm:$0xf]  ;;  %v51_v17 = vmax.bf16 %v35_v13, %v19_v11 }
   0x4   :  { %v81_v4 = vld [vmem:[%s434_s3] sm:$0xf]  ;;  %v82_v10 = vld [vmem:[%s434_s3 + $0x4] sm:$0xf]  ;;  %v83_v15 = vld [vmem:[%s434_s3 + $0x8] sm:$0xf] }
   0x5   :  { %v97_v7 = vmax.bf16 %v81_v4, %v65_v2  ;;  %v98_v12 = vmax.bf16 %v82_v10, %v66_v9  ;;  %v99_v18 = vmax.bf16 %v83_v15, %v67_v14  ;;  %v20_v19 = vld [vmem:[%s431_s0 + $0xc] sm:$0xf]  ;;  %v21_v25 = vld [vmem:[%s431_s0 + $0x10] sm:$0xf]  ;;  %v22_v32 = vld [vmem:[%s431_s0 + $0x14] sm:$0xf] }
   0x6   :  { %v36_v20 = vld [vmem:[%s432_s1 + $0xc] sm:$0xf]  ;;  %v37_v26 = vld [vmem:[%s432_s1 + $0x10] sm:$0xf]  ;;  %v38_v34 = vld [vmem:[%s432_s1 + $0x14] sm:$0xf] }
   0x7   :  { %v113_v16 = vmax.bf16 %v97_v7, %v49_v3  ;;  %v68_v21 = vld [vmem:[%s433_s2 + $0xc] sm:$0xf]  ;;  %v114_v22 = vmax.bf16 %v98_v12, %v50_v8  ;;  %v52_v23 = vmax.bf16 %v36_v20, %v20_v19  ;;  %v115_v27 = vmax.bf16 %v99_v18, %v51_v17  ;;  %v69_v30 = vld [vmem:[%s433_s2 + $0x10] sm:$0xf]  ;;  %v70_v35 = vld [vmem:[%s433_s2 + $0x14] sm:$0xf] }
   0x8   :  { %v84_v24 = vld [vmem:[%s434_s3 + $0xc] sm:$0xf]  ;;  %v53_v29 = vmax.bf16 %v37_v26, %v21_v25  ;;  %v85_v31 = vld [vmem:[%s434_s3 + $0x10] sm:$0xf]  ;;  %v86_v36 = vld [vmem:[%s434_s3 + $0x14] sm:$0xf]  ;;  %v54_v38 = vmax.bf16 %v38_v34, %v22_v32 }
   0x9   :  { %130 = vst.msk [vmem:[%s435_s4] sm:$0xf] %vm129_vm0, %v113_v16  ;;  %v100_v28 = vmax.bf16 %v84_v24, %v68_v21  ;;  %131 = vst.msk [vmem:[%s435_s4 + $0x4] sm:$0xf] %vm129_vm0, %v114_v22  ;;  %v101_v33 = vmax.bf16 %v85_v31, %v69_v30  ;;  %v102_v39 = vmax.bf16 %v86_v36, %v70_v35  ;;  %v23_v40 = vld [vmem:[%s431_s0 + $0x18] sm:$0xf] }
   0xa   :  { %132 = vst.msk [vmem:[%s435_s4 + $0x8] sm:$0xf] %vm129_vm0, %v115_v27  ;;  %v39_v41 = vld [vmem:[%s432_s1 + $0x18] sm:$0xf]  ;;  %v24_v46 = vld [vmem:[%s431_s0 + $0x1c] sm:$0xf] }
   0xb   :  { %v116_v37 = vmax.bf16 %v100_v28, %v52_v23  ;;  %v71_v42 = vld [vmem:[%s433_s2 + $0x18] sm:$0xf]  ;;  %v117_v43 = vmax.bf16 %v101_v33, %v53_v29  ;;  %v55_v44 = vmax.bf16 %v39_v41, %v23_v40  ;;  %v40_v47 = vld [vmem:[%s432_s1 + $0x1c] sm:$0xf]  ;;  %v118_v48 = vmax.bf16 %v102_v39, %v54_v38  ;;  %v25_v53 = vld [vmem:[%s431_s0 + $0x20] sm:$0xf] }
   0xc   :  { %v87_v45 = vld [vmem:[%s434_s3 + $0x18] sm:$0xf]  ;;  %v56_v50 = vmax.bf16 %v40_v47, %v24_v46  ;;  %v72_v51 = vld [vmem:[%s433_s2 + $0x1c] sm:$0xf]  ;;  %v41_v55 = vld [vmem:[%s432_s1 + $0x20] sm:$0xf] }
   0xd   :  { %133 = vst.msk [vmem:[%s435_s4 + $0xc] sm:$0xf] %vm129_vm0, %v116_v37  ;;  %v103_v49 = vmax.bf16 %v87_v45, %v71_v42  ;;  %v88_v52 = vld [vmem:[%s434_s3 + $0x1c] sm:$0xf]  ;;  %134 = vst.msk [vmem:[%s435_s4 + $0x10] sm:$0xf] %vm129_vm0, %v117_v43  ;;  %v57_v59 = vmax.bf16 %v41_v55, %v25_v53 }
   0xe   :  { %v104_v54 = vmax.bf16 %v88_v52, %v72_v51  ;;  %v73_v56 = vld [vmem:[%s433_s2 + $0x20] sm:$0xf]  ;;  %135 = vst.msk [vmem:[%s435_s4 + $0x14] sm:$0xf] %vm129_vm0, %v118_v48  ;;  %v26_v61 = vld [vmem:[%s431_s0 + $0x24] sm:$0xf] }
   0xf   :  { %v89_v57 = vld [vmem:[%s434_s3 + $0x20] sm:$0xf]  ;;  %v119_v58 = vmax.bf16 %v103_v49, %v55_v44  ;;  %v42_v62 = vld [vmem:[%s432_s1 + $0x24] sm:$0xf]  ;;  %v27_v3 = vld [vmem:[%s431_s0 + $0x28] sm:$0xf] }
  0x10   :  { %v105_v60 = vmax.bf16 %v89_v57, %v73_v56  ;;  %v74_v63 = vld [vmem:[%s433_s2 + $0x24] sm:$0xf]  ;;  %v120_v0 = vmax.bf16 %v104_v54, %v56_v50  ;;  %v58_v1 = vmax.bf16 %v42_v62, %v26_v61  ;;  %v43_v4 = vld [vmem:[%s432_s1 + $0x28] sm:$0xf]  ;;  %v28_v10 = vld [vmem:[%s431_s0 + $0x2c] sm:$0xf] }
  0x11   :  { %v90_v2 = vld [vmem:[%s434_s3 + $0x24] sm:$0xf]  ;;  %136 = vst.msk [vmem:[%s435_s4 + $0x18] sm:$0xf] %vm129_vm0, %v119_v58  ;;  %v59_v7 = vmax.bf16 %v43_v4, %v27_v3  ;;  %v75_v8 = vld [vmem:[%s433_s2 + $0x28] sm:$0xf] }
  0x12   :  { %v121_v5 = vmax.bf16 %v105_v60, %v57_v59  ;;  %v106_v6 = vmax.bf16 %v90_v2, %v74_v63  ;;  %v91_v9 = vld [vmem:[%s434_s3 + $0x28] sm:$0xf]  ;;  %137 = vst.msk [vmem:[%s435_s4 + $0x1c] sm:$0xf] %vm129_vm0, %v120_v0  ;;  %v44_v12 = vld [vmem:[%s432_s1 + $0x2c] sm:$0xf] }
  0x13   :  { %v107_v11 = vmax.bf16 %v91_v9, %v75_v8  ;;  %v76_v13 = vld [vmem:[%s433_s2 + $0x2c] sm:$0xf]  ;;  %v60_v16 = vmax.bf16 %v44_v12, %v28_v10  ;;  %v29_v18 = vld [vmem:[%s431_s0 + $0x30] sm:$0xf]  ;;  %v30_v24 = vld [vmem:[%s431_s0 + $0x34] sm:$0xf] }
  0x14   :  { %v92_v14 = vld [vmem:[%s434_s3 + $0x2c] sm:$0xf]  ;;  %138 = vst.msk [vmem:[%s435_s4 + $0x20] sm:$0xf] %vm129_vm0, %v121_v5  ;;  %v122_v15 = vmax.bf16 %v106_v6, %v58_v1  ;;  %v45_v19 = vld [vmem:[%s432_s1 + $0x30] sm:$0xf] }
  0x15   :  { %v108_v17 = vmax.bf16 %v92_v14, %v76_v13  ;;  %v77_v20 = vld [vmem:[%s433_s2 + $0x30] sm:$0xf]  ;;  %v123_v21 = vmax.bf16 %v107_v11, %v59_v7  ;;  %v61_v22 = vmax.bf16 %v45_v19, %v29_v18  ;;  %v46_v25 = vld [vmem:[%s432_s1 + $0x34] sm:$0xf]  ;;  %v31_v31 = vld [vmem:[%s431_s0 + $0x38] sm:$0xf] }
  0x16   :  { %v93_v23 = vld [vmem:[%s434_s3 + $0x30] sm:$0xf]  ;;  %139 = vst.msk [vmem:[%s435_s4 + $0x24] sm:$0xf] %vm129_vm0, %v122_v15  ;;  %v62_v28 = vmax.bf16 %v46_v25, %v30_v24  ;;  %v78_v29 = vld [vmem:[%s433_s2 + $0x34] sm:$0xf] }
  0x17   :  { %v124_v26 = vmax.bf16 %v108_v17, %v60_v16  ;;  %v109_v27 = vmax.bf16 %v93_v23, %v77_v20  ;;  %v94_v30 = vld [vmem:[%s434_s3 + $0x34] sm:$0xf]  ;;  %140 = vst.msk [vmem:[%s435_s4 + $0x28] sm:$0xf] %vm129_vm0, %v123_v21  ;;  %v47_v33 = vld [vmem:[%s432_s1 + $0x38] sm:$0xf] }
  0x18   :  { %v110_v32 = vmax.bf16 %v94_v30, %v78_v29  ;;  %v79_v34 = vld [vmem:[%s433_s2 + $0x38] sm:$0xf]  ;;  %v63_v37 = vmax.bf16 %v47_v33, %v31_v31  ;;  %v32_v39 = vld [vmem:[%s431_s0 + $0x3c] sm:$0xf] }
  0x19   :  { %v95_v35 = vld [vmem:[%s434_s3 + $0x38] sm:$0xf]  ;;  %141 = vst.msk [vmem:[%s435_s4 + $0x2c] sm:$0xf] %vm129_vm0, %v124_v26  ;;  %v125_v36 = vmax.bf16 %v109_v27, %v61_v22  ;;  %v48_v40 = vld [vmem:[%s432_s1 + $0x3c] sm:$0xf] }
  0x1a   :  { %v111_v38 = vmax.bf16 %v95_v35, %v79_v34  ;;  %v80_v41 = vld [vmem:[%s433_s2 + $0x3c] sm:$0xf]  ;;  %v126_v42 = vmax.bf16 %v110_v32, %v62_v28  ;;  %v64_v43 = vmax.bf16 %v48_v40, %v32_v39 }
  0x1b   :  { %v96_v44 = vld [vmem:[%s434_s3 + $0x3c] sm:$0xf]  ;;  %142 = vst.msk [vmem:[%s435_s4 + $0x30] sm:$0xf] %vm129_vm0, %v125_v36 }
  0x1c   :  { %v127_v45 = vmax.bf16 %v111_v38, %v63_v37  ;;  %v112_v46 = vmax.bf16 %v96_v44, %v80_v41  ;;  %143 = vst.msk [vmem:[%s435_s4 + $0x34] sm:$0xf] %vm129_vm0, %v126_v42 }
  0x1e   :  { %144 = vst.msk [vmem:[%s435_s4 + $0x38] sm:$0xf] %vm129_vm0, %v127_v45  ;;  %v128_v47 = vmax.bf16 %v112_v46, %v64_v43 }
  0x20   :  { %145 = vst.msk [vmem:[%s435_s4 + $0x3c] sm:$0xf] %vm129_vm0, %v128_v47 }

// kernel: unet_forward.31
= control target key start
LH: loop header
LB: loop body
LE: loop exit
PB: predicated region body
PF: predicated region fallthrough
CT: control target
= control target key end

     0   :  { %s391_s0 = inlined_call_operand.vmem [shape: f32[128,128], index: 0, kind: input, shape index: {}]   ;;  %s392_s1 = inlined_call_operand.vmem [shape: f32[1,128], index: 1, kind: input, shape index: {}]   ;;  %s393_s2 = inlined_call_operand.vmem [shape: f32[1,128], index: 2, kind: input, shape index: {}]   ;;  %s394_s3 = inlined_call_operand.vmem [shape: bf16[128,128], index: 3, kind: output, shape index: {}]  }
   0x1   :  { %v14_v0 = vld [vmem:[%s391_s0] sm:$0xff]  ;;  %v15_v1 = vld [vmem:[%s391_s0 + $0x8] sm:$0xff]  ;;  %v16_v6 = vld [vmem:[%s391_s0 + $0x10] sm:$0xff] }
   0x2   :  { %v286_v2 = vld [vmem:[%s392_s1] ss:$0 sm:$0xff]  ;;  %v17_v7 = vld [vmem:[%s391_s0 + $0x18] sm:$0xff]  ;;  %v19_v11 = vld [vmem:[%s391_s0 + $0x28] sm:$0xff] }
   0x3   :  { %v37_v3 = vmul.f32 %v286_v2, %v14_v0  ;;  %v38_v4 = vmul.f32 %v286_v2, %v15_v1  ;;  %v293_v5 = vld [vmem:[%s393_s2] ss:$0 sm:$0xff]  ;;  %v39_v8 = vmul.f32 %v286_v2, %v16_v6  ;;  %v40_v9 = vmul.f32 %v286_v2, %v17_v7  ;;  %v20_v12 = vld [vmem:[%s391_s0 + $0x30] sm:$0xff]  ;;  %v21_v17 = vld [vmem:[%s391_s0 + $0x38] sm:$0xff] }
   0x4   :  { %v18_v10 = vld [vmem:[%s391_s0 + $0x20] sm:$0xff]  ;;  %v42_v16 = vmul.f32 %v286_v2, %v19_v11  ;;  %v43_v20 = vmul.f32 %v286_v2, %v20_v12  ;;  %v44_v21 = vmul.f32 %v286_v2, %v21_v17  ;;  %v23_v27 = vld [vmem:[%s391_s0 + $0x48] sm:$0xff]  ;;  %v24_v32 = vld [vmem:[%s391_s0 + $0x50] sm:$0xff] }
   0x5   :  { %v60_v13 = vadd.f32 %v293_v5, %v37_v3  ;;  %v61_v14 = vadd.f32 %v293_v5, %v38_v4  ;;  %v41_v15 = vmul.f32 %v286_v2, %v18_v10  ;;  %v62_v18 = vadd.f32 %v293_v5, %v39_v8  ;;  %v22_v22 = vld [vmem:[%s391_s0 + $0x40] sm:$0xff]  ;;  %v25_v33 = vld [vmem:[%s391_s0 + $0x58] sm:$0xff]  ;;  %v27_v39 = vld [vmem:[%s391_s0 + $0x68] sm:$0xff] }
   0x6   :  { %v63_v19 = vadd.f32 %v293_v5, %v40_v9  ;;  %v65_v26 = vadd.f32 %v293_v5, %v42_v16  ;;  %v66_v30 = vadd.f32 %v293_v5, %v43_v20  ;;  %v67_v31 = vadd.f32 %v293_v5, %v44_v21  ;;  %v26_v38 = vld [vmem:[%s391_s0 + $0x60] sm:$0xff]  ;;  %v28_v44 = vld [vmem:[%s391_s0 + $0x70] sm:$0xff]  ;;  %v29_v49 = vld [vmem:[%s391_s0 + $0x78] sm:$0xff] }
   0x7   :  { %v76_v23 = vmax.f32 %v60_v13, 0.0  ;;  %v77_v24 = vmax.f32 %v61_v14, 0.0  ;;  %v64_v25 = vadd.f32 %v293_v5, %v41_v15  ;;  %v78_v28 = vmax.f32 %v62_v18, 0.0 }
   0x8   :  { %v79_v29 = vmax.f32 %v63_v19, 0.0  ;;  %v81_v36 = vmax.f32 %v65_v26, 0.0  ;;  %v45_v37 = vmul.f32 %v286_v2, %v22_v22  ;;  %v82_v41 = vmax.f32 %v66_v30, 0.0 }
   0x9   :  { %v213_v34 = vpack.c.bf16 %v77_v24, %v76_v23  ;;  %v80_v35 = vmax.f32 %v64_v25, 0.0  ;;  %v83_v42 = vmax.f32 %v67_v31, 0.0  ;;  %v46_v43 = vmul.f32 %v286_v2, %v23_v27 }
   0xa   :  { %v218_v40 = vpack.c.bf16 %v79_v29, %v78_v28  ;;  %v68_v46 = vadd.f32 %v293_v5, %v45_v37  ;;  %v47_v47 = vmul.f32 %v286_v2, %v24_v32  ;;  %v48_v48 = vmul.f32 %v286_v2, %v25_v33 }
   0xb   :  { %214 = vst [vmem:[%s394_s3] sm:$0xff] %v213_v34   ;;  %v223_v45 = vpack.c.bf16 %v81_v36, %v80_v35  ;;  %v228_v50 = vpack.c.bf16 %v83_v42, %v82_v41  ;;  %v69_v51 = vadd.f32 %v293_v5, %v46_v43  ;;  %v49_v52 = vmul.f32 %v286_v2, %v26_v38 }
   0xc   :  { %250 = vst [vmem:[%s394_s3 + $0x8] sm:$0xff] %v218_v40   ;;  %v50_v53 = vmul.f32 %v286_v2, %v27_v39  ;;  %v84_v54 = vmax.f32 %v68_v46, 0.0  ;;  %v70_v55 = vadd.f32 %v293_v5, %v47_v47  ;;  %v71_v56 = vadd.f32 %v293_v5, %v48_v48 }
   0xd   :  { %251 = vst [vmem:[%s394_s3 + $0x10] sm:$0xff] %v223_v45   ;;  %v51_v57 = vmul.f32 %v286_v2, %v28_v44  ;;  %252 = vst [vmem:[%s394_s3 + $0x18] sm:$0xff] %v228_v50   ;;  %v85_v58 = vmax.f32 %v69_v51, 0.0  ;;  %v72_v59 = vadd.f32 %v293_v5, %v49_v52  ;;  %v52_v61 = vmul.f32 %v286_v2, %v29_v49 }
   0xe   :  { %v73_v60 = vadd.f32 %v293_v5, %v50_v53  ;;  %v86_v62 = vmax.f32 %v70_v55, 0.0  ;;  %v87_v63 = vmax.f32 %v71_v56, 0.0 }
   0xf   :  { %v74_v0 = vadd.f32 %v293_v5, %v51_v57  ;;  %v233_v1 = vpack.c.bf16 %v85_v58, %v84_v54  ;;  %v88_v3 = vmax.f32 %v72_v59, 0.0  ;;  %v75_v6 = vadd.f32 %v293_v5, %v52_v61 }
  0x10   :  { %v89_v4 = vmax.f32 %v73_v60, 0.0  ;;  %v238_v7 = vpack.c.bf16 %v87_v63, %v86_v62 }
  0x11   :  { %v90_v8 = vmax.f32 %v74_v0, 0.0  ;;  %253 = vst [vmem:[%s394_s3 + $0x20] sm:$0xff] %v233_v1   ;;  %v91_v10 = vmax.f32 %v75_v6, 0.0 }
  0x12   :  { %v243_v9 = vpack.c.bf16 %v89_v4, %v88_v3  ;;  %254 = vst [vmem:[%s394_s3 + $0x28] sm:$0xff] %v238_v7  }
  0x13   :  { %v248_v2 = vpack.c.bf16 %v91_v10, %v90_v8 }
  0x14   :  { %255 = vst [vmem:[%s394_s3 + $0x30] sm:$0xff] %v243_v9  }
  0x15   :  { %256 = vst [vmem:[%s394_s3 + $0x38] sm:$0xff] %v248_v2  }

// kernel: unet_forward.30
= control target key start
LH: loop header
LB: loop body
LE: loop exit
PB: predicated region body
PF: predicated region fallthrough
CT: control target
= control target key end

     0   :  { %vm111_vm0 = vcmask 654336   ;;  %s530_s1 = inlined_call_operand.vmem [shape: bf16[80,128], index: 1, kind: input, shape index: {}]   ;;  %s531_s0 = inlined_call_operand.vmem [shape: bf16[128,80], index: 0, kind: input, shape index: {}]   ;;  %s532_s2 = inlined_call_operand.vmem [shape: f32[128,128], index: 2, kind: output, shape index: {0}]   ;;  %s533_s3 = inlined_call_operand.vmem [shape: f32[1,1,128], index: 3, kind: output, shape index: {1}]   ;;  %s534_s4 = inlined_call_operand.vmem [shape: f32[1,1,128], index: 4, kind: output, shape index: {2}]  }
   0x1   :  { %v391_v0 = vld [vmem:[%s530_s1 + $0x20] sm:$0xff]   ;;  %v392_v1 = vld [vmem:[%s530_s1 + $0x18] sm:$0xff]   ;;  %v393_v2 = vld [vmem:[%s530_s1 + $0x10] sm:$0xff]  }
   0x2   :  { %355 = vmatprep.subr.bf16.mxu0 %v391_v0  ;;  %381 = vmatprep.subr.bf16.mxu1 %v391_v0  ;;  %v396_v3 = vld [vmem:[%s531_s0] sm:$0xff]   ;;  %v394_v4 = vld [vmem:[%s530_s1 + $0x8] sm:$0xff]   ;;  %v398_v9 = vld [vmem:[%s531_s0 + $0x10] sm:$0xff]  }
   0x3   :  { %356 = vmatpush3.bf16.msra.mxu0 %v391_v0  ;;  %386 = vmatpush3.bf16.msra.mxu1 %v391_v0  ;;  %v400_v5 = vld [vmem:[%s531_s0 + $0x20] sm:$0xff]   ;;  %v397_v7 = vld [vmem:[%s531_s0 + $0x8] sm:$0xff]   ;;  %v402_v10 = vld [vmem:[%s531_s0 + $0x30] sm:$0xff]  }
   0x4   :  { %357 = vmatprep.subr.bf16.mxu0 %v392_v1  ;;  %382 = vmatprep.subr.bf16.mxu1 %v392_v1  ;;  %v395_v6 = vld [vmem:[%s530_s1] sm:$0xff]   ;;  %v401_v8 = vld [vmem:[%s531_s0 + $0x28] sm:$0xff]   ;;  %v399_v11 = vld [vmem:[%s531_s0 + $0x18] sm:$0xff]  }
   0x5   :  { %365 = vmatprep.mubr.msk.bf16.mxu0 %vm111_vm0, %v396_v3  ;;  %373 = vmatprep.mubr.msk.bf16.mxu1 %vm111_vm0, %v400_v5  ;;  %v403_v12 = vld [vmem:[%s531_s0 + $0x38] sm:$0xff]  }
   0x7   :  { %358 = vmatpush3.bf16.msra.mxu0 %v392_v1  ;;  %387 = vmatpush3.bf16.msra.mxu1 %v392_v1 }
   0x8   :  { %359 = vmatprep.subr.bf16.mxu0 %v393_v2  ;;  %383 = vmatprep.subr.bf16.mxu1 %v393_v2 }
   0xb   :  { %360 = vmatpush3.bf16.msra.mxu0 %v393_v2  ;;  %388 = vmatpush3.bf16.msra.mxu1 %v393_v2 }
   0xc   :  { %361 = vmatprep.subr.bf16.mxu0 %v394_v4  ;;  %384 = vmatprep.subr.bf16.mxu1 %v394_v4 }
   0xf   :  { %362 = vmatpush3.bf16.msra.mxu0 %v394_v4  ;;  %389 = vmatpush3.bf16.msra.mxu1 %v394_v4 }
  0x10   :  { %363 = vmatprep.subr.bf16.mxu0 %v395_v6  ;;  %385 = vmatprep.subr.bf16.mxu1 %v395_v6 }
  0x13   :  { %364 = vmatpush3.bf16.msra.mxu0 %v395_v6  ;;  %390 = vmatpush3.bf16.msra.mxu1 %v395_v6 }
  0x16   :  { %366 = vmatmul.mubr.msk.bf16.vlgmr.msra.gmra.mxu0 %vm111_vm0, %v397_v7  ;;  %374 = vmatmul.mubr.msk.bf16.vlgmr.msra.gmra.mxu1 %vm111_vm0, %v401_v8 }
  0x17   :  { %369 = vmatprep.mubr.msk.bf16.mxu0 %vm111_vm0, %v398_v9  ;;  %377 = vmatprep.mubr.msk.bf16.mxu1 %vm111_vm0, %v402_v10 }
  0x1e   :  { %370 = vmatmul.mubr.msk.bf16.gmra.mxu0 %vm111_vm0, %v399_v11  ;;  %378 = vmatmul.mubr.msk.bf16.gmra.mxu1 %vm111_vm0, %v403_v12 }
  0xd6   :  { %v367_v13 = vpop.f32.mrf.mxu0  ;;  %v375_v14 = vpop.f32.mrf.mxu1 }
  0xd7   :  { %235 = vst [vmem:[%s532_s2 + $0x10] sm:$0xff] %v367_v13  ;;  %243 = vst [vmem:[%s532_s2 + $0x50] sm:$0xff] %v375_v14  ;;  %v273_v26 = vmul.f32 %v367_v13, %v367_v13  ;;  %v281_v56 = vmul.f32 %v375_v14, %v375_v14 }
  0xd8   :  { %v170_v15 = vpop.f32.mrf.mxu0  ;;  %v202_v16 = vpop.f32.mrf.mxu1 }
  0xd9   :  { %233 = vst [vmem:[%s532_s2] sm:$0xff] %v170_v15  ;;  %241 = vst [vmem:[%s532_s2 + $0x40] sm:$0xff] %v202_v16  ;;  %v271_v21 = vmul.f32 %v170_v15, %v170_v15  ;;  %v279_v50 = vmul.f32 %v202_v16, %v202_v16 }
  0xda   :  { %v368_v17 = vpop.f32.mrf.mxu0  ;;  %v376_v18 = vpop.f32.mrf.mxu1 }
  0xdb   :  { %236 = vst [vmem:[%s532_s2 + $0x18] sm:$0xff] %v368_v17  ;;  %244 = vst [vmem:[%s532_s2 + $0x58] sm:$0xff] %v376_v18  ;;  %v274_v31 = vmul.f32 %v368_v17, %v368_v17  ;;  %v282_v59 = vmul.f32 %v376_v18, %v376_v18 }
  0xdc   :  { %v173_v19 = vpop.f32.mrf.mxu0  ;;  %v205_v20 = vpop.f32.mrf.mxu1 }
  0xdd   :  { %234 = vst [vmem:[%s532_s2 + $0x8] sm:$0xff] %v173_v19  ;;  %v249_v22 = vadd.f32 %v173_v19, %v170_v15  ;;  %v272_v23 = vmul.f32 %v173_v19, %v173_v19  ;;  %242 = vst [vmem:[%s532_s2 + $0x48] sm:$0xff] %v205_v20  ;;  %v280_v54 = vmul.f32 %v205_v20, %v205_v20 }
  0xde   :  { %v371_v24 = vpop.f32.mrf.mxu0  ;;  %v379_v25 = vpop.f32.mrf.mxu1 }
  0xdf   :  { %v250_v27 = vadd.f32 %v367_v13, %v249_v22  ;;  %v287_v28 = vadd.f32 %v272_v23, %v271_v21  ;;  %239 = vst [vmem:[%s532_s2 + $0x30] sm:$0xff] %v371_v24  ;;  %247 = vst [vmem:[%s532_s2 + $0x70] sm:$0xff] %v379_v25  ;;  %v277_v44 = vmul.f32 %v371_v24, %v371_v24 }
  0xe0   :  { %v186_v29 = vpop.f32.mrf.mxu0  ;;  %v218_v30 = vpop.f32.mrf.mxu1  ;;  %v285_v4 = vmul.f32 %v379_v25, %v379_v25 }
  0xe1   :  { %v288_v32 = vadd.f32 %v287_v28, %v273_v26  ;;  %237 = vst [vmem:[%s532_s2 + $0x20] sm:$0xff] %v186_v29  ;;  %v251_v33 = vadd.f32 %v368_v17, %v250_v27  ;;  %245 = vst [vmem:[%s532_s2 + $0x60] sm:$0xff] %v218_v30  ;;  %v275_v37 = vmul.f32 %v186_v29, %v186_v29 }
  0xe2   :  { %v372_v34 = vpop.f32.mrf.mxu0  ;;  %v380_v35 = vpop.f32.mrf.mxu1  ;;  %v283_v63 = vmul.f32 %v218_v30, %v218_v30 }
  0xe3   :  { %v252_v36 = vadd.f32 %v251_v33, %v186_v29  ;;  %v289_v38 = vadd.f32 %v288_v32, %v274_v31  ;;  %240 = vst [vmem:[%s532_s2 + $0x38] sm:$0xff] %v372_v34  ;;  %248 = vst [vmem:[%s532_s2 + $0x78] sm:$0xff] %v380_v35  ;;  %v278_v47 = vmul.f32 %v372_v34, %v372_v34 }
  0xe4   :  { %v189_v39 = vpop.f32.mrf.mxu0  ;;  %v221_v40 = vpop.f32.mrf.mxu1  ;;  %v286_v7 = vmul.f32 %v380_v35, %v380_v35 }
  0xe5   :  { %v290_v41 = vadd.f32 %v289_v38, %v275_v37  ;;  %238 = vst [vmem:[%s532_s2 + $0x28] sm:$0xff] %v189_v39  ;;  %v253_v42 = vadd.f32 %v252_v36, %v189_v39  ;;  %v276_v43 = vmul.f32 %v189_v39, %v189_v39  ;;  %246 = vst [vmem:[%s532_s2 + $0x68] sm:$0xff] %v221_v40 }
  0xe6   :  { %v284_v3 = vmul.f32 %v221_v40, %v221_v40 }
  0xe7   :  { %v254_v45 = vadd.f32 %v371_v24, %v253_v42  ;;  %v291_v46 = vadd.f32 %v290_v41, %v276_v43 }
  0xe9   :  { %v255_v48 = vadd.f32 %v372_v34, %v254_v45  ;;  %v292_v49 = vadd.f32 %v291_v46, %v277_v44 }
  0xeb   :  { %v293_v51 = vadd.f32 %v292_v49, %v278_v47  ;;  %v256_v52 = vadd.f32 %v255_v48, %v202_v16 }
  0xed   :  { %v257_v53 = vadd.f32 %v256_v52, %v205_v20  ;;  %v294_v55 = vadd.f32 %v293_v51, %v279_v50 }
  0xef   :  { %v258_v57 = vadd.f32 %v375_v14, %v257_v53  ;;  %v295_v58 = vadd.f32 %v294_v55, %v280_v54 }
  0xf1   :  { %v296_v60 = vadd.f32 %v295_v58, %v281_v56  ;;  %v259_v61 = vadd.f32 %v376_v18, %v258_v57 }
  0xf3   :  { %v260_v62 = vadd.f32 %v259_v61, %v218_v30  ;;  %v297_v0 = vadd.f32 %v296_v60, %v282_v59 }
  0xf5   :  { %v298_v1 = vadd.f32 %v297_v0, %v283_v63  ;;  %v261_v2 = vadd.f32 %v260_v62, %v221_v40 }
  0xf7   :  { %v262_v5 = vadd.f32 %v379_v25, %v261_v2  ;;  %v299_v6 = vadd.f32 %v298_v1, %v284_v3 }
  0xf9   :  { %v263_v8 = vadd.f32 %v380_v35, %v262_v5  ;;  %v300_v9 = vadd.f32 %v299_v6, %v285_v4 }
  0xfb   :  { %v264_v10 = vrot.slane %v263_v8, 4  ;;  %v301_v11 = vadd.f32 %v300_v9, %v286_v7 }
  0xfd   :  { %v265_v12 = vadd.f32 %v264_v10, %v263_v8  ;;  %v302_v13 = vrot.slane %v301_v11, 4 }
  0xff   :  { %v266_v14 = vrot.slane %v265_v12, 2  ;;  %v303_v15 = vadd.f32 %v302_v13, %v301_v11 }
 0x101   :  { %v267_v16 = vadd.f32 %v266_v14, %v265_v12  ;;  %v304_v17 = vrot.slane %v303_v15, 2 }
 0x103   :  { %v268_v18 = vrot.slane %v267_v16, 1  ;;  %v305_v19 = vadd.f32 %v304_v17, %v303_v15 }
 0x105   :  { %v269_v20 = vadd.f32 %v268_v18, %v267_v16  ;;  %v306_v21 = vrot.slane %v305_v19, 1 }
 0x107   :  { %270 = vst [vmem:[%s533_s3] sm:$0x1] %v269_v20  ;;  %v307_v22 = vadd.f32 %v306_v21, %v305_v19 }
 0x109   :  { %308 = vst [vmem:[%s534_s4] sm:$0x1] %v307_v22 }

// kernel: unet_forward.32
= control target key start
LH: loop header
LB: loop body
LE: loop exit
PB: predicated region body
PF: predicated region fallthrough
CT: control target
= control target key end

     0   :  { %v470_v0 = vmov 0   ;;  %vm175_vm0 = vcmask 130048   ;;  %s651_s1 = inlined_call_operand.vmem [shape: bf16[144,128], index: 1, kind: input, shape index: {}]   ;;  %s652_s0 = inlined_call_operand.vmem [shape: bf16[128,144], index: 0, kind: input, shape index: {}]   ;;  %s653_s2 = inlined_call_operand.vmem [shape: f32[128,128], index: 2, kind: output, shape index: {0}]   ;;  %s654_s3 = inlined_call_operand.vmem [shape: f32[1,1,128], index: 3, kind: output, shape index: {1}]   ;;  %s655_s4 = inlined_call_operand.vmem [shape: f32[1,1,128], index: 4, kind: output, shape index: {2}]  }
   0x1   :  { %200 = vmatprep.subr.bf16.mxu0 %v470_v0  ;;  %v437_v1 = vld [vmem:[%s651_s1 + $0x38] sm:$0xff]   ;;  %418 = vmatprep.subr.bf16.mxu1 %v470_v0  ;;  %v438_v2 = vld [vmem:[%s651_s1 + $0x30] sm:$0xff]   ;;  %v439_v3 = vld [vmem:[%s651_s1 + $0x28] sm:$0xff]  }
   0x2   :  { %201 = vmatpush1.bf16.msra.mxu0 %v437_v1  ;;  %427 = vmatpush1.bf16.msra.mxu1 %v437_v1  ;;  %v440_v4 = vld [vmem:[%s651_s1 + $0x20] sm:$0xff]   ;;  %v441_v7 = vld [vmem:[%s651_s1 + $0x18] sm:$0xff]   ;;  %v442_v8 = vld [vmem:[%s651_s1 + $0x10] sm:$0xff]  }
   0x3   :  { %202 = vmatprep.subr.bf16.mxu0 %v470_v0  ;;  %419 = vmatprep.subr.bf16.mxu1 %v470_v0  ;;  %v448_v5 = vld [vmem:[%s652_s0 + $0x4] ss:$8 sps:$4 sm:$0xff]   ;;  %v446_v12 = vld [vmem:[%s652_s0] ss:$8 sps:$4 sm:$0xff]   ;;  %v449_v14 = vld [vmem:[%s652_s0 + $0x14] ss:$8 sps:$4 sm:$0xff]  }
   0x4   :  { %410 = vmatprep.mubr.msk.bf16.mxu0 %vm175_vm0, %v448_v5  ;;  %v454_v6 = vld [vmem:[%s652_s0 + $0x44] ss:$8 sps:$4 sm:$0xff]   ;;  %v452_v13 = vld [vmem:[%s652_s0 + $0x40] ss:$8 sps:$4 sm:$0xff]   ;;  %v458_v15 = vld [vmem:[%s652_s0 + $0x54] ss:$8 sps:$4 sm:$0xff]  }
   0x5   :  { %414 = vmatprep.mubr.msk.bf16.mxu1 %vm175_vm0, %v454_v6  ;;  %v443_v9 = vld [vmem:[%s651_s1 + $0x8] sm:$0xff]   ;;  %v444_v10 = vld [vmem:[%s651_s1] sm:$0xff]   ;;  %v451_v16 = vld [vmem:[%s652_s0 + $0x10] ss:$8 sps:$4 sm:$0xff]  }
   0x6   :  { %203 = vmatpush1.bf16.msra.mxu0 %v438_v2  ;;  %428 = vmatpush1.bf16.msra.mxu1 %v438_v2  ;;  %v445_v11 = vld [vmem:[%s651_s1 + $0x40] sm:$0xff]   ;;  %v460_v17 = vld [vmem:[%s652_s0 + $0x50] ss:$8 sps:$4 sm:$0xff]   ;;  %v461_v22 = vld [vmem:[%s652_s0 + $0x34] ss:$8 sps:$4 sm:$0xff]  }
   0x7   :  { %204 = vmatprep.subr.bf16.mxu0 %v470_v0  ;;  %420 = vmatprep.subr.bf16.mxu1 %v470_v0  ;;  %v455_v18 = vld [vmem:[%s652_s0 + $0x24] ss:$8 sps:$4 sm:$0xff]   ;;  %v457_v20 = vld [vmem:[%s652_s0 + $0x20] ss:$8 sps:$4 sm:$0xff]   ;;  %v467_v23 = vld [vmem:[%s652_s0 + $0x74] ss:$8 sps:$4 sm:$0xff]  }
   0x8   :  { %v464_v19 = vld [vmem:[%s652_s0 + $0x64] ss:$8 sps:$4 sm:$0xff]   ;;  %v466_v21 = vld [vmem:[%s652_s0 + $0x60] ss:$8 sps:$4 sm:$0xff]   ;;  %v463_v24 = vld [vmem:[%s652_s0 + $0x30] ss:$8 sps:$4 sm:$0xff]  }
   0x9   :  { %v469_v25 = vld [vmem:[%s652_s0 + $0x70] ss:$8 sps:$4 sm:$0xff]  }
   0xa   :  { %205 = vmatpush1.bf16.msra.mxu0 %v439_v3  ;;  %429 = vmatpush1.bf16.msra.mxu1 %v439_v3 }
   0xb   :  { %206 = vmatprep.subr.bf16.mxu0 %v470_v0  ;;  %421 = vmatprep.subr.bf16.mxu1 %v470_v0 }
   0xe   :  { %207 = vmatpush1.bf16.msra.mxu0 %v440_v4  ;;  %430 = vmatpush1.bf16.msra.mxu1 %v440_v4 }
   0xf   :  { %208 = vmatprep.subr.bf16.mxu0 %v470_v0  ;;  %422 = vmatprep.subr.bf16.mxu1 %v470_v0 }
  0x12   :  { %209 = vmatpush1.bf16.msra.mxu0 %v441_v7  ;;  %431 = vmatpush1.bf16.msra.mxu1 %v441_v7 }
  0x13   :  { %210 = vmatprep.subr.bf16.mxu0 %v470_v0  ;;  %423 = vmatprep.subr.bf16.mxu1 %v470_v0 }
  0x16   :  { %211 = vmatpush1.bf16.msra.mxu0 %v442_v8  ;;  %432 = vmatpush1.bf16.msra.mxu1 %v442_v8 }
  0x17   :  { %212 = vmatprep.subr.bf16.mxu0 %v470_v0  ;;  %424 = vmatprep.subr.bf16.mxu1 %v470_v0 }
  0x1a   :  { %213 = vmatpush1.bf16.msra.mxu0 %v443_v9  ;;  %433 = vmatpush1.bf16.msra.mxu1 %v443_v9 }
  0x1b   :  { %214 = vmatprep.subr.bf16.mxu0 %v470_v0  ;;  %425 = vmatprep.subr.bf16.mxu1 %v470_v0 }
  0x1e   :  { %215 = vmatpush1.bf16.msra.mxu0 %v444_v10  ;;  %434 = vmatpush1.bf16.msra.mxu1 %v444_v10 }
  0x1f   :  { %230 = vmatprep.subr.bf16.mxu0 %v470_v0  ;;  %426 = vmatprep.subr.bf16.mxu1 %v470_v0 }
  0x22   :  { %231 = vmatpush2.bf16.msra.mxu0 %v445_v11  ;;  %435 = vmatpush2.bf16.msra.mxu1 %v445_v11 }
  0x25   :  { %233 = vmatmul.mubr.bf16.vlgmr.msra.gmra.mxu0 %v446_v12  ;;  %265 = vmatmul.mubr.bf16.vlgmr.msra.gmra.mxu1 %v452_v13 }
  0x26   :  { %411 = vmatprep.mubr.msk.bf16.mxu0 %vm175_vm0, %v449_v14  ;;  %415 = vmatprep.mubr.msk.bf16.mxu1 %vm175_vm0, %v458_v15 }
  0x2d   :  { %241 = vmatmul.mubr.bf16.gmra.mxu0 %v451_v16  ;;  %273 = vmatmul.mubr.bf16.gmra.mxu1 %v460_v17 }
  0x2e   :  { %412 = vmatprep.mubr.msk.bf16.mxu0 %vm175_vm0, %v455_v18  ;;  %416 = vmatprep.mubr.msk.bf16.mxu1 %vm175_vm0, %v464_v19 }
  0x35   :  { %249 = vmatmul.mubr.bf16.gmra.mxu0 %v457_v20  ;;  %281 = vmatmul.mubr.bf16.gmra.mxu1 %v466_v21 }
  0x36   :  { %413 = vmatprep.mubr.msk.bf16.mxu0 %vm175_vm0, %v461_v22  ;;  %417 = vmatprep.mubr.msk.bf16.mxu1 %vm175_vm0, %v467_v23 }
  0x3d   :  { %257 = vmatmul.mubr.bf16.gmra.mxu0 %v463_v24  ;;  %289 = vmatmul.mubr.bf16.gmra.mxu1 %v469_v25 }
  0xe5   :  { %v234_v26 = vpop.f32.mrf.mxu0  ;;  %v579_v27 = vpop.f32.mrf.mxu1 }
  0xe6   :  { %297 = vst [vmem:[%s653_s2] sm:$0xff] %v234_v26  ;;  %305 = vst [vmem:[%s653_s2 + $0x40] sm:$0xff] %v579_v27  ;;  %v335_v45 = vmul.f32 %v234_v26, %v234_v26  ;;  %v343_v15 = vmul.f32 %v579_v27, %v579_v27 }
  0xe7   :  { %v236_v28 = vpop.f32.mrf.mxu0  ;;  %v268_v29 = vpop.f32.mrf.mxu1 }
  0xe9   :  { %v237_v30 = vpop.f32.mrf.mxu0  ;;  %v588_v31 = vpop.f32.mrf.mxu1 }
  0xea   :  { %298 = vst [vmem:[%s653_s2 + $0x8] sm:$0xff] %v237_v30  ;;  %306 = vst [vmem:[%s653_s2 + $0x48] sm:$0xff] %v588_v31  ;;  %v336_v42 = vmul.f32 %v237_v30, %v237_v30  ;;  %v313_v46 = vadd.f32 %v237_v30, %v234_v26  ;;  %v344_v18 = vmul.f32 %v588_v31, %v588_v31 }
  0xeb   :  { %v239_v32 = vpop.f32.mrf.mxu0  ;;  %v271_v33 = vpop.f32.mrf.mxu1 }
  0xec   :  { %v351_v50 = vadd.f32 %v336_v42, %v335_v45 }
  0xed   :  { %v242_v34 = vpop.f32.mrf.mxu0  ;;  %v597_v35 = vpop.f32.mrf.mxu1 }
  0xee   :  { %299 = vst [vmem:[%s653_s2 + $0x10] sm:$0xff] %v242_v34  ;;  %307 = vst [vmem:[%s653_s2 + $0x50] sm:$0xff] %v597_v35  ;;  %v337_v47 = vmul.f32 %v242_v34, %v242_v34  ;;  %v314_v51 = vadd.f32 %v313_v46, %v242_v34  ;;  %v345_v21 = vmul.f32 %v597_v35, %v597_v35 }
  0xef   :  { %v244_v36 = vpop.f32.mrf.mxu0  ;;  %v276_v37 = vpop.f32.mrf.mxu1 }
  0xf0   :  { %v352_v55 = vadd.f32 %v351_v50, %v337_v47 }
  0xf1   :  { %v245_v38 = vpop.f32.mrf.mxu0  ;;  %v277_v39 = vpop.f32.mrf.mxu1 }
  0xf2   :  { %300 = vst [vmem:[%s653_s2 + $0x18] sm:$0xff] %v245_v38  ;;  %308 = vst [vmem:[%s653_s2 + $0x58] sm:$0xff] %v277_v39  ;;  %v338_v52 = vmul.f32 %v245_v38, %v245_v38  ;;  %v315_v56 = vadd.f32 %v314_v51, %v245_v38  ;;  %v346_v24 = vmul.f32 %v277_v39, %v277_v39 }
  0xf3   :  { %v247_v40 = vpop.f32.mrf.mxu0  ;;  %v279_v41 = vpop.f32.mrf.mxu1 }
  0xf4   :  { %v353_v60 = vadd.f32 %v352_v55, %v338_v52 }
  0xf5   :  { %v250_v43 = vpop.f32.mrf.mxu0  ;;  %v282_v44 = vpop.f32.mrf.mxu1 }
  0xf6   :  { %301 = vst [vmem:[%s653_s2 + $0x20] sm:$0xff] %v250_v43  ;;  %309 = vst [vmem:[%s653_s2 + $0x60] sm:$0xff] %v282_v44  ;;  %v339_v57 = vmul.f32 %v250_v43, %v250_v43  ;;  %v316_v61 = vadd.f32 %v315_v56, %v250_v43  ;;  %v347_v28 = vmul.f32 %v282_v44, %v282_v44 }
  0xf7   :  { %v252_v48 = vpop.f32.mrf.mxu0  ;;  %v284_v49 = vpop.f32.mrf.mxu1 }
  0xf8   :  { %v354_v1 = vadd.f32 %v353_v60, %v339_v57 }
  0xf9   :  { %v253_v53 = vpop.f32.mrf.mxu0  ;;  %v285_v54 = vpop.f32.mrf.mxu1 }
  0xfa   :  { %302 = vst [vmem:[%s653_s2 + $0x28] sm:$0xff] %v253_v53  ;;  %310 = vst [vmem:[%s653_s2 + $0x68] sm:$0xff] %v285_v54  ;;  %v340_v62 = vmul.f32 %v253_v53, %v253_v53  ;;  %v317_v2 = vadd.f32 %v316_v61, %v253_v53  ;;  %v348_v32 = vmul.f32 %v285_v54, %v285_v54 }
  0xfb   :  { %v255_v58 = vpop.f32.mrf.mxu0  ;;  %v287_v59 = vpop.f32.mrf.mxu1 }
  0xfc   :  { %v355_v6 = vadd.f32 %v354_v1, %v340_v62 }
  0xfd   :  { %v258_v63 = vpop.f32.mrf.mxu0  ;;  %v290_v0 = vpop.f32.mrf.mxu1 }
  0xfe   :  { %303 = vst [vmem:[%s653_s2 + $0x30] sm:$0xff] %v258_v63  ;;  %v341_v3 = vmul.f32 %v258_v63, %v258_v63  ;;  %311 = vst [vmem:[%s653_s2 + $0x70] sm:$0xff] %v290_v0  ;;  %v318_v7 = vadd.f32 %v317_v2, %v258_v63  ;;  %v349_v37 = vmul.f32 %v290_v0, %v290_v0 }
  0xff   :  { %v260_v4 = vpop.f32.mrf.mxu0  ;;  %v292_v5 = vpop.f32.mrf.mxu1 }
 0x100   :  { %v356_v10 = vadd.f32 %v355_v6, %v341_v3 }
 0x101   :  { %v261_v8 = vpop.f32.mrf.mxu0  ;;  %v293_v9 = vpop.f32.mrf.mxu1 }
 0x102   :  { %304 = vst [vmem:[%s653_s2 + $0x38] sm:$0xff] %v261_v8  ;;  %v319_v11 = vadd.f32 %v318_v7, %v261_v8  ;;  %v342_v12 = vmul.f32 %v261_v8, %v261_v8  ;;  %312 = vst [vmem:[%s653_s2 + $0x78] sm:$0xff] %v293_v9  ;;  %v350_v40 = vmul.f32 %v293_v9, %v293_v9 }
 0x103   :  { %v263_v13 = vpop.f32.mrf.mxu0  ;;  %v295_v14 = vpop.f32.mrf.mxu1 }
 0x104   :  { %v320_v16 = vadd.f32 %v319_v11, %v579_v27  ;;  %v357_v17 = vadd.f32 %v356_v10, %v342_v12 }
 0x106   :  { %v321_v19 = vadd.f32 %v320_v16, %v588_v31  ;;  %v358_v20 = vadd.f32 %v357_v17, %v343_v15 }
 0x108   :  { %v359_v22 = vadd.f32 %v358_v20, %v344_v18  ;;  %v322_v23 = vadd.f32 %v321_v19, %v597_v35 }
 0x10a   :  { %v323_v25 = vadd.f32 %v322_v23, %v277_v39  ;;  %v360_v26 = vadd.f32 %v359_v22, %v345_v21 }
 0x10c   :  { %v324_v29 = vadd.f32 %v323_v25, %v282_v44  ;;  %v361_v30 = vadd.f32 %v360_v26, %v346_v24 }
 0x10e   :  { %v325_v27 = vadd.f32 %v324_v29, %v285_v54  ;;  %v362_v33 = vadd.f32 %v361_v30, %v347_v28 }
 0x110   :  { %v363_v34 = vadd.f32 %v362_v33, %v348_v32  ;;  %v326_v36 = vadd.f32 %v325_v27, %v290_v0 }
 0x112   :  { %v364_v31 = vadd.f32 %v363_v34, %v349_v37  ;;  %v327_v38 = vadd.f32 %v326_v36, %v293_v9 }
 0x114   :  { %v328_v41 = vrot.slane %v327_v38, 4  ;;  %v365_v42 = vadd.f32 %v364_v31, %v350_v40 }
 0x116   :  { %v329_v43 = vadd.f32 %v328_v41, %v327_v38  ;;  %v366_v45 = vrot.slane %v365_v42, 4 }
 0x118   :  { %v330_v35 = vrot.slane %v329_v43, 2  ;;  %v367_v46 = vadd.f32 %v366_v45, %v365_v42 }
 0x11a   :  { %v331_v39 = vadd.f32 %v330_v35, %v329_v43  ;;  %v368_v47 = vrot.slane %v367_v46, 2 }
 0x11c   :  { %v332_v48 = vrot.slane %v331_v39, 1  ;;  %v369_v44 = vadd.f32 %v368_v47, %v367_v46 }
 0x11e   :  { %v333_v49 = vadd.f32 %v332_v48, %v331_v39  ;;  %v370_v50 = vrot.slane %v369_v44, 1 }
 0x120   :  { %334 = vst [vmem:[%s654_s3] sm:$0x1] %v333_v49  ;;  %v371_v51 = vadd.f32 %v370_v50, %v369_v44 }
 0x122   :  { %372 = vst [vmem:[%s655_s4] sm:$0x1] %v371_v51 }

// kernel: unet_forward.34
= control target key start
LH: loop header
LB: loop body
LE: loop exit
PB: predicated region body
PF: predicated region fallthrough
CT: control target
= control target key end

     0   :  { %vm45_vm0 = vcmask 125952   ;;  %s143_s0 = inlined_call_operand.vmem [shape: bf16[32,16], index: 0, kind: input, shape index: {}]   ;;  %s144_s1 = inlined_call_operand.vmem [shape: bf16[32,16], index: 1, kind: input, shape index: {}]   ;;  %s145_s2 = inlined_call_operand.vmem [shape: bf16[32,16], index: 2, kind: input, shape index: {}]   ;;  %s146_s3 = inlined_call_operand.vmem [shape: bf16[32,16], index: 3, kind: input, shape index: {}]   ;;  %s147_s4 = inlined_call_operand.vmem [shape: bf16[32,16], index: 4, kind: output, shape index: {}]  }
   0x1   :  { %v17_v0 = vld [vmem:[%s143_s0] sm:$0xf]  ;;  %v18_v5 = vld [vmem:[%s143_s0 + $0x4] sm:$0xf]  ;;  %v19_v11 = vld [vmem:[%s143_s0 + $0x8] sm:$0xf] }
   0x2   :  { %v21_v1 = vld [vmem:[%s144_s1] sm:$0xf]  ;;  %v22_v6 = vld [vmem:[%s144_s1 + $0x4] sm:$0xf]  ;;  %v23_v13 = vld [vmem:[%s144_s1 + $0x8] sm:$0xf] }
   0x3   :  { %v29_v2 = vld [vmem:[%s145_s2] sm:$0xf]  ;;  %v25_v3 = vmax.bf16 %v21_v1, %v17_v0  ;;  %v26_v8 = vmax.bf16 %v22_v6, %v18_v5  ;;  %v30_v9 = vld [vmem:[%s145_s2 + $0x4] sm:$0xf]  ;;  %v31_v14 = vld [vmem:[%s145_s2 + $0x8] sm:$0xf]  ;;  %v27_v17 = vmax.bf16 %v23_v13, %v19_v11 }
   0x4   :  { %v33_v4 = vld [vmem:[%s146_s3] sm:$0xf]  ;;  %v34_v10 = vld [vmem:[%s146_s3 + $0x4] sm:$0xf]  ;;  %v35_v15 = vld [vmem:[%s146_s3 + $0x8] sm:$0xf] }
   0x5   :  { %v37_v7 = vmax.bf16 %v33_v4, %v29_v2  ;;  %v38_v12 = vmax.bf16 %v34_v10, %v30_v9  ;;  %v39_v18 = vmax.bf16 %v35_v15, %v31_v14  ;;  %v20_v19 = vld [vmem:[%s143_s0 + $0xc] sm:$0xf] }
   0x6   :  { %v24_v20 = vld [vmem:[%s144_s1 + $0xc] sm:$0xf] }
   0x7   :  { %v41_v16 = vmax.bf16 %v37_v7, %v25_v3  ;;  %v32_v21 = vld [vmem:[%s145_s2 + $0xc] sm:$0xf]  ;;  %v42_v22 = vmax.bf16 %v38_v12, %v26_v8  ;;  %v28_v23 = vmax.bf16 %v24_v20, %v20_v19  ;;  %v43_v25 = vmax.bf16 %v39_v18, %v27_v17 }
   0x8   :  { %v36_v24 = vld [vmem:[%s146_s3 + $0xc] sm:$0xf] }
   0x9   :  { %46 = vst.msk [vmem:[%s147_s4] sm:$0xf] %vm45_vm0, %v41_v16  ;;  %v40_v26 = vmax.bf16 %v36_v24, %v32_v21  ;;  %47 = vst.msk [vmem:[%s147_s4 + $0x4] sm:$0xf] %vm45_vm0, %v42_v22 }
   0xa   :  { %48 = vst.msk [vmem:[%s147_s4 + $0x8] sm:$0xf] %vm45_vm0, %v43_v25 }
   0xb   :  { %v44_v27 = vmax.bf16 %v40_v26, %v28_v23 }
   0xd   :  { %49 = vst.msk [vmem:[%s147_s4 + $0xc] sm:$0xf] %vm45_vm0, %v44_v27 }

// kernel: unet_forward.36
= control target key start
LH: loop header
LB: loop body
LE: loop exit
PB: predicated region body
PF: predicated region fallthrough
CT: control target
= control target key end

     0   :  { %s133_s0 = inlined_call_operand.vmem [shape: f32[32,128], index: 0, kind: input, shape index: {}]   ;;  %s134_s1 = inlined_call_operand.vmem [shape: f32[1,128], index: 1, kind: input, shape index: {}]   ;;  %s135_s2 = inlined_call_operand.vmem [shape: f32[1,128], index: 2, kind: input, shape index: {}]   ;;  %s136_s3 = inlined_call_operand.vmem [shape: bf16[32,128], index: 3, kind: output, shape index: {}]  }
   0x1   :  { %v14_v0 = vld [vmem:[%s133_s0] sm:$0xff]  ;;  %v15_v1 = vld [vmem:[%s133_s0 + $0x8] sm:$0xff]  ;;  %v16_v6 = vld [vmem:[%s133_s0 + $0x10] sm:$0xff] }
   0x2   :  { %v68_v2 = vld [vmem:[%s134_s1] ss:$0 sm:$0xff]  ;;  %v17_v7 = vld [vmem:[%s133_s0 + $0x18] sm:$0xff] }
   0x3   :  { %v25_v3 = vmul.f32 %v68_v2, %v14_v0  ;;  %v26_v4 = vmul.f32 %v68_v2, %v15_v1  ;;  %v69_v5 = vld [vmem:[%s135_s2] ss:$0 sm:$0xff]  ;;  %v27_v8 = vmul.f32 %v68_v2, %v16_v6  ;;  %v28_v9 = vmul.f32 %v68_v2, %v17_v7 }
   0x5   :  { %v36_v10 = vadd.f32 %v69_v5, %v25_v3  ;;  %v37_v11 = vadd.f32 %v69_v5, %v26_v4  ;;  %v38_v12 = vadd.f32 %v69_v5, %v27_v8  ;;  %v39_v13 = vadd.f32 %v69_v5, %v28_v9 }
   0x7   :  { %v40_v14 = vmax.f32 %v36_v10, 0.0  ;;  %v41_v15 = vmax.f32 %v37_v11, 0.0  ;;  %v42_v16 = vmax.f32 %v38_v12, 0.0  ;;  %v43_v17 = vmax.f32 %v39_v13, 0.0 }
   0x9   :  { %v81_v18 = vpack.c.bf16 %v41_v15, %v40_v14  ;;  %v86_v19 = vpack.c.bf16 %v43_v17, %v42_v16 }
   0xb   :  { %82 = vst [vmem:[%s136_s3] sm:$0xff] %v81_v18   ;;  %88 = vst [vmem:[%s136_s3 + $0x8] sm:$0xff] %v86_v19  }

// kernel: unet_forward.35
= control target key start
LH: loop header
LB: loop body
LE: loop exit
PB: predicated region body
PF: predicated region fallthrough
CT: control target
= control target key end

     0   :  { %v254_v0 = vmov 0   ;;  %vm109_vm0 = vcmask 130048   ;;  %s337_s1 = inlined_call_operand.vmem [shape: bf16[144,128], index: 1, kind: input, shape index: {}]   ;;  %s338_s0 = inlined_call_operand.vmem [shape: bf16[32,144], index: 0, kind: input, shape index: {}]   ;;  %s339_s2 = inlined_call_operand.vmem [shape: f32[32,128], index: 2, kind: output, shape index: {0}]   ;;  %s340_s3 = inlined_call_operand.vmem [shape: f32[1,1,128], index: 3, kind: output, shape index: {1}]   ;;  %s341_s4 = inlined_call_operand.vmem [shape: f32[1,1,128], index: 4, kind: output, shape index: {2}]  }
   0x1   :  { %116 = vmatprep.subr.bf16.mxu0 %v254_v0  ;;  %220 = vmatprep.subr.bf16.mxu1 %v254_v0  ;;  %v239_v1 = vld [vmem:[%s337_s1 + $0x38] sm:$0xff]   ;;  %v240_v2 = vld [vmem:[%s337_s1 + $0x30] sm:$0xff]   ;;  %v241_v3 = vld [vmem:[%s337_s1 + $0x28] sm:$0xff]  }
   0x2   :  { %117 = vmatpush1.bf16.msra.mxu0 %v239_v1  ;;  %229 = vmatpush1.bf16.msra.mxu1 %v239_v1  ;;  %v242_v4 = vld [vmem:[%s337_s1 + $0x20] sm:$0xff]   ;;  %v253_v6 = vld [vmem:[%s338_s0 + $0x14] ss:$8 sps:$4 sm:$0xff]   ;;  %v245_v9 = vld [vmem:[%s337_s1 + $0x8] sm:$0xff]  }
   0x3   :  { %118 = vmatprep.subr.bf16.mxu0 %v254_v0  ;;  %221 = vmatprep.subr.bf16.mxu1 %v254_v0  ;;  %v250_v5 = vld [vmem:[%s338_s0 + $0x4] ss:$8 sps:$4 sm:$0xff]   ;;  %v243_v7 = vld [vmem:[%s337_s1 + $0x18] sm:$0xff]   ;;  %v244_v8 = vld [vmem:[%s337_s1 + $0x10] sm:$0xff]  }
   0x4   :  { %218 = vmatprep.mubr.msk.bf16.mxu0 %vm109_vm0, %v250_v5  ;;  %219 = vmatprep.mubr.msk.bf16.mxu1 %vm109_vm0, %v253_v6  ;;  %v246_v10 = vld [vmem:[%s337_s1] sm:$0xff]   ;;  %v251_v13 = vld [vmem:[%s338_s0 + $0x10] ss:$8 sps:$4 sm:$0xff]  }
   0x5   :  { %v247_v11 = vld [vmem:[%s337_s1 + $0x40] sm:$0xff]  }
   0x6   :  { %119 = vmatpush1.bf16.msra.mxu0 %v240_v2  ;;  %230 = vmatpush1.bf16.msra.mxu1 %v240_v2  ;;  %v248_v12 = vld [vmem:[%s338_s0] ss:$8 sps:$4 sm:$0xff]  }
   0x7   :  { %120 = vmatprep.subr.bf16.mxu0 %v254_v0  ;;  %222 = vmatprep.subr.bf16.mxu1 %v254_v0 }
   0xa   :  { %121 = vmatpush1.bf16.msra.mxu0 %v241_v3  ;;  %231 = vmatpush1.bf16.msra.mxu1 %v241_v3 }
   0xb   :  { %122 = vmatprep.subr.bf16.mxu0 %v254_v0  ;;  %223 = vmatprep.subr.bf16.mxu1 %v254_v0 }
   0xe   :  { %123 = vmatpush1.bf16.msra.mxu0 %v242_v4  ;;  %232 = vmatpush1.bf16.msra.mxu1 %v242_v4 }
   0xf   :  { %124 = vmatprep.subr.bf16.mxu0 %v254_v0  ;;  %224 = vmatprep.subr.bf16.mxu1 %v254_v0 }
  0x12   :  { %125 = vmatpush1.bf16.msra.mxu0 %v243_v7  ;;  %233 = vmatpush1.bf16.msra.mxu1 %v243_v7 }
  0x13   :  { %126 = vmatprep.subr.bf16.mxu0 %v254_v0  ;;  %225 = vmatprep.subr.bf16.mxu1 %v254_v0 }
  0x16   :  { %127 = vmatpush1.bf16.msra.mxu0 %v244_v8  ;;  %234 = vmatpush1.bf16.msra.mxu1 %v244_v8 }
  0x17   :  { %128 = vmatprep.subr.bf16.mxu0 %v254_v0  ;;  %226 = vmatprep.subr.bf16.mxu1 %v254_v0 }
  0x1a   :  { %129 = vmatpush1.bf16.msra.mxu0 %v245_v9  ;;  %235 = vmatpush1.bf16.msra.mxu1 %v245_v9 }
  0x1b   :  { %130 = vmatprep.subr.bf16.mxu0 %v254_v0  ;;  %227 = vmatprep.subr.bf16.mxu1 %v254_v0 }
  0x1e   :  { %131 = vmatpush1.bf16.msra.mxu0 %v246_v10  ;;  %236 = vmatpush1.bf16.msra.mxu1 %v246_v10 }
  0x1f   :  { %146 = vmatprep.subr.bf16.mxu0 %v254_v0  ;;  %228 = vmatprep.subr.bf16.mxu1 %v254_v0 }
  0x22   :  { %147 = vmatpush2.bf16.msra.mxu0 %v247_v11  ;;  %237 = vmatpush2.bf16.msra.mxu1 %v247_v11 }
  0x25   :  { %149 = vmatmul.mubr.bf16.vlgmr.msra.gmra.mxu0 %v248_v12  ;;  %157 = vmatmul.mubr.bf16.vlgmr.msra.gmra.mxu1 %v251_v13 }
  0xe5   :  { %v150_v14 = vpop.f32.mrf.mxu0  ;;  %v158_v15 = vpop.f32.mrf.mxu1 }
  0xe6   :  { %165 = vst [vmem:[%s339_s2] sm:$0xff] %v150_v14  ;;  %167 = vst [vmem:[%s339_s2 + $0x10] sm:$0xff] %v158_v15  ;;  %v179_v20 = vmul.f32 %v150_v14, %v150_v14  ;;  %v181_v25 = vmul.f32 %v158_v15, %v158_v15 }
  0xe7   :  { %v152_v16 = vpop.f32.mrf.mxu0  ;;  %v160_v17 = vpop.f32.mrf.mxu1 }
  0xe9   :  { %v153_v18 = vpop.f32.mrf.mxu0  ;;  %v161_v19 = vpop.f32.mrf.mxu1 }
  0xea   :  { %166 = vst [vmem:[%s339_s2 + $0x8] sm:$0xff] %v153_v18  ;;  %v169_v21 = vadd.f32 %v153_v18, %v150_v14  ;;  %v180_v22 = vmul.f32 %v153_v18, %v153_v18  ;;  %168 = vst [vmem:[%s339_s2 + $0x18] sm:$0xff] %v161_v19  ;;  %v182_v29 = vmul.f32 %v161_v19, %v161_v19 }
  0xeb   :  { %v155_v23 = vpop.f32.mrf.mxu0  ;;  %v163_v24 = vpop.f32.mrf.mxu1 }
  0xec   :  { %v183_v26 = vadd.f32 %v180_v22, %v179_v20  ;;  %v170_v27 = vadd.f32 %v169_v21, %v158_v15 }
  0xee   :  { %v171_v28 = vadd.f32 %v170_v27, %v161_v19  ;;  %v184_v30 = vadd.f32 %v183_v26, %v181_v25 }
  0xf0   :  { %v172_v31 = vrot.slane %v171_v28, 4  ;;  %v185_v32 = vadd.f32 %v184_v30, %v182_v29 }
  0xf2   :  { %v173_v33 = vadd.f32 %v172_v31, %v171_v28  ;;  %v186_v34 = vrot.slane %v185_v32, 4 }
  0xf4   :  { %v174_v35 = vrot.slane %v173_v33, 2  ;;  %v187_v36 = vadd.f32 %v186_v34, %v185_v32 }
  0xf6   :  { %v175_v37 = vadd.f32 %v174_v35, %v173_v33  ;;  %v188_v38 = vrot.slane %v187_v36, 2 }
  0xf8   :  { %v176_v39 = vrot.slane %v175_v37, 1  ;;  %v189_v40 = vadd.f32 %v188_v38, %v187_v36 }
  0xfa   :  { %v177_v41 = vadd.f32 %v176_v39, %v175_v37  ;;  %v190_v42 = vrot.slane %v189_v40, 1 }
  0xfc   :  { %178 = vst [vmem:[%s340_s3] sm:$0x1] %v177_v41  ;;  %v191_v43 = vadd.f32 %v190_v42, %v189_v40 }
  0xfe   :  { %192 = vst [vmem:[%s341_s4] sm:$0x1] %v191_v43 }

// kernel: unet_forward.37
= control target key start
LH: loop header
LB: loop body
LE: loop exit
PB: predicated region body
PF: predicated region fallthrough
CT: control target
= control target key end

     0   :  { %vm197_vm0 = vcmask 261120   ;;  %s549_s1 = inlined_call_operand.vmem [shape: bf16[288,128], index: 1, kind: input, shape index: {}]   ;;  %s550_s0 = inlined_call_operand.vmem [shape: bf16[32,288], index: 0, kind: input, shape index: {}]   ;;  %s551_s2 = inlined_call_operand.vmem [shape: f32[32,128], index: 2, kind: output, shape index: {0}]   ;;  %s552_s3 = inlined_call_operand.vmem [shape: f32[1,1,128], index: 3, kind: output, shape index: {1}]   ;;  %s553_s4 = inlined_call_operand.vmem [shape: f32[1,1,128], index: 4, kind: output, shape index: {2}]  }
   0x1   :  { %v408_v0 = vld [vmem:[%s549_s1 + $0x78] sm:$0xff]   ;;  %v410_v2 = vld [vmem:[%s549_s1 + $0x70] sm:$0xff]   ;;  %v412_v4 = vld [vmem:[%s549_s1 + $0x68] sm:$0xff]  }
   0x2   :  { %v409_v1 = vld [vmem:[%s549_s1 + $0x38] sm:$0xff]   ;;  %368 = vmatprep.subr.bf16.mxu0 %v408_v0  ;;  %v411_v3 = vld [vmem:[%s549_s1 + $0x30] sm:$0xff]   ;;  %v413_v5 = vld [vmem:[%s549_s1 + $0x28] sm:$0xff]  }
   0x3   :  { %369 = vmatpush3.bf16.msra.mxu0 %v409_v1  ;;  %v414_v6 = vld [vmem:[%s549_s1 + $0x60] sm:$0xff]   ;;  %v416_v8 = vld [vmem:[%s549_s1 + $0x58] sm:$0xff]   ;;  %v421_v9 = vld [vmem:[%s549_s1 + $0x88] sm:$0xff]  }
   0x4   :  { %370 = vmatprep.subr.bf16.mxu0 %v410_v2  ;;  %v415_v7 = vld [vmem:[%s549_s1 + $0x20] sm:$0xff]   ;;  %v417_v10 = vld [vmem:[%s549_s1 + $0x18] sm:$0xff]   ;;  %v418_v11 = vld [vmem:[%s549_s1 + $0x50] sm:$0xff]   ;;  %400 = vmatprep.subr.bf16.mxu1 %v421_v9 }
   0x5   :  { %401 = vmatpush3.bf16.msra.mxu1 %v421_v9  ;;  %v424_v12 = vld [vmem:[%s549_s1 + $0x80] sm:$0xff]   ;;  %v419_v13 = vld [vmem:[%s549_s1 + $0x10] sm:$0xff]   ;;  %v420_v14 = vld [vmem:[%s549_s1 + $0x48] sm:$0xff]  }
   0x6   :  { %402 = vmatprep.subr.bf16.mxu1 %v424_v12  ;;  %v428_v15 = vld [vmem:[%s550_s0 + $0x4] ss:$12 sps:$4 sm:$0xff]   ;;  %v429_v16 = vld [vmem:[%s550_s0 + $0x8] ss:$12 sps:$4 sm:$0xff]   ;;  %v430_v17 = vld [vmem:[%s550_s0 + $0x20] ss:$12 sps:$4 sm:$0xff]  }
   0x7   :  { %371 = vmatpush3.bf16.msra.mxu0 %v411_v3  ;;  %236 = vmatprep.mubr.bf16.mxu0 %v428_v15  ;;  %v422_v18 = vld [vmem:[%s549_s1 + $0x8] sm:$0xff]   ;;  %v423_v19 = vld [vmem:[%s549_s1 + $0x40] sm:$0xff]  }
   0x8   :  { %372 = vmatprep.subr.bf16.mxu0 %v412_v4  ;;  %404 = vmatprep.mubr.msk.bf16.mxu1 %vm197_vm0, %v429_v16  ;;  %v425_v20 = vld [vmem:[%s549_s1] sm:$0xff]   ;;  %v431_v22 = vld [vmem:[%s550_s0 + $0x1c] ss:$12 sps:$4 sm:$0xff]  }
   0x9   :  { %403 = vmatpush3.bf16.msra.mxu1 %v424_v12  ;;  %v426_v21 = vld [vmem:[%s550_s0] ss:$12 sps:$4 sm:$0xff]   ;;  %v433_v23 = vld [vmem:[%s550_s0 + $0x18] ss:$12 sps:$4 sm:$0xff]  }
   0xb   :  { %373 = vmatpush3.bf16.msra.mxu0 %v413_v5 }
   0xc   :  { %374 = vmatprep.subr.bf16.mxu0 %v414_v6  ;;  %405 = vmatmul.mubr.msk.bf16.vlgmr.msra.gmra.mxu1 %vm197_vm0, %v430_v17 }
   0xf   :  { %375 = vmatpush3.bf16.msra.mxu0 %v415_v7 }
  0x10   :  { %376 = vmatprep.subr.bf16.mxu0 %v416_v8 }
  0x13   :  { %377 = vmatpush3.bf16.msra.mxu0 %v417_v10 }
  0x14   :  { %378 = vmatprep.subr.bf16.mxu0 %v418_v11 }
  0x17   :  { %379 = vmatpush3.bf16.msra.mxu0 %v419_v13 }
  0x18   :  { %380 = vmatprep.subr.bf16.mxu0 %v420_v14 }
  0x1b   :  { %381 = vmatpush3.bf16.msra.mxu0 %v422_v18 }
  0x1c   :  { %382 = vmatprep.subr.bf16.mxu0 %v423_v19 }
  0x1f   :  { %383 = vmatpush3.bf16.msra.mxu0 %v425_v20 }
  0x22   :  { %237 = vmatmul.mubr.bf16.vlgmr.msra.gmra.mxu0 %v426_v21 }
  0x23   :  { %244 = vmatprep.mubr.bf16.mxu0 %v431_v22 }
  0x2a   :  { %245 = vmatmul.mubr.bf16.gmra.mxu0 %v433_v23 }
  0xcc   :  { %v406_v24 = vpop.f32.mrf.mxu1 }
  0xce   :  { %v287_v26 = vpop.f32.mrf.mxu1 }
  0xd0   :  { %v407_v30 = vpop.f32.mrf.mxu1 }
  0xd2   :  { %v290_v34 = vpop.f32.mrf.mxu1 }
  0xe2   :  { %v384_v25 = vpop.f32.mrf.mxu0 }
  0xe4   :  { %v385_v27 = vpop.f32.mrf.mxu0 }
  0xe5   :  { %v386_v28 = vadd.f32 %v385_v27, %v384_v25 }
  0xe6   :  { %v387_v29 = vpop.f32.mrf.mxu0 }
  0xe7   :  { %v288_v31 = vadd.f32 %v386_v28, %v287_v26 }
  0xe8   :  { %v388_v32 = vpop.f32.mrf.mxu0 }
  0xe9   :  { %302 = vst [vmem:[%s551_s2] sm:$0xff] %v288_v31  ;;  %v389_v33 = vadd.f32 %v388_v32, %v387_v29  ;;  %v316_v43 = vmul.f32 %v288_v31, %v288_v31 }
  0xea   :  { %v390_v35 = vpop.f32.mrf.mxu0 }
  0xeb   :  { %v291_v36 = vadd.f32 %v389_v33, %v290_v34 }
  0xec   :  { %v391_v37 = vpop.f32.mrf.mxu0 }
  0xed   :  { %303 = vst [vmem:[%s551_s2 + $0x8] sm:$0xff] %v291_v36  ;;  %v392_v38 = vadd.f32 %v391_v37, %v390_v35  ;;  %v317_v40 = vmul.f32 %v291_v36, %v291_v36  ;;  %v306_v44 = vadd.f32 %v291_v36, %v288_v31 }
  0xee   :  { %v393_v39 = vpop.f32.mrf.mxu0 }
  0xef   :  { %v296_v41 = vadd.f32 %v406_v24, %v392_v38  ;;  %v320_v47 = vadd.f32 %v317_v40, %v316_v43 }
  0xf0   :  { %v394_v42 = vpop.f32.mrf.mxu0 }
  0xf1   :  { %304 = vst [vmem:[%s551_s2 + $0x10] sm:$0xff] %v296_v41  ;;  %v318_v45 = vmul.f32 %v296_v41, %v296_v41  ;;  %v395_v46 = vadd.f32 %v394_v42, %v393_v39  ;;  %v307_v48 = vadd.f32 %v306_v44, %v296_v41 }
  0xf3   :  { %v299_v49 = vadd.f32 %v407_v30, %v395_v46  ;;  %v321_v50 = vadd.f32 %v320_v47, %v318_v45 }
  0xf5   :  { %305 = vst [vmem:[%s551_s2 + $0x18] sm:$0xff] %v299_v49  ;;  %v308_v51 = vadd.f32 %v307_v48, %v299_v49  ;;  %v319_v52 = vmul.f32 %v299_v49, %v299_v49 }
  0xf7   :  { %v309_v53 = vrot.slane %v308_v51, 4  ;;  %v322_v54 = vadd.f32 %v321_v50, %v319_v52 }
  0xf9   :  { %v310_v55 = vadd.f32 %v309_v53, %v308_v51  ;;  %v323_v56 = vrot.slane %v322_v54, 4 }
  0xfb   :  { %v311_v57 = vrot.slane %v310_v55, 2  ;;  %v324_v58 = vadd.f32 %v323_v56, %v322_v54 }
  0xfd   :  { %v312_v59 = vadd.f32 %v311_v57, %v310_v55  ;;  %v325_v60 = vrot.slane %v324_v58, 2 }
  0xff   :  { %v313_v61 = vrot.slane %v312_v59, 1  ;;  %v326_v62 = vadd.f32 %v325_v60, %v324_v58 }
 0x101   :  { %v314_v63 = vadd.f32 %v313_v61, %v312_v59  ;;  %v327_v0 = vrot.slane %v326_v62, 1 }
 0x103   :  { %315 = vst [vmem:[%s552_s3] sm:$0x1] %v314_v63  ;;  %v328_v1 = vadd.f32 %v327_v0, %v326_v62 }
 0x105   :  { %329 = vst [vmem:[%s553_s4] sm:$0x1] %v328_v1 }

// kernel: unet_forward.39
= control target key start
LH: loop header
LB: loop body
LE: loop exit
PB: predicated region body
PF: predicated region fallthrough
CT: control target
= control target key end

     0   :  { %vm204_vm0 = vcmask 261120   ;;  %s517_s1 = inlined_call_operand.vmem [shape: bf16[288,128], index: 1, kind: input, shape index: {}]   ;;  %s518_s0 = inlined_call_operand.vmem [shape: bf16[32,288], index: 0, kind: input, shape index: {}]   ;;  %s519_s2 = inlined_call_operand.vmem [shape: f32[1,128], index: 2, kind: input, shape index: {}]   ;;  %s520_s3 = inlined_call_operand.vmem [shape: f32[32,128], index: 3, kind: output, shape index: {}]  }
   0x1   :  { %v384_v0 = vld [vmem:[%s517_s1 + $0x78] sm:$0xff]   ;;  %v386_v2 = vld [vmem:[%s517_s1 + $0x70] sm:$0xff]   ;;  %v388_v4 = vld [vmem:[%s517_s1 + $0x68] sm:$0xff]  }
   0x2   :  { %v385_v1 = vld [vmem:[%s517_s1 + $0x38] sm:$0xff]   ;;  %344 = vmatprep.subr.bf16.mxu0 %v384_v0  ;;  %v387_v3 = vld [vmem:[%s517_s1 + $0x30] sm:$0xff]   ;;  %v389_v5 = vld [vmem:[%s517_s1 + $0x28] sm:$0xff]  }
   0x3   :  { %345 = vmatpush3.bf16.msra.mxu0 %v385_v1  ;;  %v390_v6 = vld [vmem:[%s517_s1 + $0x60] sm:$0xff]   ;;  %v392_v8 = vld [vmem:[%s517_s1 + $0x58] sm:$0xff]   ;;  %v399_v10 = vld [vmem:[%s517_s1 + $0x88] sm:$0xff]  }
   0x4   :  { %346 = vmatprep.subr.bf16.mxu0 %v386_v2  ;;  %v391_v7 = vld [vmem:[%s517_s1 + $0x20] sm:$0xff]   ;;  %v393_v9 = vld [vmem:[%s517_s1 + $0x18] sm:$0xff]   ;;  %v394_v11 = vld [vmem:[%s517_s1 + $0x50] sm:$0xff]   ;;  %376 = vmatprep.subr.bf16.mxu1 %v399_v10 }
   0x5   :  { %v395_v12 = vld [vmem:[%s517_s1 + $0x10] sm:$0xff]   ;;  %v396_v13 = vld [vmem:[%s517_s1 + $0x48] sm:$0xff]   ;;  %377 = vmatpush3.bf16.msra.mxu1 %v399_v10  ;;  %v404_v15 = vld [vmem:[%s517_s1 + $0x80] sm:$0xff]  }
   0x6   :  { %v403_v14 = vld [vmem:[%s518_s0 + $0x4] ss:$12 sps:$4 sm:$0xff]   ;;  %v405_v16 = vld [vmem:[%s518_s0 + $0x8] ss:$12 sps:$4 sm:$0xff]   ;;  %378 = vmatprep.subr.bf16.mxu1 %v404_v15  ;;  %v406_v17 = vld [vmem:[%s518_s0 + $0x20] ss:$12 sps:$4 sm:$0xff]  }
   0x7   :  { %347 = vmatpush3.bf16.msra.mxu0 %v387_v3  ;;  %243 = vmatprep.mubr.bf16.mxu0 %v403_v14  ;;  %v397_v18 = vld [vmem:[%s517_s1 + $0x8] sm:$0xff]   ;;  %v398_v19 = vld [vmem:[%s517_s1 + $0x40] sm:$0xff]  }
   0x8   :  { %348 = vmatprep.subr.bf16.mxu0 %v388_v4  ;;  %380 = vmatprep.mubr.msk.bf16.mxu1 %vm204_vm0, %v405_v16  ;;  %v400_v20 = vld [vmem:[%s517_s1] sm:$0xff]   ;;  %v407_v22 = vld [vmem:[%s518_s0 + $0x1c] ss:$12 sps:$4 sm:$0xff]  }
   0x9   :  { %379 = vmatpush3.bf16.msra.mxu1 %v404_v15  ;;  %v401_v21 = vld [vmem:[%s518_s0] ss:$12 sps:$4 sm:$0xff]   ;;  %v409_v23 = vld [vmem:[%s518_s0 + $0x18] ss:$12 sps:$4 sm:$0xff]  }
   0xa   :  { %v317_v28 = vld [vmem:[%s519_s2] ss:$0 sm:$0xff] }
   0xb   :  { %349 = vmatpush3.bf16.msra.mxu0 %v389_v5 }
   0xc   :  { %350 = vmatprep.subr.bf16.mxu0 %v390_v6  ;;  %381 = vmatmul.mubr.msk.bf16.vlgmr.msra.gmra.mxu1 %vm204_vm0, %v406_v17 }
   0xf   :  { %351 = vmatpush3.bf16.msra.mxu0 %v391_v7 }
  0x10   :  { %352 = vmatprep.subr.bf16.mxu0 %v392_v8 }
  0x13   :  { %353 = vmatpush3.bf16.msra.mxu0 %v393_v9 }
  0x14   :  { %354 = vmatprep.subr.bf16.mxu0 %v394_v11 }
  0x17   :  { %355 = vmatpush3.bf16.msra.mxu0 %v395_v12 }
  0x18   :  { %356 = vmatprep.subr.bf16.mxu0 %v396_v13 }
  0x1b   :  { %357 = vmatpush3.bf16.msra.mxu0 %v397_v18 }
  0x1c   :  { %358 = vmatprep.subr.bf16.mxu0 %v398_v19 }
  0x1f   :  { %359 = vmatpush3.bf16.msra.mxu0 %v400_v20 }
  0x22   :  { %244 = vmatmul.mubr.bf16.vlgmr.msra.gmra.mxu0 %v401_v21 }
  0x23   :  { %251 = vmatprep.mubr.bf16.mxu0 %v407_v22 }
  0x2a   :  { %252 = vmatmul.mubr.bf16.gmra.mxu0 %v409_v23 }
  0xcc   :  { %v382_v24 = vpop.f32.mrf.mxu1 }
  0xce   :  { %v294_v26 = vpop.f32.mrf.mxu1 }
  0xd0   :  { %v383_v31 = vpop.f32.mrf.mxu1 }
  0xd2   :  { %v297_v37 = vpop.f32.mrf.mxu1 }
  0xe2   :  { %v360_v25 = vpop.f32.mrf.mxu0 }
  0xe4   :  { %v361_v27 = vpop.f32.mrf.mxu0 }
  0xe5   :  { %v362_v29 = vadd.f32 %v361_v27, %v360_v25 }
  0xe6   :  { %v363_v30 = vpop.f32.mrf.mxu0 }
  0xe7   :  { %v246_v32 = vadd.f32 %v362_v29, %v317_v28 }
  0xe8   :  { %v364_v33 = vpop.f32.mrf.mxu0 }
  0xe9   :  { %v365_v34 = vadd.f32 %v364_v33, %v363_v30  ;;  %v295_v35 = vadd.f32 %v294_v26, %v246_v32 }
  0xea   :  { %v366_v36 = vpop.f32.mrf.mxu0 }
  0xeb   :  { %309 = vst [vmem:[%s520_s3] sm:$0xff] %v295_v35  ;;  %v249_v38 = vadd.f32 %v365_v34, %v317_v28 }
  0xec   :  { %v367_v39 = vpop.f32.mrf.mxu0 }
  0xed   :  { %v368_v40 = vadd.f32 %v367_v39, %v366_v36  ;;  %v298_v41 = vadd.f32 %v297_v37, %v249_v38 }
  0xee   :  { %v369_v42 = vpop.f32.mrf.mxu0 }
  0xef   :  { %v254_v43 = vadd.f32 %v368_v40, %v317_v28  ;;  %310 = vst [vmem:[%s520_s3 + $0x8] sm:$0xff] %v298_v41 }
  0xf0   :  { %v370_v44 = vpop.f32.mrf.mxu0 }
  0xf1   :  { %v303_v45 = vadd.f32 %v382_v24, %v254_v43  ;;  %v371_v46 = vadd.f32 %v370_v44, %v369_v42 }
  0xf3   :  { %311 = vst [vmem:[%s520_s3 + $0x10] sm:$0xff] %v303_v45  ;;  %v257_v47 = vadd.f32 %v371_v46, %v317_v28 }
  0xf5   :  { %v306_v48 = vadd.f32 %v383_v31, %v257_v47 }
  0xf7   :  { %312 = vst [vmem:[%s520_s3 + $0x18] sm:$0xff] %v306_v48 }

// kernel: unet_forward.40
= control target key start
LH: loop header
LB: loop body
LE: loop exit
PB: predicated region body
PF: predicated region fallthrough
CT: control target
= control target key end

     0   :  { %vm311_vm0 = vcmask 261120   ;;  %s1065_s1 = inlined_call_operand.vmem [shape: bf16[288,128], index: 1, kind: input, shape index: {}]   ;;  %s1066_s0 = inlined_call_operand.vmem [shape: bf16[128,288], index: 0, kind: input, shape index: {}]   ;;  %s1067_s2 = inlined_call_operand.vmem [shape: f32[128,128], index: 2, kind: output, shape index: {0}]   ;;  %s1068_s3 = inlined_call_operand.vmem [shape: f32[1,1,128], index: 3, kind: output, shape index: {1}]   ;;  %s1069_s4 = inlined_call_operand.vmem [shape: f32[1,1,128], index: 4, kind: output, shape index: {2}]  }
   0x1   :  { %v778_v0 = vld [vmem:[%s1065_s1 + $0x78] sm:$0xff]   ;;  %v780_v2 = vld [vmem:[%s1065_s1 + $0x70] sm:$0xff]   ;;  %v782_v4 = vld [vmem:[%s1065_s1 + $0x68] sm:$0xff]  }
   0x2   :  { %v779_v1 = vld [vmem:[%s1065_s1 + $0x38] sm:$0xff]   ;;  %668 = vmatprep.subr.bf16.mxu0 %v778_v0  ;;  %762 = vmatprep.subr.bf16.mxu1 %v778_v0  ;;  %v781_v3 = vld [vmem:[%s1065_s1 + $0x30] sm:$0xff]   ;;  %v783_v5 = vld [vmem:[%s1065_s1 + $0x28] sm:$0xff]  }
   0x3   :  { %669 = vmatpush3.bf16.msra.mxu0 %v779_v1  ;;  %770 = vmatpush3.bf16.msra.mxu1 %v779_v1  ;;  %v784_v6 = vld [vmem:[%s1065_s1 + $0x60] sm:$0xff]   ;;  %v786_v8 = vld [vmem:[%s1065_s1 + $0x58] sm:$0xff]   ;;  %v788_v10 = vld [vmem:[%s1065_s1 + $0x50] sm:$0xff]  }
   0x4   :  { %670 = vmatprep.subr.bf16.mxu0 %v780_v2  ;;  %763 = vmatprep.subr.bf16.mxu1 %v780_v2  ;;  %v785_v7 = vld [vmem:[%s1065_s1 + $0x20] sm:$0xff]   ;;  %v787_v9 = vld [vmem:[%s1065_s1 + $0x18] sm:$0xff]   ;;  %v789_v13 = vld [vmem:[%s1065_s1 + $0x10] sm:$0xff]  }
   0x5   :  { %v796_v11 = vld [vmem:[%s1066_s0 + $0x4] ss:$12 sps:$4 sm:$0xff]   ;;  %v799_v12 = vld [vmem:[%s1066_s0 + $0x94] ss:$12 sps:$4 sm:$0xff]   ;;  %v790_v14 = vld [vmem:[%s1065_s1 + $0x48] sm:$0xff]  }
   0x6   :  { %368 = vmatprep.mubr.bf16.mxu0 %v796_v11  ;;  %416 = vmatprep.mubr.bf16.mxu1 %v799_v12  ;;  %v791_v15 = vld [vmem:[%s1065_s1 + $0x8] sm:$0xff]   ;;  %v792_v16 = vld [vmem:[%s1065_s1 + $0x40] sm:$0xff]   ;;  %v797_v20 = vld [vmem:[%s1066_s0 + $0x90] ss:$12 sps:$4 sm:$0xff]  }
   0x7   :  { %671 = vmatpush3.bf16.msra.mxu0 %v781_v3  ;;  %771 = vmatpush3.bf16.msra.mxu1 %v781_v3  ;;  %v793_v17 = vld [vmem:[%s1065_s1] sm:$0xff]   ;;  %v800_v19 = vld [vmem:[%s1065_s1 + $0x88] sm:$0xff]   ;;  %v811_v28 = vld [vmem:[%s1066_s0 + $0x30] ss:$12 sps:$4 sm:$0xff]  }
   0x8   :  { %672 = vmatprep.subr.bf16.mxu0 %v782_v4  ;;  %764 = vmatprep.subr.bf16.mxu1 %v782_v4  ;;  %v794_v18 = vld [vmem:[%s1066_s0] ss:$12 sps:$4 sm:$0xff]   ;;  %v801_v21 = vld [vmem:[%s1066_s0 + $0x1c] ss:$12 sps:$4 sm:$0xff]   ;;  %v805_v24 = vld [vmem:[%s1066_s0 + $0x18] ss:$12 sps:$4 sm:$0xff]  }
   0x9   :  { %v803_v22 = vld [vmem:[%s1066_s0 + $0xac] ss:$12 sps:$4 sm:$0xff]   ;;  %v807_v23 = vld [vmem:[%s1065_s1 + $0x80] sm:$0xff]   ;;  %v806_v25 = vld [vmem:[%s1066_s0 + $0xa8] ss:$12 sps:$4 sm:$0xff]  }
   0xa   :  { %v808_v26 = vld [vmem:[%s1066_s0 + $0x34] ss:$12 sps:$4 sm:$0xff]   ;;  %v813_v30 = vld [vmem:[%s1066_s0 + $0x4c] ss:$12 sps:$4 sm:$0xff]   ;;  %v817_v33 = vld [vmem:[%s1066_s0 + $0x50] ss:$12 sps:$4 sm:$0xff]  }
   0xb   :  { %673 = vmatpush3.bf16.msra.mxu0 %v783_v5  ;;  %772 = vmatpush3.bf16.msra.mxu1 %v783_v5  ;;  %v810_v27 = vld [vmem:[%s1066_s0 + $0x8] ss:$12 sps:$4 sm:$0xff]   ;;  %v812_v29 = vld [vmem:[%s1066_s0 + $0x20] ss:$12 sps:$4 sm:$0xff]   ;;  %v815_v31 = vld [vmem:[%s1066_s0 + $0x38] ss:$12 sps:$4 sm:$0xff]  }
   0xc   :  { %674 = vmatprep.subr.bf16.mxu0 %v784_v6  ;;  %765 = vmatprep.subr.bf16.mxu1 %v784_v6  ;;  %v816_v32 = vld [vmem:[%s1066_s0 + $0x48] ss:$12 sps:$4 sm:$0xff]   ;;  %v818_v34 = vld [vmem:[%s1066_s0 + $0x64] ss:$12 sps:$4 sm:$0xff]   ;;  %v821_v36 = vld [vmem:[%s1066_s0 + $0x60] ss:$12 sps:$4 sm:$0xff]  }
   0xd   :  { %v820_v35 = vld [vmem:[%s1066_s0 + $0x68] ss:$12 sps:$4 sm:$0xff]   ;;  %v822_v37 = vld [vmem:[%s1066_s0 + $0x80] ss:$12 sps:$4 sm:$0xff]   ;;  %v825_v39 = vld [vmem:[%s1066_s0 + $0x98] ss:$12 sps:$4 sm:$0xff]  }
   0xe   :  { %v823_v38 = vld [vmem:[%s1066_s0 + $0x7c] ss:$12 sps:$4 sm:$0xff]   ;;  %v826_v40 = vld [vmem:[%s1066_s0 + $0x78] ss:$12 sps:$4 sm:$0xff]  }
   0xf   :  { %675 = vmatpush3.bf16.msra.mxu0 %v785_v7  ;;  %773 = vmatpush3.bf16.msra.mxu1 %v785_v7  ;;  %v827_v41 = vld [vmem:[%s1066_s0 + $0xb0] ss:$12 sps:$4 sm:$0xff]  }
  0x10   :  { %676 = vmatprep.subr.bf16.mxu0 %v786_v8  ;;  %766 = vmatprep.subr.bf16.mxu1 %v786_v8 }
  0x13   :  { %677 = vmatpush3.bf16.msra.mxu0 %v787_v9  ;;  %774 = vmatpush3.bf16.msra.mxu1 %v787_v9 }
  0x14   :  { %678 = vmatprep.subr.bf16.mxu0 %v788_v10  ;;  %767 = vmatprep.subr.bf16.mxu1 %v788_v10 }
  0x17   :  { %679 = vmatpush3.bf16.msra.mxu0 %v789_v13  ;;  %775 = vmatpush3.bf16.msra.mxu1 %v789_v13 }
  0x18   :  { %680 = vmatprep.subr.bf16.mxu0 %v790_v14  ;;  %768 = vmatprep.subr.bf16.mxu1 %v790_v14 }
  0x1b   :  { %681 = vmatpush3.bf16.msra.mxu0 %v791_v15  ;;  %776 = vmatpush3.bf16.msra.mxu1 %v791_v15 }
  0x1c   :  { %682 = vmatprep.subr.bf16.mxu0 %v792_v16  ;;  %769 = vmatprep.subr.bf16.mxu1 %v792_v16 }
  0x1f   :  { %683 = vmatpush3.bf16.msra.mxu0 %v793_v17  ;;  %777 = vmatpush3.bf16.msra.mxu1 %v793_v17 }
  0x20   :  { %742 = vmatprep.subr.bf16.mxu1 %v800_v19 }
  0x22   :  { %369 = vmatmul.mubr.bf16.vlgmr.msra.gmra.mxu0 %v794_v18  ;;  %417 = vmatmul.mubr.bf16.vlgmr.msra.gmra.mxu1 %v797_v20 }
  0x23   :  { %743 = vmatpush3.bf16.msra.mxu1 %v800_v19  ;;  %376 = vmatprep.mubr.bf16.mxu0 %v801_v21 }
  0x24   :  { %424 = vmatprep.mubr.bf16.mxu1 %v803_v22  ;;  %744 = vmatprep.subr.bf16.mxu1 %v807_v23 }
  0x27   :  { %745 = vmatpush3.bf16.msra.mxu1 %v807_v23 }
  0x2a   :  { %377 = vmatmul.mubr.bf16.gmra.mxu0 %v805_v24  ;;  %425 = vmatmul.mubr.bf16.gmra.mxu1 %v806_v25 }
  0x2b   :  { %384 = vmatprep.mubr.bf16.mxu0 %v808_v26  ;;  %746 = vmatprep.mubr.msk.bf16.mxu1 %vm311_vm0, %v810_v27 }
  0x32   :  { %385 = vmatmul.mubr.bf16.gmra.mxu0 %v811_v28  ;;  %747 = vmatmul.mubr.msk.bf16.vlgmr.msra.gmra.mxu1 %vm311_vm0, %v812_v29 }
  0x33   :  { %392 = vmatprep.mubr.bf16.mxu0 %v813_v30  ;;  %750 = vmatprep.mubr.msk.bf16.mxu1 %vm311_vm0, %v815_v31 }
  0x3a   :  { %393 = vmatmul.mubr.bf16.gmra.mxu0 %v816_v32  ;;  %751 = vmatmul.mubr.msk.bf16.gmra.mxu1 %vm311_vm0, %v817_v33 }
  0x3b   :  { %400 = vmatprep.mubr.bf16.mxu0 %v818_v34  ;;  %754 = vmatprep.mubr.msk.bf16.mxu1 %vm311_vm0, %v820_v35 }
  0x42   :  { %401 = vmatmul.mubr.bf16.gmra.mxu0 %v821_v36  ;;  %755 = vmatmul.mubr.msk.bf16.gmra.mxu1 %vm311_vm0, %v822_v37 }
  0x43   :  { %408 = vmatprep.mubr.bf16.mxu0 %v823_v38  ;;  %758 = vmatprep.mubr.msk.bf16.mxu1 %vm311_vm0, %v825_v39 }
  0x4a   :  { %409 = vmatmul.mubr.bf16.gmra.mxu0 %v826_v40  ;;  %759 = vmatmul.mubr.msk.bf16.gmra.mxu1 %vm311_vm0, %v827_v41 }
  0xe2   :  { %v684_v42 = vpop.f32.mrf.mxu0  ;;  %v987_v43 = vpop.f32.mrf.mxu1 }
  0xe4   :  { %v685_v44 = vpop.f32.mrf.mxu0  ;;  %v989_v45 = vpop.f32.mrf.mxu1 }
  0xe5   :  { %v686_v61 = vadd.f32 %v685_v44, %v684_v42 }
  0xe6   :  { %v687_v46 = vpop.f32.mrf.mxu0  ;;  %v991_v47 = vpop.f32.mrf.mxu1 }
  0xe8   :  { %v688_v48 = vpop.f32.mrf.mxu0  ;;  %v993_v49 = vpop.f32.mrf.mxu1 }
  0xe9   :  { %v689_v5 = vadd.f32 %v688_v48, %v687_v46 }
  0xea   :  { %v690_v50 = vpop.f32.mrf.mxu0  ;;  %v995_v51 = vpop.f32.mrf.mxu1 }
  0xec   :  { %v691_v52 = vpop.f32.mrf.mxu0  ;;  %v997_v53 = vpop.f32.mrf.mxu1 }
  0xed   :  { %v692_v58 = vadd.f32 %v691_v52, %v690_v50 }
  0xee   :  { %v693_v54 = vpop.f32.mrf.mxu0  ;;  %v999_v55 = vpop.f32.mrf.mxu1 }
  0xf0   :  { %v694_v56 = vpop.f32.mrf.mxu0  ;;  %v1001_v57 = vpop.f32.mrf.mxu1 }
  0xf1   :  { %v695_v1 = vadd.f32 %v694_v56, %v693_v54 }
  0xf2   :  { %v696_v59 = vpop.f32.mrf.mxu0  ;;  %v748_v60 = vpop.f32.mrf.mxu1 }
  0xf3   :  { %v476_v62 = vadd.f32 %v748_v60, %v692_v58 }
  0xf4   :  { %v697_v63 = vpop.f32.mrf.mxu0  ;;  %v467_v0 = vpop.f32.mrf.mxu1 }
  0xf5   :  { %532 = vst [vmem:[%s1067_s2 + $0x10] sm:$0xff] %v476_v62  ;;  %v468_v2 = vadd.f32 %v686_v61, %v467_v0  ;;  %v698_v12 = vadd.f32 %v697_v63, %v696_v59  ;;  %v570_v16 = vmul.f32 %v476_v62, %v476_v62 }
  0xf6   :  { %v699_v3 = vpop.f32.mrf.mxu0  ;;  %v749_v4 = vpop.f32.mrf.mxu1 }
  0xf7   :  { %530 = vst [vmem:[%s1067_s2] sm:$0xff] %v468_v2  ;;  %v479_v6 = vadd.f32 %v749_v4, %v695_v1  ;;  %v568_v13 = vmul.f32 %v468_v2, %v468_v2 }
  0xf8   :  { %v700_v7 = vpop.f32.mrf.mxu0  ;;  %v470_v8 = vpop.f32.mrf.mxu1 }
  0xf9   :  { %533 = vst [vmem:[%s1067_s2 + $0x18] sm:$0xff] %v479_v6  ;;  %v471_v9 = vadd.f32 %v689_v5, %v470_v8  ;;  %v571_v25 = vmul.f32 %v479_v6, %v479_v6  ;;  %v701_v29 = vadd.f32 %v700_v7, %v699_v3  ;;  %v722_v7 = vadd.f32 %v989_v45, %v987_v43 }
  0xfa   :  { %v702_v10 = vpop.f32.mrf.mxu0  ;;  %v752_v11 = vpop.f32.mrf.mxu1 }
  0xfb   :  { %531 = vst [vmem:[%s1067_s2 + $0x8] sm:$0xff] %v471_v9  ;;  %v546_v14 = vadd.f32 %v471_v9, %v468_v2  ;;  %v569_v15 = vmul.f32 %v471_v9, %v471_v9 }
  0xfc   :  { %v703_v17 = vpop.f32.mrf.mxu0  ;;  %v483_v18 = vpop.f32.mrf.mxu1 }
  0xfd   :  { %v547_v19 = vadd.f32 %v546_v14, %v476_v62  ;;  %v584_v20 = vadd.f32 %v569_v15, %v568_v13  ;;  %v704_v21 = vadd.f32 %v703_v17, %v702_v10  ;;  %v484_v22 = vadd.f32 %v698_v12, %v483_v18 }
  0xfe   :  { %v705_v23 = vpop.f32.mrf.mxu0  ;;  %v753_v24 = vpop.f32.mrf.mxu1  ;;  %v728_v62 = vadd.f32 %v997_v53, %v995_v51  ;;  %v731_v51 = vadd.f32 %v1001_v57, %v999_v55  ;;  %v725_v55 = vadd.f32 %v993_v49, %v991_v47 }
  0xff   :  { %v585_v26 = vadd.f32 %v584_v20, %v570_v16  ;;  %v492_v27 = vadd.f32 %v752_v11, %v704_v21  ;;  %534 = vst [vmem:[%s1067_s2 + $0x20] sm:$0xff] %v484_v22  ;;  %v548_v28 = vadd.f32 %v547_v19, %v479_v6  ;;  %v572_v33 = vmul.f32 %v484_v22, %v484_v22 }
 0x100   :  { %v706_v30 = vpop.f32.mrf.mxu0  ;;  %v486_v31 = vpop.f32.mrf.mxu1 }
 0x101   :  { %536 = vst [vmem:[%s1067_s2 + $0x30] sm:$0xff] %v492_v27  ;;  %v549_v32 = vadd.f32 %v548_v28, %v484_v22  ;;  %v586_v34 = vadd.f32 %v585_v26, %v571_v25  ;;  %v707_v35 = vadd.f32 %v706_v30, %v705_v23  ;;  %v487_v36 = vadd.f32 %v701_v29, %v486_v31 }
 0x102   :  { %v708_v37 = vpop.f32.mrf.mxu0  ;;  %v756_v38 = vpop.f32.mrf.mxu1  ;;  %v574_v56 = vmul.f32 %v492_v27, %v492_v27 }
 0x103   :  { %v587_v39 = vadd.f32 %v586_v34, %v572_v33  ;;  %v495_v40 = vadd.f32 %v753_v24, %v707_v35  ;;  %535 = vst [vmem:[%s1067_s2 + $0x28] sm:$0xff] %v487_v36  ;;  %v550_v41 = vadd.f32 %v549_v32, %v487_v36  ;;  %v573_v42 = vmul.f32 %v487_v36, %v487_v36 }
 0x104   :  { %v709_v44 = vpop.f32.mrf.mxu0  ;;  %v499_v46 = vpop.f32.mrf.mxu1 }
 0x105   :  { %537 = vst [vmem:[%s1067_s2 + $0x38] sm:$0xff] %v495_v40  ;;  %v710_v48 = vadd.f32 %v709_v44, %v708_v37  ;;  %v588_v50 = vadd.f32 %v587_v39, %v573_v42  ;;  %v551_v58 = vadd.f32 %v550_v41, %v492_v27  ;;  %v575_v3 = vmul.f32 %v495_v40, %v495_v40 }
 0x106   :  { %v711_v52 = vpop.f32.mrf.mxu0  ;;  %v757_v54 = vpop.f32.mrf.mxu1 }
 0x107   :  { %v500_v59 = vadd.f32 %v710_v48, %v499_v46  ;;  %v589_v63 = vadd.f32 %v588_v50, %v574_v56  ;;  %v552_v4 = vadd.f32 %v551_v58, %v495_v40 }
 0x108   :  { %v712_v60 = vpop.f32.mrf.mxu0  ;;  %v502_v61 = vpop.f32.mrf.mxu1 }
 0x109   :  { %538 = vst [vmem:[%s1067_s2 + $0x40] sm:$0xff] %v500_v59  ;;  %v713_v0 = vadd.f32 %v712_v60, %v711_v52  ;;  %v576_v53 = vmul.f32 %v500_v59, %v500_v59  ;;  %v590_v10 = vadd.f32 %v589_v63, %v575_v3  ;;  %v553_v43 = vadd.f32 %v552_v4, %v500_v59 }
 0x10a   :  { %v714_v1 = vpop.f32.mrf.mxu0  ;;  %v760_v2 = vpop.f32.mrf.mxu1 }
 0x10b   :  { %v503_v5 = vadd.f32 %v713_v0, %v502_v61  ;;  %v524_v6 = vadd.f32 %v760_v2, %v728_v62  ;;  %v591_v18 = vadd.f32 %v590_v10, %v576_v53 }
 0x10c   :  { %v715_v8 = vpop.f32.mrf.mxu0  ;;  %v515_v9 = vpop.f32.mrf.mxu1 }
 0x10d   :  { %539 = vst [vmem:[%s1067_s2 + $0x48] sm:$0xff] %v503_v5  ;;  %544 = vst [vmem:[%s1067_s2 + $0x70] sm:$0xff] %v524_v6  ;;  %v716_v11 = vadd.f32 %v715_v8, %v714_v1  ;;  %v516_v12 = vadd.f32 %v722_v7, %v515_v9  ;;  %v577_v45 = vmul.f32 %v503_v5, %v503_v5 }
 0x10e   :  { %v717_v13 = vpop.f32.mrf.mxu0  ;;  %v761_v14 = vpop.f32.mrf.mxu1  ;;  %v554_v19 = vadd.f32 %v553_v43, %v503_v5  ;;  %v582_v33 = vmul.f32 %v524_v6, %v524_v6 }
 0x10f   :  { %v508_v15 = vadd.f32 %v756_v38, %v716_v11  ;;  %v527_v16 = vadd.f32 %v761_v14, %v731_v51  ;;  %542 = vst [vmem:[%s1067_s2 + $0x60] sm:$0xff] %v516_v12  ;;  %v592_v47 = vadd.f32 %v591_v18, %v577_v45  ;;  %v580_v27 = vmul.f32 %v516_v12, %v516_v12 }
 0x110   :  { %v718_v57 = vpop.f32.mrf.mxu0  ;;  %v518_v17 = vpop.f32.mrf.mxu1 }
 0x111   :  { %540 = vst [vmem:[%s1067_s2 + $0x50] sm:$0xff] %v508_v15  ;;  %v578_v20 = vmul.f32 %v508_v15, %v508_v15  ;;  %545 = vst [vmem:[%s1067_s2 + $0x78] sm:$0xff] %v527_v16  ;;  %v719_v21 = vadd.f32 %v718_v57, %v717_v13  ;;  %v519_v22 = vadd.f32 %v725_v55, %v518_v17 }
 0x112   :  { %v555_v49 = vadd.f32 %v554_v19, %v508_v15  ;;  %v583_v36 = vmul.f32 %v527_v16, %v527_v16 }
 0x113   :  { %v511_v23 = vadd.f32 %v757_v54, %v719_v21  ;;  %543 = vst [vmem:[%s1067_s2 + $0x68] sm:$0xff] %v519_v22  ;;  %v593_v24 = vadd.f32 %v592_v47, %v578_v20  ;;  %v581_v31 = vmul.f32 %v519_v22, %v519_v22 }
 0x115   :  { %541 = vst [vmem:[%s1067_s2 + $0x58] sm:$0xff] %v511_v23  ;;  %v556_v25 = vadd.f32 %v555_v49, %v511_v23  ;;  %v579_v26 = vmul.f32 %v511_v23, %v511_v23 }
 0x117   :  { %v594_v28 = vadd.f32 %v593_v24, %v579_v26  ;;  %v557_v29 = vadd.f32 %v556_v25, %v516_v12 }
 0x119   :  { %v558_v30 = vadd.f32 %v557_v29, %v519_v22  ;;  %v595_v32 = vadd.f32 %v594_v28, %v580_v27 }
 0x11b   :  { %v559_v34 = vadd.f32 %v558_v30, %v524_v6  ;;  %v596_v35 = vadd.f32 %v595_v32, %v581_v31 }
 0x11d   :  { %v560_v37 = vadd.f32 %v559_v34, %v527_v16  ;;  %v597_v38 = vadd.f32 %v596_v35, %v582_v33 }
 0x11f   :  { %v561_v39 = vrot.slane %v560_v37, 4  ;;  %v598_v40 = vadd.f32 %v597_v38, %v583_v36 }
 0x121   :  { %v562_v41 = vadd.f32 %v561_v39, %v560_v37  ;;  %v599_v42 = vrot.slane %v598_v40, 4 }
 0x123   :  { %v563_v44 = vrot.slane %v562_v41, 2  ;;  %v600_v46 = vadd.f32 %v599_v42, %v598_v40 }
 0x125   :  { %v564_v48 = vadd.f32 %v563_v44, %v562_v41  ;;  %v601_v50 = vrot.slane %v600_v46, 2 }
 0x127   :  { %v565_v52 = vrot.slane %v564_v48, 1  ;;  %v602_v54 = vadd.f32 %v601_v50, %v600_v46 }
 0x129   :  { %v566_v56 = vadd.f32 %v565_v52, %v564_v48  ;;  %v603_v58 = vrot.slane %v602_v54, 1 }
 0x12b   :  { %567 = vst [vmem:[%s1068_s3] sm:$0x1] %v566_v56  ;;  %v604_v59 = vadd.f32 %v603_v58, %v602_v54 }
 0x12d   :  { %605 = vst [vmem:[%s1069_s4] sm:$0x1] %v604_v59 }

// kernel: unet_forward.44
= control target key start
LH: loop header
LB: loop body
LE: loop exit
PB: predicated region body
PF: predicated region fallthrough
CT: control target
= control target key end

     0   :  { %v410_v0 = vmov 0   ;;  %vm182_vm0 = vcmask 130048   ;;  %s565_s1 = inlined_call_operand.vmem [shape: bf16[144,128], index: 1, kind: input, shape index: {}]   ;;  %s566_s0 = inlined_call_operand.vmem [shape: bf16[128,144], index: 0, kind: input, shape index: {}]   ;;  %s567_s2 = inlined_call_operand.vmem [shape: f32[1,128], index: 2, kind: input, shape index: {}]   ;;  %s568_s3 = inlined_call_operand.vmem [shape: f32[128,128], index: 3, kind: output, shape index: {}]  }
   0x1   :  { %207 = vmatprep.subr.bf16.mxu0 %v410_v0  ;;  %358 = vmatprep.subr.bf16.mxu1 %v410_v0  ;;  %v377_v1 = vld [vmem:[%s565_s1 + $0x38] sm:$0xff]   ;;  %v378_v2 = vld [vmem:[%s565_s1 + $0x30] sm:$0xff]   ;;  %v379_v3 = vld [vmem:[%s565_s1 + $0x28] sm:$0xff]  }
   0x2   :  { %208 = vmatpush1.bf16.msra.mxu0 %v377_v1  ;;  %367 = vmatpush1.bf16.msra.mxu1 %v377_v1  ;;  %v380_v4 = vld [vmem:[%s565_s1 + $0x20] sm:$0xff]   ;;  %v381_v7 = vld [vmem:[%s565_s1 + $0x18] sm:$0xff]   ;;  %v382_v8 = vld [vmem:[%s565_s1 + $0x10] sm:$0xff]  }
   0x3   :  { %209 = vmatprep.subr.bf16.mxu0 %v410_v0  ;;  %359 = vmatprep.subr.bf16.mxu1 %v410_v0  ;;  %v388_v5 = vld [vmem:[%s566_s0 + $0x4] ss:$8 sps:$4 sm:$0xff]   ;;  %v386_v12 = vld [vmem:[%s566_s0] ss:$8 sps:$4 sm:$0xff]   ;;  %v392_v14 = vld [vmem:[%s566_s0 + $0x14] ss:$8 sps:$4 sm:$0xff]  }
   0x4   :  { %v391_v6 = vld [vmem:[%s566_s0 + $0x44] ss:$8 sps:$4 sm:$0xff]   ;;  %350 = vmatprep.mubr.msk.bf16.mxu0 %vm182_vm0, %v388_v5  ;;  %v389_v13 = vld [vmem:[%s566_s0 + $0x40] ss:$8 sps:$4 sm:$0xff]   ;;  %v394_v15 = vld [vmem:[%s566_s0 + $0x54] ss:$8 sps:$4 sm:$0xff]  }
   0x5   :  { %354 = vmatprep.mubr.msk.bf16.mxu1 %vm182_vm0, %v391_v6  ;;  %v383_v9 = vld [vmem:[%s565_s1 + $0x8] sm:$0xff]   ;;  %v384_v10 = vld [vmem:[%s565_s1] sm:$0xff]   ;;  %v396_v16 = vld [vmem:[%s566_s0 + $0x10] ss:$8 sps:$4 sm:$0xff]  }
   0x6   :  { %210 = vmatpush1.bf16.msra.mxu0 %v378_v2  ;;  %368 = vmatpush1.bf16.msra.mxu1 %v378_v2  ;;  %v385_v11 = vld [vmem:[%s565_s1 + $0x40] sm:$0xff]   ;;  %v397_v17 = vld [vmem:[%s566_s0 + $0x50] ss:$8 sps:$4 sm:$0xff]   ;;  %v404_v22 = vld [vmem:[%s566_s0 + $0x34] ss:$8 sps:$4 sm:$0xff]  }
   0x7   :  { %211 = vmatprep.subr.bf16.mxu0 %v410_v0  ;;  %360 = vmatprep.subr.bf16.mxu1 %v410_v0  ;;  %v398_v18 = vld [vmem:[%s566_s0 + $0x24] ss:$8 sps:$4 sm:$0xff]   ;;  %v402_v20 = vld [vmem:[%s566_s0 + $0x20] ss:$8 sps:$4 sm:$0xff]   ;;  %v406_v23 = vld [vmem:[%s566_s0 + $0x74] ss:$8 sps:$4 sm:$0xff]  }
   0x8   :  { %v400_v19 = vld [vmem:[%s566_s0 + $0x64] ss:$8 sps:$4 sm:$0xff]   ;;  %v403_v21 = vld [vmem:[%s566_s0 + $0x60] ss:$8 sps:$4 sm:$0xff]   ;;  %v408_v24 = vld [vmem:[%s566_s0 + $0x30] ss:$8 sps:$4 sm:$0xff]  }
   0x9   :  { %v409_v25 = vld [vmem:[%s566_s0 + $0x70] ss:$8 sps:$4 sm:$0xff]   ;;  %v324_v26 = vld [vmem:[%s567_s2] ss:$0 sm:$0xff] }
   0xa   :  { %212 = vmatpush1.bf16.msra.mxu0 %v379_v3  ;;  %369 = vmatpush1.bf16.msra.mxu1 %v379_v3 }
   0xb   :  { %213 = vmatprep.subr.bf16.mxu0 %v410_v0  ;;  %361 = vmatprep.subr.bf16.mxu1 %v410_v0 }
   0xe   :  { %214 = vmatpush1.bf16.msra.mxu0 %v380_v4  ;;  %370 = vmatpush1.bf16.msra.mxu1 %v380_v4 }
   0xf   :  { %215 = vmatprep.subr.bf16.mxu0 %v410_v0  ;;  %362 = vmatprep.subr.bf16.mxu1 %v410_v0 }
  0x12   :  { %216 = vmatpush1.bf16.msra.mxu0 %v381_v7  ;;  %371 = vmatpush1.bf16.msra.mxu1 %v381_v7 }
  0x13   :  { %217 = vmatprep.subr.bf16.mxu0 %v410_v0  ;;  %363 = vmatprep.subr.bf16.mxu1 %v410_v0 }
  0x16   :  { %218 = vmatpush1.bf16.msra.mxu0 %v382_v8  ;;  %372 = vmatpush1.bf16.msra.mxu1 %v382_v8 }
  0x17   :  { %219 = vmatprep.subr.bf16.mxu0 %v410_v0  ;;  %364 = vmatprep.subr.bf16.mxu1 %v410_v0 }
  0x1a   :  { %220 = vmatpush1.bf16.msra.mxu0 %v383_v9  ;;  %373 = vmatpush1.bf16.msra.mxu1 %v383_v9 }
  0x1b   :  { %221 = vmatprep.subr.bf16.mxu0 %v410_v0  ;;  %365 = vmatprep.subr.bf16.mxu1 %v410_v0 }
  0x1e   :  { %222 = vmatpush1.bf16.msra.mxu0 %v384_v10  ;;  %374 = vmatpush1.bf16.msra.mxu1 %v384_v10 }
  0x1f   :  { %237 = vmatprep.subr.bf16.mxu0 %v410_v0  ;;  %366 = vmatprep.subr.bf16.mxu1 %v410_v0 }
  0x22   :  { %238 = vmatpush2.bf16.msra.mxu0 %v385_v11  ;;  %375 = vmatpush2.bf16.msra.mxu1 %v385_v11 }
  0x25   :  { %240 = vmatmul.mubr.bf16.vlgmr.msra.gmra.mxu0 %v386_v12  ;;  %272 = vmatmul.mubr.bf16.vlgmr.msra.gmra.mxu1 %v389_v13 }
  0x26   :  { %351 = vmatprep.mubr.msk.bf16.mxu0 %vm182_vm0, %v392_v14  ;;  %355 = vmatprep.mubr.msk.bf16.mxu1 %vm182_vm0, %v394_v15 }
  0x2d   :  { %248 = vmatmul.mubr.bf16.gmra.mxu0 %v396_v16  ;;  %280 = vmatmul.mubr.bf16.gmra.mxu1 %v397_v17 }
  0x2e   :  { %352 = vmatprep.mubr.msk.bf16.mxu0 %vm182_vm0, %v398_v18  ;;  %356 = vmatprep.mubr.msk.bf16.mxu1 %vm182_vm0, %v400_v19 }
  0x35   :  { %256 = vmatmul.mubr.bf16.gmra.mxu0 %v402_v20  ;;  %288 = vmatmul.mubr.bf16.gmra.mxu1 %v403_v21 }
  0x36   :  { %353 = vmatprep.mubr.msk.bf16.mxu0 %vm182_vm0, %v404_v22  ;;  %357 = vmatprep.mubr.msk.bf16.mxu1 %vm182_vm0, %v406_v23 }
  0x3d   :  { %264 = vmatmul.mubr.bf16.gmra.mxu0 %v408_v24  ;;  %296 = vmatmul.mubr.bf16.gmra.mxu1 %v409_v25 }
  0xe5   :  { %v241_v27 = vpop.f32.mrf.mxu0  ;;  %v273_v28 = vpop.f32.mrf.mxu1 }
  0xe6   :  { %v242_v29 = vadd.f32 %v324_v26, %v241_v27  ;;  %v274_v30 = vadd.f32 %v324_v26, %v273_v28 }
  0xe7   :  { %v243_v31 = vpop.f32.mrf.mxu0  ;;  %v275_v32 = vpop.f32.mrf.mxu1 }
  0xe8   :  { %304 = vst [vmem:[%s568_s3] sm:$0xff] %v242_v29  ;;  %312 = vst [vmem:[%s568_s3 + $0x40] sm:$0xff] %v274_v30 }
  0xe9   :  { %v244_v33 = vpop.f32.mrf.mxu0  ;;  %v276_v34 = vpop.f32.mrf.mxu1 }
  0xea   :  { %v245_v35 = vadd.f32 %v324_v26, %v244_v33  ;;  %v277_v36 = vadd.f32 %v324_v26, %v276_v34 }
  0xeb   :  { %v246_v37 = vpop.f32.mrf.mxu0  ;;  %v278_v38 = vpop.f32.mrf.mxu1 }
  0xec   :  { %305 = vst [vmem:[%s568_s3 + $0x8] sm:$0xff] %v245_v35  ;;  %313 = vst [vmem:[%s568_s3 + $0x48] sm:$0xff] %v277_v36 }
  0xed   :  { %v249_v39 = vpop.f32.mrf.mxu0  ;;  %v281_v40 = vpop.f32.mrf.mxu1 }
  0xee   :  { %v250_v41 = vadd.f32 %v324_v26, %v249_v39  ;;  %v282_v42 = vadd.f32 %v324_v26, %v281_v40 }
  0xef   :  { %v251_v43 = vpop.f32.mrf.mxu0  ;;  %v283_v44 = vpop.f32.mrf.mxu1 }
  0xf0   :  { %306 = vst [vmem:[%s568_s3 + $0x10] sm:$0xff] %v250_v41  ;;  %314 = vst [vmem:[%s568_s3 + $0x50] sm:$0xff] %v282_v42 }
  0xf1   :  { %v252_v45 = vpop.f32.mrf.mxu0  ;;  %v284_v46 = vpop.f32.mrf.mxu1 }
  0xf2   :  { %v253_v47 = vadd.f32 %v324_v26, %v252_v45  ;;  %v285_v48 = vadd.f32 %v324_v26, %v284_v46 }
  0xf3   :  { %v254_v49 = vpop.f32.mrf.mxu0  ;;  %v286_v50 = vpop.f32.mrf.mxu1 }
  0xf4   :  { %307 = vst [vmem:[%s568_s3 + $0x18] sm:$0xff] %v253_v47  ;;  %315 = vst [vmem:[%s568_s3 + $0x58] sm:$0xff] %v285_v48 }
  0xf5   :  { %v257_v51 = vpop.f32.mrf.mxu0  ;;  %v289_v52 = vpop.f32.mrf.mxu1 }
  0xf6   :  { %v258_v53 = vadd.f32 %v324_v26, %v257_v51  ;;  %v290_v54 = vadd.f32 %v324_v26, %v289_v52 }
  0xf7   :  { %v259_v55 = vpop.f32.mrf.mxu0  ;;  %v291_v56 = vpop.f32.mrf.mxu1 }
  0xf8   :  { %308 = vst [vmem:[%s568_s3 + $0x20] sm:$0xff] %v258_v53  ;;  %316 = vst [vmem:[%s568_s3 + $0x60] sm:$0xff] %v290_v54 }
  0xf9   :  { %v260_v57 = vpop.f32.mrf.mxu0  ;;  %v292_v58 = vpop.f32.mrf.mxu1 }
  0xfa   :  { %v261_v59 = vadd.f32 %v324_v26, %v260_v57  ;;  %v293_v60 = vadd.f32 %v324_v26, %v292_v58 }
  0xfb   :  { %v262_v61 = vpop.f32.mrf.mxu0  ;;  %v294_v62 = vpop.f32.mrf.mxu1 }
  0xfc   :  { %309 = vst [vmem:[%s568_s3 + $0x28] sm:$0xff] %v261_v59  ;;  %317 = vst [vmem:[%s568_s3 + $0x68] sm:$0xff] %v293_v60 }
  0xfd   :  { %v265_v63 = vpop.f32.mrf.mxu0  ;;  %v297_v0 = vpop.f32.mrf.mxu1 }
  0xfe   :  { %v266_v1 = vadd.f32 %v324_v26, %v265_v63  ;;  %v298_v2 = vadd.f32 %v324_v26, %v297_v0 }
  0xff   :  { %v267_v3 = vpop.f32.mrf.mxu0  ;;  %v299_v4 = vpop.f32.mrf.mxu1 }
 0x100   :  { %310 = vst [vmem:[%s568_s3 + $0x30] sm:$0xff] %v266_v1  ;;  %318 = vst [vmem:[%s568_s3 + $0x70] sm:$0xff] %v298_v2 }
 0x101   :  { %v268_v5 = vpop.f32.mrf.mxu0  ;;  %v300_v6 = vpop.f32.mrf.mxu1 }
 0x102   :  { %v269_v7 = vadd.f32 %v324_v26, %v268_v5  ;;  %v301_v8 = vadd.f32 %v324_v26, %v300_v6 }
 0x103   :  { %v270_v9 = vpop.f32.mrf.mxu0  ;;  %v302_v10 = vpop.f32.mrf.mxu1 }
 0x104   :  { %311 = vst [vmem:[%s568_s3 + $0x38] sm:$0xff] %v269_v7  ;;  %319 = vst [vmem:[%s568_s3 + $0x78] sm:$0xff] %v301_v8 }

// kernel: unet_forward.45
= control target key start
LH: loop header
LB: loop body
LE: loop exit
PB: predicated region body
PF: predicated region fallthrough
CT: control target
= control target key end

     0   :  { %s1254_s15 = smov 0   ;;  %s1256_s16 = smov 0   ;;  %s1500_s0 = inlined_call_operand.vmem [shape: bf16[512,144], index: 0, kind: input, shape index: {}]   ;;  %s1501_s1 = inlined_call_operand.vmem [shape: bf16[144,128], index: 1, kind: input, shape index: {}]   ;;  %s1502_s2 = inlined_call_operand.vmem [shape: f32[512,128], index: 2, kind: output, shape index: {0}]   ;;  %s1503_s3 = inlined_call_operand.vmem [shape: f32[2,1,128], index: 3, kind: output, shape index: {1}]   ;;  %s1504_s4 = inlined_call_operand.vmem [shape: f32[2,1,128], index: 4, kind: output, shape index: {2}]  }
   0x1   :  { %s1258_s17 = smov 0  }
   0x2 LB: > { %s27_s18 = sadd.s32 1, %s1222_s16  ;;  %p1038_p0 = scmp.ge.s32.totalorder %s1226_s17, 1  ;;  %s1226_s17 = sphi %s1258_s17, %s15_s17   ;;  %s1222_s16 = sphi %s1256_s16, %s1506_s16   ;;  %s1218_s15 = sphi %s1254_s15, %s1505_s15  }
   0x3   : > { %p29_p1 = scmp.ge.s32.totalorder %s27_s18, 2  ;;  %p196_p2 = scmp.lt.s32.totalorder %s1226_s17, 3 }
   0x5   : > { %s1508_s18 = smov (%p29_p1, %s27_s18), 0  ;;  %p197_p3 = pnand %p1038_p0, %p196_p2 }
   0x6   : > { %s1039_s21 = sshll.u32 (!%p197_p3), %s1218_s15, 5  ;;  %p262_p5 = scmp.lt.s32.totalorder (!%p197_p3), %s1218_s15, 1 }
   0x7   : > { %200 = sbr.rel (%p197_p3) target bundleno = 351 (0x15f), region = 28  ;;  %p243_p4 = scmp.lt.s32.totalorder (!%p197_p3), %s1039_s21, 63 }
   0xc   : > { %v1147_v0 = vld [vmem:[%s1501_s1 + $0x38] sm:$0xff]   ;;  %v1228_v1 = vmov 0   ;;  %v1148_v2 = vld [vmem:[%s1501_s1 + $0x30] sm:$0xff]   ;;  %s1510_s21 = smov (!%p243_p4, %s1039_s21), 63  ;;  %v1149_v3 = vld [vmem:[%s1501_s1 + $0x28] sm:$0xff]   ;;  %vm523_vm0 = vcmask 130048  }
   0xd   : > { %572 = vmatprep.subr.bf16.mxu0 %v1228_v1  ;;  %1104 = vmatprep.subr.bf16.mxu1 %v1228_v1  ;;  %s1103_s26 = sshll.u32 %s1510_s21, 3  ;;  %v1150_v4 = vld [vmem:[%s1501_s1 + $0x20] sm:$0xff]   ;;  %v1151_v6 = vld [vmem:[%s1501_s1 + $0x18] sm:$0xff]   ;;  %v1152_v8 = vld [vmem:[%s1501_s1 + $0x10] sm:$0xff]   ;;  %s1512_s15 = smov (!%p262_p5, %s1218_s15), 1 }
   0xe   : > { %573 = vmatpush1.bf16.msra.mxu0 %v1147_v0  ;;  %1113 = vmatpush1.bf16.msra.mxu1 %v1147_v0  ;;  %s1292_s29 = scalar_lea.vmem %s1500_s0, %s1103_s26  ;;  %v1153_v9 = vld [vmem:[%s1501_s1 + $0x8] sm:$0xff]   ;;  %v1154_v10 = vld [vmem:[%s1501_s1] sm:$0xff]   ;;  %s1365_s23 = scalar_lea.vmem %s1502_s2, %s1103_s26 }
   0xf   : > { %574 = vmatprep.subr.bf16.mxu0 %v1228_v1  ;;  %1105 = vmatprep.subr.bf16.mxu1 %v1228_v1  ;;  %v1158_v5 = vld [vmem:[%s1292_s29 + $0x4] ss:$8 sps:$4 sm:$0xff]   ;;  %v1156_v12 = vld [vmem:[%s1292_s29] ss:$8 sps:$4 sm:$0xff]   ;;  %v1159_v14 = vld [vmem:[%s1292_s29 + $0x14] ss:$8 sps:$4 sm:$0xff]   ;;  %s267_s25 = scalar_lea.vmem %s1503_s3, %s1512_s15  ;;  %s273_s28 = scalar_lea.vmem %s1504_s4, %s1512_s15 }
  0x10   : > { %1085 = vmatprep.mubr.msk.bf16.mxu0 %vm523_vm0, %v1158_v5  ;;  %v1170_v7 = vld [vmem:[%s1292_s29 + $0x84] ss:$8 sps:$4 sm:$0xff]   ;;  %v1168_v13 = vld [vmem:[%s1292_s29 + $0x80] ss:$8 sps:$4 sm:$0xff]   ;;  %v1174_v15 = vld [vmem:[%s1292_s29 + $0x94] ss:$8 sps:$4 sm:$0xff]  }
  0x11   : > { %1093 = vmatprep.mubr.msk.bf16.mxu1 %vm523_vm0, %v1170_v7  ;;  %v1155_v11 = vld [vmem:[%s1501_s1 + $0x40] sm:$0xff]   ;;  %v1161_v16 = vld [vmem:[%s1292_s29 + $0x10] ss:$8 sps:$4 sm:$0xff]   ;;  %v1165_v22 = vld [vmem:[%s1292_s29 + $0x34] ss:$8 sps:$4 sm:$0xff]  }
  0x12   : > { %575 = vmatpush1.bf16.msra.mxu0 %v1148_v2  ;;  %1114 = vmatpush1.bf16.msra.mxu1 %v1148_v2  ;;  %v1176_v17 = vld [vmem:[%s1292_s29 + $0x90] ss:$8 sps:$4 sm:$0xff]   ;;  %v1162_v18 = vld [vmem:[%s1292_s29 + $0x24] ss:$8 sps:$4 sm:$0xff]   ;;  %v1164_v20 = vld [vmem:[%s1292_s29 + $0x20] ss:$8 sps:$4 sm:$0xff]  }
  0x13   : > { %576 = vmatprep.subr.bf16.mxu0 %v1228_v1  ;;  %1106 = vmatprep.subr.bf16.mxu1 %v1228_v1  ;;  %v1180_v19 = vld [vmem:[%s1292_s29 + $0xa4] ss:$8 sps:$4 sm:$0xff]   ;;  %v1182_v21 = vld [vmem:[%s1292_s29 + $0xa0] ss:$8 sps:$4 sm:$0xff]   ;;  %v1186_v23 = vld [vmem:[%s1292_s29 + $0xb4] ss:$8 sps:$4 sm:$0xff]  }
  0x14   : > { %v1167_v24 = vld [vmem:[%s1292_s29 + $0x30] ss:$8 sps:$4 sm:$0xff]   ;;  %v1171_v26 = vld [vmem:[%s1292_s29 + $0x44] ss:$8 sps:$4 sm:$0xff]   ;;  %v1173_v28 = vld [vmem:[%s1292_s29 + $0x40] ss:$8 sps:$4 sm:$0xff]  }
  0x15   : > { %v1188_v25 = vld [vmem:[%s1292_s29 + $0xb0] ss:$8 sps:$4 sm:$0xff]   ;;  %v1192_v27 = vld [vmem:[%s1292_s29 + $0xc4] ss:$8 sps:$4 sm:$0xff]   ;;  %v1194_v29 = vld [vmem:[%s1292_s29 + $0xc0] ss:$8 sps:$4 sm:$0xff]  }
  0x16   : > { %577 = vmatpush1.bf16.msra.mxu0 %v1149_v3  ;;  %1115 = vmatpush1.bf16.msra.mxu1 %v1149_v3  ;;  %v1177_v30 = vld [vmem:[%s1292_s29 + $0x54] ss:$8 sps:$4 sm:$0xff]   ;;  %v1179_v32 = vld [vmem:[%s1292_s29 + $0x50] ss:$8 sps:$4 sm:$0xff]   ;;  %v1183_v34 = vld [vmem:[%s1292_s29 + $0x64] ss:$8 sps:$4 sm:$0xff]  }
  0x17   : > { %578 = vmatprep.subr.bf16.mxu0 %v1228_v1  ;;  %1107 = vmatprep.subr.bf16.mxu1 %v1228_v1  ;;  %v1195_v31 = vld [vmem:[%s1292_s29 + $0xd4] ss:$8 sps:$4 sm:$0xff]   ;;  %v1197_v33 = vld [vmem:[%s1292_s29 + $0xd0] ss:$8 sps:$4 sm:$0xff]   ;;  %v1198_v35 = vld [vmem:[%s1292_s29 + $0xe4] ss:$8 sps:$4 sm:$0xff]  }
  0x18   : > { %v1185_v36 = vld [vmem:[%s1292_s29 + $0x60] ss:$8 sps:$4 sm:$0xff]   ;;  %v1189_v38 = vld [vmem:[%s1292_s29 + $0x74] ss:$8 sps:$4 sm:$0xff]   ;;  %v1191_v40 = vld [vmem:[%s1292_s29 + $0x70] ss:$8 sps:$4 sm:$0xff]  }
  0x19   : > { %v1200_v37 = vld [vmem:[%s1292_s29 + $0xe0] ss:$8 sps:$4 sm:$0xff]   ;;  %v1201_v39 = vld [vmem:[%s1292_s29 + $0xf4] ss:$8 sps:$4 sm:$0xff]   ;;  %v1203_v41 = vld [vmem:[%s1292_s29 + $0xf0] ss:$8 sps:$4 sm:$0xff]  }
  0x1a   : > { %579 = vmatpush1.bf16.msra.mxu0 %v1150_v4  ;;  %1116 = vmatpush1.bf16.msra.mxu1 %v1150_v4 }
  0x1b   : > { %580 = vmatprep.subr.bf16.mxu0 %v1228_v1  ;;  %1108 = vmatprep.subr.bf16.mxu1 %v1228_v1 }
  0x1e   : > { %581 = vmatpush1.bf16.msra.mxu0 %v1151_v6  ;;  %1117 = vmatpush1.bf16.msra.mxu1 %v1151_v6 }
  0x1f   : > { %582 = vmatprep.subr.bf16.mxu0 %v1228_v1  ;;  %1109 = vmatprep.subr.bf16.mxu1 %v1228_v1 }
  0x22   : > { %583 = vmatpush1.bf16.msra.mxu0 %v1152_v8  ;;  %1118 = vmatpush1.bf16.msra.mxu1 %v1152_v8 }
  0x23   : > { %584 = vmatprep.subr.bf16.mxu0 %v1228_v1  ;;  %1110 = vmatprep.subr.bf16.mxu1 %v1228_v1 }
  0x26   : > { %585 = vmatpush1.bf16.msra.mxu0 %v1153_v9  ;;  %1119 = vmatpush1.bf16.msra.mxu1 %v1153_v9 }
  0x27   : > { %586 = vmatprep.subr.bf16.mxu0 %v1228_v1  ;;  %1111 = vmatprep.subr.bf16.mxu1 %v1228_v1 }
  0x2a   : > { %587 = vmatpush1.bf16.msra.mxu0 %v1154_v10  ;;  %1120 = vmatpush1.bf16.msra.mxu1 %v1154_v10 }
  0x2b   : > { %602 = vmatprep.subr.bf16.mxu0 %v1228_v1  ;;  %1112 = vmatprep.subr.bf16.mxu1 %v1228_v1 }
  0x2e   : > { %603 = vmatpush2.bf16.msra.mxu0 %v1155_v11  ;;  %1121 = vmatpush2.bf16.msra.mxu1 %v1155_v11 }
  0x31   : > { %605 = vmatmul.mubr.bf16.vlgmr.msra.gmra.mxu0 %v1156_v12  ;;  %669 = vmatmul.mubr.bf16.vlgmr.msra.gmra.mxu1 %v1168_v13 }
  0x32   : > { %1086 = vmatprep.mubr.msk.bf16.mxu0 %vm523_vm0, %v1159_v14  ;;  %1094 = vmatprep.mubr.msk.bf16.mxu1 %vm523_vm0, %v1174_v15 }
  0x39   : > { %613 = vmatmul.mubr.bf16.gmra.mxu0 %v1161_v16  ;;  %677 = vmatmul.mubr.bf16.gmra.mxu1 %v1176_v17 }
  0x3a   : > { %1087 = vmatprep.mubr.msk.bf16.mxu0 %vm523_vm0, %v1162_v18  ;;  %1095 = vmatprep.mubr.msk.bf16.mxu1 %vm523_vm0, %v1180_v19 }
  0x41   : > { %621 = vmatmul.mubr.bf16.gmra.mxu0 %v1164_v20  ;;  %685 = vmatmul.mubr.bf16.gmra.mxu1 %v1182_v21 }
  0x42   : > { %1088 = vmatprep.mubr.msk.bf16.mxu0 %vm523_vm0, %v1165_v22  ;;  %1096 = vmatprep.mubr.msk.bf16.mxu1 %vm523_vm0, %v1186_v23 }
  0x49   : > { %629 = vmatmul.mubr.bf16.gmra.mxu0 %v1167_v24  ;;  %693 = vmatmul.mubr.bf16.gmra.mxu1 %v1188_v25 }
  0x4a   : > { %1089 = vmatprep.mubr.msk.bf16.mxu0 %vm523_vm0, %v1171_v26  ;;  %1097 = vmatprep.mubr.msk.bf16.mxu1 %vm523_vm0, %v1192_v27 }
  0x51   : > { %637 = vmatmul.mubr.bf16.gmra.mxu0 %v1173_v28  ;;  %701 = vmatmul.mubr.bf16.gmra.mxu1 %v1194_v29 }
  0x52   : > { %1090 = vmatprep.mubr.msk.bf16.mxu0 %vm523_vm0, %v1177_v30  ;;  %1098 = vmatprep.mubr.msk.bf16.mxu1 %vm523_vm0, %v1195_v31 }
  0x59   : > { %645 = vmatmul.mubr.bf16.gmra.mxu0 %v1179_v32  ;;  %709 = vmatmul.mubr.bf16.gmra.mxu1 %v1197_v33 }
  0x5a   : > { %1091 = vmatprep.mubr.msk.bf16.mxu0 %vm523_vm0, %v1183_v34  ;;  %1099 = vmatprep.mubr.msk.bf16.mxu1 %vm523_vm0, %v1198_v35 }
  0x61   : > { %653 = vmatmul.mubr.bf16.gmra.mxu0 %v1185_v36  ;;  %717 = vmatmul.mubr.bf16.gmra.mxu1 %v1200_v37 }
  0x62   : > { %1092 = vmatprep.mubr.msk.bf16.mxu0 %vm523_vm0, %v1189_v38  ;;  %1100 = vmatprep.mubr.msk.bf16.mxu1 %vm523_vm0, %v1201_v39 }
  0x69   : > { %661 = vmatmul.mubr.bf16.gmra.mxu0 %v1191_v40  ;;  %725 = vmatmul.mubr.bf16.gmra.mxu1 %v1203_v41 }
  0xf1   : > { %v606_v42 = vpop.f32.mrf.mxu0  ;;  %v1367_v43 = vpop.f32.mrf.mxu1 }
  0xf2   : > { %733 = vst [vmem:[%s1365_s23] sm:$0xff] %v606_v42  ;;  %749 = vst [vmem:[%s1365_s23 + $0x80] sm:$0xff] %v1367_v43  ;;  %v803_v13 = vmul.f32 %v606_v42, %v606_v42 }
  0xf3   : > { %v608_v44 = vpop.f32.mrf.mxu0  ;;  %v672_v45 = vpop.f32.mrf.mxu1 }
  0xf5   : > { %v609_v46 = vpop.f32.mrf.mxu0  ;;  %v1372_v47 = vpop.f32.mrf.mxu1 }
  0xf6   : > { %734 = vst [vmem:[%s1365_s23 + $0x8] sm:$0xff] %v609_v46  ;;  %750 = vst [vmem:[%s1365_s23 + $0x88] sm:$0xff] %v1372_v47  ;;  %v804_v10 = vmul.f32 %v609_v46, %v609_v46  ;;  %v765_v14 = vadd.f32 %v609_v46, %v606_v42 }
  0xf7   : > { %v611_v48 = vpop.f32.mrf.mxu0  ;;  %v675_v49 = vpop.f32.mrf.mxu1 }
  0xf8   : > { %v835_v18 = vadd.f32 %v804_v10, %v803_v13 }
  0xf9   : > { %v614_v50 = vpop.f32.mrf.mxu0  ;;  %v1377_v51 = vpop.f32.mrf.mxu1 }
  0xfa   : > { %735 = vst [vmem:[%s1365_s23 + $0x10] sm:$0xff] %v614_v50  ;;  %751 = vst [vmem:[%s1365_s23 + $0x90] sm:$0xff] %v1377_v51  ;;  %v805_v15 = vmul.f32 %v614_v50, %v614_v50  ;;  %v766_v19 = vadd.f32 %v765_v14, %v614_v50 }
  0xfb   : > { %v616_v52 = vpop.f32.mrf.mxu0  ;;  %v680_v53 = vpop.f32.mrf.mxu1 }
  0xfc   : > { %v836_v23 = vadd.f32 %v835_v18, %v805_v15 }
  0xfd   : > { %v617_v54 = vpop.f32.mrf.mxu0  ;;  %v1382_v55 = vpop.f32.mrf.mxu1 }
  0xfe   : > { %736 = vst [vmem:[%s1365_s23 + $0x18] sm:$0xff] %v617_v54  ;;  %752 = vst [vmem:[%s1365_s23 + $0x98] sm:$0xff] %v1382_v55  ;;  %v806_v20 = vmul.f32 %v617_v54, %v617_v54  ;;  %v767_v24 = vadd.f32 %v766_v19, %v617_v54 }
  0xff   : > { %v619_v56 = vpop.f32.mrf.mxu0  ;;  %v683_v57 = vpop.f32.mrf.mxu1 }
 0x100   : > { %v837_v28 = vadd.f32 %v836_v23, %v806_v20 }
 0x101   : > { %v622_v58 = vpop.f32.mrf.mxu0  ;;  %v1387_v59 = vpop.f32.mrf.mxu1 }
 0x102   : > { %737 = vst [vmem:[%s1365_s23 + $0x20] sm:$0xff] %v622_v58  ;;  %753 = vst [vmem:[%s1365_s23 + $0xa0] sm:$0xff] %v1387_v59  ;;  %v807_v25 = vmul.f32 %v622_v58, %v622_v58  ;;  %v768_v29 = vadd.f32 %v767_v24, %v622_v58 }
 0x103   : > { %v624_v60 = vpop.f32.mrf.mxu0  ;;  %v688_v61 = vpop.f32.mrf.mxu1 }
 0x104   : > { %v838_v33 = vadd.f32 %v837_v28, %v807_v25 }
 0x105   : > { %v625_v62 = vpop.f32.mrf.mxu0  ;;  %v1392_v63 = vpop.f32.mrf.mxu1 }
 0x106   : > { %738 = vst [vmem:[%s1365_s23 + $0x28] sm:$0xff] %v625_v62  ;;  %754 = vst [vmem:[%s1365_s23 + $0xa8] sm:$0xff] %v1392_v63  ;;  %v808_v30 = vmul.f32 %v625_v62, %v625_v62  ;;  %v769_v34 = vadd.f32 %v768_v29, %v625_v62 }
 0x107   : > { %v627_v0 = vpop.f32.mrf.mxu0  ;;  %v691_v1 = vpop.f32.mrf.mxu1 }
 0x108   : > { %v839_v38 = vadd.f32 %v838_v33, %v808_v30 }
 0x109   : > { %v630_v2 = vpop.f32.mrf.mxu0  ;;  %v1397_v3 = vpop.f32.mrf.mxu1 }
 0x10a   : > { %739 = vst [vmem:[%s1365_s23 + $0x30] sm:$0xff] %v630_v2  ;;  %755 = vst [vmem:[%s1365_s23 + $0xb0] sm:$0xff] %v1397_v3  ;;  %v809_v35 = vmul.f32 %v630_v2, %v630_v2  ;;  %v770_v39 = vadd.f32 %v769_v34, %v630_v2  ;;  %v819_v34 = vmul.f32 %v1367_v43, %v1367_v43 }
 0x10b   : > { %v632_v4 = vpop.f32.mrf.mxu0  ;;  %v696_v5 = vpop.f32.mrf.mxu1 }
 0x10c   : > { %v840_v44 = vadd.f32 %v839_v38, %v809_v35 }
 0x10d   : > { %v633_v6 = vpop.f32.mrf.mxu0  ;;  %v1402_v7 = vpop.f32.mrf.mxu1 }
 0x10e   : > { %740 = vst [vmem:[%s1365_s23 + $0x38] sm:$0xff] %v633_v6  ;;  %756 = vst [vmem:[%s1365_s23 + $0xb8] sm:$0xff] %v1402_v7  ;;  %v810_v40 = vmul.f32 %v633_v6, %v633_v6  ;;  %v771_v45 = vadd.f32 %v770_v39, %v633_v6 }
 0x10f   : > { %v635_v8 = vpop.f32.mrf.mxu0  ;;  %v699_v9 = vpop.f32.mrf.mxu1 }
 0x110   : > { %v841_v50 = vadd.f32 %v840_v44, %v810_v40  ;;  %v821_v40 = vmul.f32 %v1377_v51, %v1377_v51 }
 0x111   : > { %v638_v11 = vpop.f32.mrf.mxu0  ;;  %v1407_v12 = vpop.f32.mrf.mxu1 }
 0x112   : > { %741 = vst [vmem:[%s1365_s23 + $0x40] sm:$0xff] %v638_v11  ;;  %757 = vst [vmem:[%s1365_s23 + $0xc0] sm:$0xff] %v1407_v12  ;;  %v811_v46 = vmul.f32 %v638_v11, %v638_v11  ;;  %v772_v52 = vadd.f32 %v771_v45, %v638_v11  ;;  %v822_v45 = vmul.f32 %v1382_v55, %v1382_v55 }
 0x113   : > { %v640_v16 = vpop.f32.mrf.mxu0  ;;  %v704_v17 = vpop.f32.mrf.mxu1 }
 0x114   : > { %v842_v57 = vadd.f32 %v841_v50, %v811_v46 }
 0x115   : > { %v641_v21 = vpop.f32.mrf.mxu0  ;;  %v1412_v22 = vpop.f32.mrf.mxu1 }
 0x116   : > { %742 = vst [vmem:[%s1365_s23 + $0x48] sm:$0xff] %v641_v21  ;;  %758 = vst [vmem:[%s1365_s23 + $0xc8] sm:$0xff] %v1412_v22  ;;  %v812_v53 = vmul.f32 %v641_v21, %v641_v21  ;;  %v773_v58 = vadd.f32 %v772_v52, %v641_v21 }
 0x117   : > { %v643_v26 = vpop.f32.mrf.mxu0  ;;  %v707_v27 = vpop.f32.mrf.mxu1 }
 0x118   : > { %v843_v0 = vadd.f32 %v842_v57, %v812_v53 }
 0x119   : > { %v646_v31 = vpop.f32.mrf.mxu0  ;;  %v1417_v32 = vpop.f32.mrf.mxu1 }
 0x11a   : > { %743 = vst [vmem:[%s1365_s23 + $0x50] sm:$0xff] %v646_v31  ;;  %759 = vst [vmem:[%s1365_s23 + $0xd0] sm:$0xff] %v1417_v32  ;;  %v813_v60 = vmul.f32 %v646_v31, %v646_v31  ;;  %v774_v1 = vadd.f32 %v773_v58, %v646_v31 }
 0x11b   : > { %v648_v36 = vpop.f32.mrf.mxu0  ;;  %v712_v37 = vpop.f32.mrf.mxu1 }
 0x11c   : > { %v844_v6 = vadd.f32 %v843_v0, %v813_v60  ;;  %v820_v37 = vmul.f32 %v1372_v47, %v1372_v47  ;;  %v828_v0 = vmul.f32 %v1412_v22, %v1412_v22 }
 0x11d   : > { %v649_v41 = vpop.f32.mrf.mxu0  ;;  %v1422_v42 = vpop.f32.mrf.mxu1 }
 0x11e   : > { %744 = vst [vmem:[%s1365_s23 + $0x58] sm:$0xff] %v649_v41  ;;  %760 = vst [vmem:[%s1365_s23 + $0xd8] sm:$0xff] %v1422_v42  ;;  %v814_v2 = vmul.f32 %v649_v41, %v649_v41  ;;  %v775_v8 = vadd.f32 %v774_v1, %v649_v41 }
 0x11f   : > { %v651_v48 = vpop.f32.mrf.mxu0  ;;  %v715_v49 = vpop.f32.mrf.mxu1 }
 0x120   : > { %v845_v13 = vadd.f32 %v844_v6, %v814_v2 }
 0x121   : > { %v654_v54 = vpop.f32.mrf.mxu0  ;;  %v1427_v56 = vpop.f32.mrf.mxu1 }
 0x122   : > { %745 = vst [vmem:[%s1365_s23 + $0x60] sm:$0xff] %v654_v54  ;;  %761 = vst [vmem:[%s1365_s23 + $0xe0] sm:$0xff] %v1427_v56  ;;  %v815_v9 = vmul.f32 %v654_v54, %v654_v54  ;;  %v776_v14 = vadd.f32 %v775_v8, %v654_v54 }
 0x123   : > { %v656_v61 = vpop.f32.mrf.mxu0  ;;  %v720_v62 = vpop.f32.mrf.mxu1 }
 0x124   : > { %v846_v18 = vadd.f32 %v845_v13, %v815_v9 }
 0x125   : > { %v657_v4 = vpop.f32.mrf.mxu0  ;;  %v1432_v5 = vpop.f32.mrf.mxu1 }
 0x126   : > { %746 = vst [vmem:[%s1365_s23 + $0x68] sm:$0xff] %v657_v4  ;;  %762 = vst [vmem:[%s1365_s23 + $0xe8] sm:$0xff] %v1432_v5  ;;  %v816_v15 = vmul.f32 %v657_v4, %v657_v4  ;;  %v777_v19 = vadd.f32 %v776_v14, %v657_v4  ;;  %v829_v4 = vmul.f32 %v1417_v32, %v1417_v32 }
 0x127   : > { %v659_v10 = vpop.f32.mrf.mxu0  ;;  %v723_v11 = vpop.f32.mrf.mxu1 }
 0x128   : > { %v847_v24 = vadd.f32 %v846_v18, %v816_v15 }
 0x129   : > { %v662_v16 = vpop.f32.mrf.mxu0  ;;  %v726_v17 = vpop.f32.mrf.mxu1 }
 0x12a   : > { %747 = vst [vmem:[%s1365_s23 + $0x70] sm:$0xff] %v662_v16  ;;  %v817_v20 = vmul.f32 %v662_v16, %v662_v16  ;;  %763 = vst [vmem:[%s1365_s23 + $0xf0] sm:$0xff] %v726_v17  ;;  %v778_v25 = vadd.f32 %v777_v19, %v662_v16  ;;  %v833_v15 = vmul.f32 %v726_v17, %v726_v17 }
 0x12b   : > { %v664_v21 = vpop.f32.mrf.mxu0  ;;  %v728_v23 = vpop.f32.mrf.mxu1 }
 0x12c   : > { %v848_v28 = vadd.f32 %v847_v24, %v817_v20 }
 0x12d   : > { %v665_v26 = vpop.f32.mrf.mxu0  ;;  %v729_v27 = vpop.f32.mrf.mxu1 }
 0x12e   : > { %748 = vst [vmem:[%s1365_s23 + $0x78] sm:$0xff] %v665_v26  ;;  %v779_v29 = vadd.f32 %v778_v25, %v665_v26  ;;  %v818_v30 = vmul.f32 %v665_v26, %v665_v26  ;;  %764 = vst [vmem:[%s1365_s23 + $0xf8] sm:$0xff] %v729_v27  ;;  %v834_v19 = vmul.f32 %v729_v27, %v729_v27 }
 0x12f   : > { %v667_v31 = vpop.f32.mrf.mxu0  ;;  %v731_v33 = vpop.f32.mrf.mxu1 }
 0x130   : > { %v780_v35 = vadd.f32 %v779_v29, %v1367_v43  ;;  %v849_v36 = vadd.f32 %v848_v28, %v818_v30  ;;  %v823_v43 = vmul.f32 %v1387_v59, %v1387_v59 }
 0x132   : > { %v781_v38 = vadd.f32 %v780_v35, %v1372_v47  ;;  %v850_v39 = vadd.f32 %v849_v36, %v819_v34  ;;  %v824_v47 = vmul.f32 %v1392_v63, %v1392_v63 }
 0x134   : > { %v782_v41 = vadd.f32 %v781_v38, %v1377_v51  ;;  %v851_v44 = vadd.f32 %v850_v39, %v820_v37  ;;  %v825_v51 = vmul.f32 %v1397_v3, %v1397_v3 }
 0x136   : > { %v783_v46 = vadd.f32 %v782_v41, %v1382_v55  ;;  %v852_v48 = vadd.f32 %v851_v44, %v821_v40  ;;  %v826_v55 = vmul.f32 %v1402_v7, %v1402_v7 }
 0x138   : > { %v853_v49 = vadd.f32 %v852_v48, %v822_v45  ;;  %v784_v50 = vadd.f32 %v783_v46, %v1387_v59  ;;  %v827_v59 = vmul.f32 %v1407_v12, %v1407_v12 }
 0x13a   : > { %v785_v52 = vadd.f32 %v784_v50, %v1392_v63  ;;  %v854_v53 = vadd.f32 %v853_v49, %v823_v43 }
 0x13c   : > { %v786_v54 = vadd.f32 %v785_v52, %v1397_v3  ;;  %v855_v57 = vadd.f32 %v854_v53, %v824_v47 }
 0x13e   : > { %v787_v58 = vadd.f32 %v786_v54, %v1402_v7  ;;  %v856_v60 = vadd.f32 %v855_v57, %v825_v51 }
 0x140   : > { %v788_v61 = vadd.f32 %v787_v58, %v1407_v12  ;;  %v857_v62 = vadd.f32 %v856_v60, %v826_v55  ;;  %v830_v12 = vmul.f32 %v1422_v42, %v1422_v42 }
 0x142   : > { %v789_v63 = vadd.f32 %v788_v61, %v1412_v22  ;;  %v858_v1 = vadd.f32 %v857_v62, %v827_v59  ;;  %v831_v22 = vmul.f32 %v1427_v56, %v1427_v56 }
 0x144   : > { %v859_v3 = vadd.f32 %v858_v1, %v828_v0  ;;  %v790_v2 = vadd.f32 %v789_v63, %v1417_v32  ;;  %v832_v32 = vmul.f32 %v1432_v5, %v1432_v5 }
 0x146   : > { %v860_v7 = vadd.f32 %v859_v3, %v829_v4  ;;  %v791_v6 = vadd.f32 %v790_v2, %v1422_v42 }
 0x148   : > { %v861_v8 = vadd.f32 %v860_v7, %v830_v12  ;;  %v792_v9 = vadd.f32 %v791_v6, %v1427_v56 }
 0x14a   : > { %v862_v10 = vadd.f32 %v861_v8, %v831_v22  ;;  %v793_v11 = vadd.f32 %v792_v9, %v1432_v5 }
 0x14c   : > { %v863_v13 = vadd.f32 %v862_v10, %v832_v32  ;;  %v794_v14 = vadd.f32 %v793_v11, %v726_v17 }
 0x14e   : > { %v864_v16 = vadd.f32 %v863_v13, %v833_v15  ;;  %v795_v18 = vadd.f32 %v794_v14, %v729_v27 }
 0x150   : > { %v796_v42 = vrot.slane %v795_v18, 4  ;;  %v865_v20 = vadd.f32 %v864_v16, %v834_v19 }
 0x152   : > { %v797_v21 = vadd.f32 %v796_v42, %v795_v18  ;;  %v866_v23 = vrot.slane %v865_v20, 4 }
 0x154   : > { %v798_v24 = vrot.slane %v797_v21, 2  ;;  %v867_v56 = vadd.f32 %v866_v23, %v865_v20 }
 0x156   : > { %v799_v25 = vadd.f32 %v798_v24, %v797_v21  ;;  %v868_v26 = vrot.slane %v867_v56, 2 }
 0x158   : > { %v800_v28 = vrot.slane %v799_v25, 1  ;;  %v869_v29 = vadd.f32 %v868_v26, %v867_v56 }
 0x15a   : > { %v801_v5 = vadd.f32 %v800_v28, %v799_v25  ;;  %v870_v17 = vrot.slane %v869_v29, 1 }
 0x15c   : > { %802 = vst [vmem:[%s267_s25] sm:$0x1] %v801_v5  ;;  %v871_v27 = vadd.f32 %v870_v17, %v869_v29 }
 0x15e   : > { %872 = vst [vmem:[%s273_s28] sm:$0x1] %v871_v27 }
 0x15f PF: > { %s15_s17 = sadd.s32 1, %s1226_s17   ;;  %s1505_s15 = smov %s1222_s16 }
 0x160   : > { %p12_p6 = scmp.ge.s32.totalorder %s15_s17, 4   ;;  %s1506_s16 = smov %s1508_s18 }
 0x162   :  { %14 = sbr.rel (!%p12_p6) target bundleno = 2 (0x2), region = 85 }

// kernel: unet_forward.49
= control target key start
LH: loop header
LB: loop body
LE: loop exit
PB: predicated region body
PF: predicated region fallthrough
CT: control target
= control target key end

     0   :  { %s882_s12 = smov 0   ;;  %s884_s13 = smov 0   ;;  %s1027_s0 = inlined_call_operand.vmem [shape: bf16[512,16], index: 0, kind: input, shape index: {}]   ;;  %s1028_s1 = inlined_call_operand.vmem [shape: bf16[16,128], index: 1, kind: input, shape index: {}]   ;;  %s1029_s2 = inlined_call_operand.vmem [shape: f32[1,128], index: 2, kind: input, shape index: {}]   ;;  %s1030_s3 = inlined_call_operand.vmem [shape: f32[512,128], index: 3, kind: output, shape index: {}]  }
   0x1   :  { %s886_s14 = smov 0  }
   0x2 LB: > { %s25_s15 = sadd.s32 1, %s856_s13  ;;  %p703_p0 = scmp.ge.s32.totalorder %s860_s14, 1  ;;  %s860_s14 = sphi %s886_s14, %s13_s14   ;;  %s856_s13 = sphi %s884_s13, %s1032_s13   ;;  %s852_s12 = sphi %s882_s12, %s1031_s12  }
   0x3   : > { %p27_p1 = scmp.ge.s32.totalorder %s25_s15, 2  ;;  %p169_p2 = scmp.lt.s32.totalorder %s860_s14, 3 }
   0x5   : > { %s1034_s15 = smov (%p27_p1, %s25_s15), 0  ;;  %p170_p3 = pnand %p703_p0, %p169_p2 }
   0x6   : > { %s704_s18 = sshll.u32 (!%p170_p3), %s852_s12, 5 }
   0x7   : > { %173 = sbr.rel (%p170_p3) target bundleno = 244 (0xf4), region = 32  ;;  %p204_p4 = scmp.lt.s32.totalorder (!%p170_p3), %s704_s18, 63 }
   0xc   : > { %v821_v0 = vld [vmem:[%s1028_s1] sm:$0xff]   ;;  %s1036_s18 = smov (!%p204_p4, %s704_s18), 63  ;;  %vm353_vm0 = vcmask 130048  }
   0xd   : > { %761 = vmatprep.subr.bf16.mxu0 %v821_v0  ;;  %795 = vmatprep.subr.bf16.mxu1 %v821_v0  ;;  %s705_s19 = sshll.u32 %s1036_s18, 2  ;;  %s707_s23 = sshll.u32 %s1036_s18, 3  ;;  %v947_v17 = vld [vmem:[%s1029_s2] ss:$0 sm:$0xff] }
   0xe   : > { %762 = vmatpush3.bf16.msra.mxu0 %v821_v0  ;;  %796 = vmatpush3.bf16.msra.mxu1 %v821_v0  ;;  %s909_s22 = scalar_lea.vmem %s1027_s0, %s705_s19  ;;  %s952_s28 = scalar_lea.vmem %s1030_s3, %s707_s23 }
   0xf   : > { %v822_v1 = vld [vmem:[%s909_s22] sm:$0xff]   ;;  %v824_v3 = vld [vmem:[%s909_s22 + $0x8] sm:$0xff]   ;;  %v826_v5 = vld [vmem:[%s909_s22 + $0x10] sm:$0xff]  }
  0x10   : > { %v823_v2 = vld [vmem:[%s909_s22 + $0x40] sm:$0xff]   ;;  %763 = vmatprep.mubr.msk.bf16.mxu0 %vm353_vm0, %v822_v1  ;;  %v825_v4 = vld [vmem:[%s909_s22 + $0x48] sm:$0xff]   ;;  %v827_v6 = vld [vmem:[%s909_s22 + $0x50] sm:$0xff]  }
  0x11   : > { %779 = vmatprep.mubr.msk.bf16.mxu1 %vm353_vm0, %v823_v2  ;;  %764 = vmatmul.mubr.msk.bf16.vlgmr.msra.gmra.mxu0 %vm353_vm0, %v824_v3  ;;  %v828_v7 = vld [vmem:[%s909_s22 + $0x18] sm:$0xff]   ;;  %v830_v9 = vld [vmem:[%s909_s22 + $0x20] sm:$0xff]   ;;  %v832_v11 = vld [vmem:[%s909_s22 + $0x28] sm:$0xff]  }
  0x12   : > { %780 = vmatmul.mubr.msk.bf16.vlgmr.msra.gmra.mxu1 %vm353_vm0, %v825_v4  ;;  %767 = vmatprep.mubr.msk.bf16.mxu0 %vm353_vm0, %v826_v5  ;;  %v829_v8 = vld [vmem:[%s909_s22 + $0x58] sm:$0xff]   ;;  %v831_v10 = vld [vmem:[%s909_s22 + $0x60] sm:$0xff]   ;;  %v833_v12 = vld [vmem:[%s909_s22 + $0x68] sm:$0xff]  }
  0x13   : > { %783 = vmatprep.mubr.msk.bf16.mxu1 %vm353_vm0, %v827_v6  ;;  %v834_v13 = vld [vmem:[%s909_s22 + $0x30] sm:$0xff]   ;;  %v836_v15 = vld [vmem:[%s909_s22 + $0x38] sm:$0xff]  }
  0x14   : > { %v835_v14 = vld [vmem:[%s909_s22 + $0x70] sm:$0xff]   ;;  %v837_v16 = vld [vmem:[%s909_s22 + $0x78] sm:$0xff]  }
  0x19   : > { %768 = vmatmul.mubr.msk.bf16.gmra.mxu0 %vm353_vm0, %v828_v7 }
  0x1a   : > { %784 = vmatmul.mubr.msk.bf16.gmra.mxu1 %vm353_vm0, %v829_v8  ;;  %771 = vmatprep.mubr.msk.bf16.mxu0 %vm353_vm0, %v830_v9 }
  0x1b   : > { %787 = vmatprep.mubr.msk.bf16.mxu1 %vm353_vm0, %v831_v10 }
  0x21   : > { %772 = vmatmul.mubr.msk.bf16.gmra.mxu0 %vm353_vm0, %v832_v11 }
  0x22   : > { %788 = vmatmul.mubr.msk.bf16.gmra.mxu1 %vm353_vm0, %v833_v12  ;;  %775 = vmatprep.mubr.msk.bf16.mxu0 %vm353_vm0, %v834_v13 }
  0x23   : > { %791 = vmatprep.mubr.msk.bf16.mxu1 %vm353_vm0, %v835_v14 }
  0x29   : > { %776 = vmatmul.mubr.msk.bf16.gmra.mxu0 %vm353_vm0, %v836_v15 }
  0x2a   : > { %792 = vmatmul.mubr.msk.bf16.gmra.mxu1 %vm353_vm0, %v837_v16 }
  0xd1   : > { %v765_v18 = vpop.f32.mrf.mxu0 }
  0xd2   : > { %v445_v19 = vadd.f32 %v765_v18, %v947_v17  ;;  %v781_v20 = vpop.f32.mrf.mxu1 }
  0xd3   : > { %v509_v21 = vadd.f32 %v781_v20, %v947_v17  ;;  %v436_v22 = vpop.f32.mrf.mxu0 }
  0xd4   : > { %565 = vst [vmem:[%s952_s28 + $0x10] sm:$0xff] %v445_v19  ;;  %v437_v23 = vadd.f32 %v947_v17, %v436_v22  ;;  %v500_v24 = vpop.f32.mrf.mxu1 }
  0xd5   : > { %581 = vst [vmem:[%s952_s28 + $0x90] sm:$0xff] %v509_v21  ;;  %v501_v25 = vadd.f32 %v947_v17, %v500_v24  ;;  %v766_v26 = vpop.f32.mrf.mxu0 }
  0xd6   : > { %563 = vst [vmem:[%s952_s28] sm:$0xff] %v437_v23  ;;  %v448_v27 = vadd.f32 %v766_v26, %v947_v17  ;;  %v782_v28 = vpop.f32.mrf.mxu1 }
  0xd7   : > { %579 = vst [vmem:[%s952_s28 + $0x80] sm:$0xff] %v501_v25  ;;  %v512_v29 = vadd.f32 %v782_v28, %v947_v17  ;;  %v439_v30 = vpop.f32.mrf.mxu0 }
  0xd8   : > { %566 = vst [vmem:[%s952_s28 + $0x18] sm:$0xff] %v448_v27  ;;  %v440_v31 = vadd.f32 %v947_v17, %v439_v30  ;;  %v503_v32 = vpop.f32.mrf.mxu1 }
  0xd9   : > { %582 = vst [vmem:[%s952_s28 + $0x98] sm:$0xff] %v512_v29  ;;  %v504_v33 = vadd.f32 %v947_v17, %v503_v32  ;;  %v769_v34 = vpop.f32.mrf.mxu0 }
  0xda   : > { %564 = vst [vmem:[%s952_s28 + $0x8] sm:$0xff] %v440_v31  ;;  %v461_v35 = vadd.f32 %v769_v34, %v947_v17  ;;  %v785_v36 = vpop.f32.mrf.mxu1 }
  0xdb   : > { %580 = vst [vmem:[%s952_s28 + $0x88] sm:$0xff] %v504_v33  ;;  %v525_v37 = vadd.f32 %v785_v36, %v947_v17  ;;  %v452_v38 = vpop.f32.mrf.mxu0 }
  0xdc   : > { %569 = vst [vmem:[%s952_s28 + $0x30] sm:$0xff] %v461_v35  ;;  %v453_v39 = vadd.f32 %v947_v17, %v452_v38  ;;  %v516_v40 = vpop.f32.mrf.mxu1 }
  0xdd   : > { %585 = vst [vmem:[%s952_s28 + $0xb0] sm:$0xff] %v525_v37  ;;  %v517_v41 = vadd.f32 %v947_v17, %v516_v40  ;;  %v770_v42 = vpop.f32.mrf.mxu0 }
  0xde   : > { %567 = vst [vmem:[%s952_s28 + $0x20] sm:$0xff] %v453_v39  ;;  %v464_v43 = vadd.f32 %v770_v42, %v947_v17  ;;  %v786_v44 = vpop.f32.mrf.mxu1 }
  0xdf   : > { %583 = vst [vmem:[%s952_s28 + $0xa0] sm:$0xff] %v517_v41  ;;  %v528_v45 = vadd.f32 %v786_v44, %v947_v17  ;;  %v455_v46 = vpop.f32.mrf.mxu0 }
  0xe0   : > { %570 = vst [vmem:[%s952_s28 + $0x38] sm:$0xff] %v464_v43  ;;  %v456_v47 = vadd.f32 %v947_v17, %v455_v46  ;;  %v519_v48 = vpop.f32.mrf.mxu1 }
  0xe1   : > { %586 = vst [vmem:[%s952_s28 + $0xb8] sm:$0xff] %v528_v45  ;;  %v520_v49 = vadd.f32 %v947_v17, %v519_v48  ;;  %v773_v50 = vpop.f32.mrf.mxu0 }
  0xe2   : > { %568 = vst [vmem:[%s952_s28 + $0x28] sm:$0xff] %v456_v47  ;;  %v477_v51 = vadd.f32 %v773_v50, %v947_v17  ;;  %v789_v52 = vpop.f32.mrf.mxu1 }
  0xe3   : > { %584 = vst [vmem:[%s952_s28 + $0xa8] sm:$0xff] %v520_v49  ;;  %v541_v53 = vadd.f32 %v789_v52, %v947_v17  ;;  %v468_v54 = vpop.f32.mrf.mxu0 }
  0xe4   : > { %573 = vst [vmem:[%s952_s28 + $0x50] sm:$0xff] %v477_v51  ;;  %v469_v55 = vadd.f32 %v947_v17, %v468_v54  ;;  %v532_v56 = vpop.f32.mrf.mxu1 }
  0xe5   : > { %589 = vst [vmem:[%s952_s28 + $0xd0] sm:$0xff] %v541_v53  ;;  %v533_v57 = vadd.f32 %v947_v17, %v532_v56  ;;  %v774_v58 = vpop.f32.mrf.mxu0 }
  0xe6   : > { %571 = vst [vmem:[%s952_s28 + $0x40] sm:$0xff] %v469_v55  ;;  %v480_v59 = vadd.f32 %v774_v58, %v947_v17  ;;  %v790_v60 = vpop.f32.mrf.mxu1 }
  0xe7   : > { %587 = vst [vmem:[%s952_s28 + $0xc0] sm:$0xff] %v533_v57  ;;  %v544_v61 = vadd.f32 %v790_v60, %v947_v17  ;;  %v471_v62 = vpop.f32.mrf.mxu0 }
  0xe8   : > { %574 = vst [vmem:[%s952_s28 + $0x58] sm:$0xff] %v480_v59  ;;  %v472_v63 = vadd.f32 %v947_v17, %v471_v62  ;;  %v535_v0 = vpop.f32.mrf.mxu1 }
  0xe9   : > { %590 = vst [vmem:[%s952_s28 + $0xd8] sm:$0xff] %v544_v61  ;;  %v536_v1 = vadd.f32 %v947_v17, %v535_v0  ;;  %v777_v2 = vpop.f32.mrf.mxu0 }
  0xea   : > { %572 = vst [vmem:[%s952_s28 + $0x48] sm:$0xff] %v472_v63  ;;  %v493_v3 = vadd.f32 %v777_v2, %v947_v17  ;;  %v793_v4 = vpop.f32.mrf.mxu1 }
  0xeb   : > { %588 = vst [vmem:[%s952_s28 + $0xc8] sm:$0xff] %v536_v1  ;;  %v557_v5 = vadd.f32 %v793_v4, %v947_v17  ;;  %v484_v6 = vpop.f32.mrf.mxu0 }
  0xec   : > { %577 = vst [vmem:[%s952_s28 + $0x70] sm:$0xff] %v493_v3  ;;  %v485_v7 = vadd.f32 %v947_v17, %v484_v6  ;;  %v548_v8 = vpop.f32.mrf.mxu1 }
  0xed   : > { %593 = vst [vmem:[%s952_s28 + $0xf0] sm:$0xff] %v557_v5  ;;  %v549_v9 = vadd.f32 %v947_v17, %v548_v8  ;;  %v778_v10 = vpop.f32.mrf.mxu0 }
  0xee   : > { %575 = vst [vmem:[%s952_s28 + $0x60] sm:$0xff] %v485_v7  ;;  %v496_v11 = vadd.f32 %v778_v10, %v947_v17  ;;  %v794_v12 = vpop.f32.mrf.mxu1 }
  0xef   : > { %591 = vst [vmem:[%s952_s28 + $0xe0] sm:$0xff] %v549_v9  ;;  %v560_v13 = vadd.f32 %v794_v12, %v947_v17  ;;  %v487_v14 = vpop.f32.mrf.mxu0 }
  0xf0   : > { %578 = vst [vmem:[%s952_s28 + $0x78] sm:$0xff] %v496_v11  ;;  %v488_v15 = vadd.f32 %v947_v17, %v487_v14  ;;  %v551_v16 = vpop.f32.mrf.mxu1 }
  0xf1   : > { %594 = vst [vmem:[%s952_s28 + $0xf8] sm:$0xff] %v560_v13  ;;  %v552_v18 = vadd.f32 %v947_v17, %v551_v16 }
  0xf2   : > { %576 = vst [vmem:[%s952_s28 + $0x68] sm:$0xff] %v488_v15 }
  0xf3   : > { %592 = vst [vmem:[%s952_s28 + $0xe8] sm:$0xff] %v552_v18 }
  0xf4 PF: > { %s13_s14 = sadd.s32 1, %s860_s14   ;;  %s1031_s12 = smov %s856_s13 }
  0xf5   : > { %p10_p5 = scmp.ge.s32.totalorder %s13_s14, 4   ;;  %s1032_s13 = smov %s1034_s15 }
  0xf7   :  { %12 = sbr.rel (!%p10_p5) target bundleno = 2 (0x2), region = 68 }

</bundles_post_ra>
